<compile_context>
chip_gen: v7x
topology: tpu7x:2x2x1
jax: 0.10.0
libtpu: 0.0.40
codegen_flags: <defaults>
</compile_context>

<pallas_src>
import jax
import jax.numpy as jnp
from jax.experimental import pallas as pl
from jax.experimental.pallas import tpu as pltpu


def _controller_kernel(x_ref, e_ref, adj_ref,
                       wbd_ref, bet_ref, r_ref, s_ref,
                       w1x_ref, w1a_ref, b1_ref,
                       w2_ref, b2_ref,
                       o_ref):
    # x_ref  : (Bn, node_dim)        f32
    # e_ref  : (Bn, n*edge_dim)      f32   lane-dense repacked edge features
    # adj_ref: (Bn, n)               f32   0/1 mask
    # wbd_ref: (n*edge_dim, n*hidden) bf16  block-diagonal edge weight
    # bet_ref: (1, n*hidden)          f32   edge bias tiled n times
    # r_ref  : (n, n*hidden)          bf16  0/1 lane-expansion matrix
    # s_ref  : (n*hidden, hidden)     bf16  0/1 source-sum matrix
    # o_ref  : (action_dim, Bn)       f32   transposed -> lane-dense store
    f32 = jnp.float32
    bf = jnp.bfloat16

    # ---- edge MLP for all n sources per destination: one K=128 MXU matmul ----
    msg = jnp.dot(e_ref[...].astype(bf), wbd_ref[...],
                  preferred_element_type=f32)                  # (Bn, n*hidden)
    msg = jnp.maximum(msg + bet_ref[...], 0.0)

    # ---- masked neighbor aggregation, entirely lane-dense --------------------
    # adj lane expansion on the MXU: adj (Bn, n) @ R (n, n*hidden); entries are
    # exact 0/1 so bf16 operands are lossless.
    adj_wide = jnp.dot(adj_ref[...].astype(bf), r_ref[...],
                       preferred_element_type=f32)             # (Bn, n*hidden)
    masked = msg * adj_wide                                    # f32 elementwise
    # source-axis reduction as a matmul with a constant 0/1 summing matrix
    # (bf16 terms, exact bf16*bf16 products, f32 accumulation).
    agg = jnp.dot(masked.astype(bf), s_ref[...],
                  preferred_element_type=f32)                  # (Bn, hidden)

    # ---- node MLP: concat(x, agg) @ W1 == x @ W1x + agg @ W1a -----------------
    h = (jnp.dot(x_ref[...].astype(bf), w1x_ref[...], preferred_element_type=f32)
         + jnp.dot(agg.astype(bf), w1a_ref[...], preferred_element_type=f32)
         + b1_ref[...])
    h = jnp.maximum(h, 0.0)                                    # (Bn, hidden)

    # ---- action head + lane-dense transposed store ---------------------------
    act = jnp.tanh(jnp.dot(h.astype(bf), w2_ref[...], preferred_element_type=f32)
                   + b2_ref[...])                              # (Bn, action_dim)
    o_ref[...] = act.T.astype(o_ref.dtype)                     # (action_dim, Bn)


def _vmem_limit_bytes():
    """Per-generation VMEM cap: ~5/8 of physical, never above 48 MiB."""
    cap = 64 * 1024 * 1024  # conservative fallback (v7x physical)
    try:
        info = pltpu.get_tpu_info()
        cap = int(getattr(info, "vmem_capacity_bytes", cap))
    except Exception:
        pass
    return min(48 * 1024 * 1024, (cap * 5) // 8)


def _pick_batch_block(bs, n, edge_dim, hidden, node_dim, action_dim,
                      vmem_budget_bytes):
    """Pick graphs-per-grid-step B from a padding-aware VMEM model.

    Constraints: B divides bs; the per-step blocks are (8,128)-legal and the
    transposed output block (action_dim, B*n) is lane-dense.  Preference:
    the largest B giving an even step count (both v7x TensorCores get work;
    the extra ~0.35us step is negligible on single-TC v5e/v6e), else the
    largest feasible B.
    """
    def pad(v, m):
        return ((v + m - 1) // m) * m

    nH = n * hidden

    def vmem_bytes(B):
        bn = B * n
        # double-buffered, lane-padded f32 input blocks + transposed output
        io = 2 * bn * (pad(n * edge_dim, 128) + pad(node_dim, 128) + pad(n, 128)) * 4
        io += 2 * pad(action_dim, 8) * bn * 4
        # live lane-dense f32 intermediates (msg, adj_wide, masked; ~3x)
        inter = 3 * bn * nH * 4
        # replicated weights (bf16, double-buffered); lane padding of the tiny
        # ones is negligible
        w_elems = (n * edge_dim * nH + n * nH + nH * hidden
                   + node_dim * hidden + hidden * hidden + hidden * action_dim)
        w = 2 * 2 * w_elems + 4 * (nH + hidden + pad(action_dim, 128))
        return io + inter + w

    candidates = []
    for B in range(1, bs + 1):
        if bs % B:
            continue
        lane_ok = (B * n) % 128 == 0 or B == bs
        sub_ok = (B * n) % 8 == 0 or B == bs
        if lane_ok and sub_ok and vmem_bytes(B) <= vmem_budget_bytes:
            candidates.append(B)
    if not candidates:
        return bs
    even = [B for B in candidates if (bs // B) % 2 == 0]
    return max(even) if even else max(candidates)


def multi_agent_controller_forward(x, e, adj, params, batch_block=None):
    """
    x   : (bs, n, node_dim) float32
    e   : (bs, n, n, edge_dim) float32   [batch, dst, src, feature]
    adj : (bs, n, n) float32 0/1 mask
    returns actions (bs * n, action_dim) float32
    """
    bs, n, node_dim = x.shape
    edge_dim = e.shape[-1]
    hidden = params["we"].shape[1]
    action_dim = params["w2"].shape[-1]
    nH = n * hidden

    vmem_limit = _vmem_limit_bytes()
    if batch_block is None:
        B = _pick_batch_block(bs, n, edge_dim, hidden, node_dim, action_dim,
                              (vmem_limit * 2) // 3)
    else:
        B = batch_block
        assert bs % B == 0, "batch block must divide the batch size"
        assert (B * n) % 8 == 0 or B == bs, \
            "batch_block * num_agents must be a multiple of 8 (sublane tiling)"
        assert (B * n) % 128 == 0 or B == bs, \
            "batch_block * num_agents must be a multiple of 128 (lane-dense blocks)"
    num_blocks = bs // B
    bn = B * n

    f32 = jnp.float32
    bf = jnp.bfloat16

    # Free, row-major metadata reshapes only — no wrapper-side dtype
    # materialization of the big tensors (kernel casts to bf16 at the dot).
    x2 = x.reshape(bs * n, node_dim).astype(f32)
    e2 = e.reshape(bs * n, n * edge_dim).astype(f32)   # lane-dense repack
    adj2 = adj.reshape(bs * n, n).astype(f32)

    # Tiny constant weight transforms (done once; exact 0/1 helpers are bf16-safe).
    we = params["we"].astype(f32)                       # (edge_dim, hidden)
    eye_n = jnp.eye(n, dtype=f32)
    wbd = jnp.einsum("jk,dh->jdkh", eye_n, we).reshape(n * edge_dim, nH).astype(bf)
    bet = jnp.tile(params["be"].astype(f32), (1, n))                      # (1, nH)
    r = jnp.repeat(eye_n, hidden, axis=1).astype(bf)                      # (n, nH)
    s = jnp.tile(jnp.eye(hidden, dtype=f32), (n, 1)).astype(bf)           # (nH, hidden)
    w1x = params["w1x"].astype(bf)
    w1a = params["w1a"].astype(bf)
    b1 = params["b1"].astype(f32)
    w2 = params["w2"].astype(bf)
    b2 = params["b2"].astype(f32)

    rep2 = lambda b: (0, 0)  # replicated weight blocks

    matmul_flops = 2 * bs * n * (
        (n * edge_dim) * nH + n * nH + nH * hidden
        + node_dim * hidden + hidden * hidden + hidden * action_dim)
    bytes_accessed = (4 * (x2.size + e2.size + adj2.size + bs * n * action_dim)
                      + 2 * (wbd.size + r.size + s.size + w1x.size + w1a.size + w2.size)
                      + 4 * (bet.size + b1.size + b2.size))
    cost = pl.CostEstimate(flops=int(matmul_flops),
                           transcendentals=int(bs * n * action_dim),
                           bytes_accessed=int(bytes_accessed))

    out_t = pl.pallas_call(
        _controller_kernel,
        out_shape=jax.ShapeDtypeStruct((action_dim, bs * n), jnp.float32),
        grid_spec=pltpu.PrefetchScalarGridSpec(
            num_scalar_prefetch=0,
            grid=(num_blocks,),
            in_specs=[
                pl.BlockSpec((bn, node_dim), lambda b: (b, 0)),
                pl.BlockSpec((bn, n * edge_dim), lambda b: (b, 0)),
                pl.BlockSpec((bn, n), lambda b: (b, 0)),
                pl.BlockSpec(wbd.shape, rep2),
                pl.BlockSpec(bet.shape, rep2),
                pl.BlockSpec(r.shape, rep2),
                pl.BlockSpec(s.shape, rep2),
                pl.BlockSpec(w1x.shape, rep2),
                pl.BlockSpec(w1a.shape, rep2),
                pl.BlockSpec(b1.shape, rep2),
                pl.BlockSpec(w2.shape, rep2),
                pl.BlockSpec(b2.shape, rep2),
            ],
            out_specs=pl.BlockSpec((action_dim, bn), lambda b: (0, b)),
        ),
        compiler_params=pltpu.CompilerParams(
            dimension_semantics=("parallel",),
            vmem_limit_bytes=vmem_limit),
        cost_estimate=cost,
    )(x2, e2, adj2, wbd, bet, r, s, w1x, w1a, b1, w2, b2)

    # (action_dim, bs*n) -> (bs*n, action_dim); tiny transpose in the wrapper.
    return out_t.T


def init_params(key, node_dim, edge_dim, action_dim, hidden):
    ks = jax.random.split(key, 7)
    s = 0.1
    return {
        "we":  s * jax.random.normal(ks[0], (edge_dim, hidden), jnp.float32),
        "be":  s * jax.random.normal(ks[1], (1, hidden), jnp.float32),
        "w1x": s * jax.random.normal(ks[2], (node_dim, hidden), jnp.float32),
        "w1a": s * jax.random.normal(ks[3], (hidden, hidden), jnp.float32),
        "b1":  s * jax.random.normal(ks[4], (1, hidden), jnp.float32),
        "w2":  s * jax.random.normal(ks[5], (hidden, action_dim), jnp.float32),
        "b2":  s * jax.random.normal(ks[6], (1, action_dim), jnp.float32),
    }


def reference_forward(x, e, adj, p):
    # Pure-JAX reference mirroring the kernel's bf16-in / f32-accumulate casts.
    bf = jnp.bfloat16
    f32 = jnp.float32
    msg = jnp.einsum("bijd,dh->bijh", e.astype(bf), p["we"].astype(bf),
                     preferred_element_type=f32) + p["be"][0]
    msg = jnp.maximum(msg, 0.0)
    masked = (msg * adj[..., None]).astype(bf).astype(f32)
    agg = jnp.sum(masked, axis=2)
    h = (jnp.einsum("bid,dh->bih", x.astype(bf), p["w1x"].astype(bf),
                    preferred_element_type=f32)
         + jnp.einsum("bih,hk->bik", agg.astype(bf), p["w1a"].astype(bf),
                      preferred_element_type=f32)
         + p["b1"][0])
    h = jnp.maximum(h, 0.0)
    act = jnp.tanh(jnp.einsum("bih,ha->bia", h.astype(bf), p["w2"].astype(bf),
                              preferred_element_type=f32) + p["b2"][0])
    return act.reshape(-1, p["w2"].shape[-1])


if __name__ == "__main__":
    # Small shapes consistent with the module's constructor arguments.
    num_agents = 32
    node_dim = 4
    edge_dim = 4
    action_dim = 2
    hidden = 32
    bs = 8            # -> B = 4 graphs per grid step, 2 (even) grid steps

    key = jax.random.PRNGKey(0)
    kx, ke, ka, kp = jax.random.split(key, 4)

    x = jax.random.normal(kx, (bs, num_agents, node_dim), jnp.float32)
    e = jax.random.normal(ke, (bs, num_agents, num_agents, edge_dim), jnp.float32)
    # random 0/1 adjacency mask (no self loops)
    adj = (jax.random.uniform(ka, (bs, num_agents, num_agents)) > 0.5).astype(jnp.float32)
    adj = adj * (1.0 - jnp.eye(num_agents, dtype=jnp.float32)[None])

    params = init_params(kp, node_dim, edge_dim, action_dim, hidden)

    fwd = jax.jit(lambda x_, e_, adj_: multi_agent_controller_forward(x_, e_, adj_, params))
    actions = jax.block_until_ready(fwd(x, e, adj))

    ref = reference_forward(x, e, adj, params)
    assert actions.shape == (bs * num_agents, action_dim)
    assert jnp.allclose(actions, ref, atol=3e-3, rtol=3e-3), \
        float(jnp.max(jnp.abs(actions - ref)))

    print("KERNEL_OK")
</pallas_src>

<mosaic_0001>
module attributes {stable_mosaic.version = 11 : i64} {
  func.func @_controller_kernel(%arg0: i32, %arg1: memref<128x4xf32, #tpu.memory_space<vmem>>, %arg2: memref<128x128xf32, #tpu.memory_space<vmem>>, %arg3: memref<128x32xf32, #tpu.memory_space<vmem>>, %arg4: memref<128x1024xbf16, #tpu.memory_space<vmem>>, %arg5: memref<1x1024xf32, #tpu.memory_space<vmem>>, %arg6: memref<32x1024xbf16, #tpu.memory_space<vmem>>, %arg7: memref<1024x32xbf16, #tpu.memory_space<vmem>>, %arg8: memref<4x32xbf16, #tpu.memory_space<vmem>>, %arg9: memref<32x32xbf16, #tpu.memory_space<vmem>>, %arg10: memref<1x32xf32, #tpu.memory_space<vmem>>, %arg11: memref<32x2xbf16, #tpu.memory_space<vmem>>, %arg12: memref<1x2xf32, #tpu.memory_space<vmem>>, %arg13: memref<2x128xf32, #tpu.memory_space<vmem>>) attributes {dimension_semantics = [#tpu.dimension_semantics<parallel>], iteration_bounds = array<i64: 2>, scalar_prefetch = 0 : i64, scratch_operands = 0 : i64, tpu.core_type = #tpu.core_type<tc>, window_params = [{transform_indices = @transform_0, window_bounds = array<i64: 128, 4>}, {transform_indices = @transform_1, window_bounds = array<i64: 128, 128>}, {transform_indices = @transform_2, window_bounds = array<i64: 128, 32>}, {pipeline_mode = #tpu.pipeline_mode<synchronous>, transform_indices = @transform_3, window_bounds = array<i64: 128, 1024>}, {pipeline_mode = #tpu.pipeline_mode<synchronous>, transform_indices = @transform_4, window_bounds = array<i64: 1, 1024>}, {pipeline_mode = #tpu.pipeline_mode<synchronous>, transform_indices = @transform_5, window_bounds = array<i64: 32, 1024>}, {pipeline_mode = #tpu.pipeline_mode<synchronous>, transform_indices = @transform_6, window_bounds = array<i64: 1024, 32>}, {pipeline_mode = #tpu.pipeline_mode<synchronous>, transform_indices = @transform_7, window_bounds = array<i64: 4, 32>}, {pipeline_mode = #tpu.pipeline_mode<synchronous>, transform_indices = @transform_8, window_bounds = array<i64: 32, 32>}, {pipeline_mode = #tpu.pipeline_mode<synchronous>, transform_indices = @transform_9, window_bounds = array<i64: 1, 32>}, {pipeline_mode = #tpu.pipeline_mode<synchronous>, transform_indices = @transform_10, window_bounds = array<i64: 32, 2>}, {pipeline_mode = #tpu.pipeline_mode<synchronous>, transform_indices = @transform_11, window_bounds = array<i64: 1, 2>}, {transform_indices = @transform_12, window_bounds = array<i64: 2, 128>}]} {
    %c0 = arith.constant 0 : index
    %c0_0 = arith.constant 0 : index
    %0 = vector.load %arg2[%c0, %c0_0] : memref<128x128xf32, #tpu.memory_space<vmem>>, vector<128x128xf32>
    %1 = arith.truncf %0 : vector<128x128xf32> to vector<128x128xbf16>
    %c0_1 = arith.constant 0 : index
    %c0_2 = arith.constant 0 : index
    %2 = vector.load %arg4[%c0_1, %c0_2] : memref<128x1024xbf16, #tpu.memory_space<vmem>>, vector<128x1024xbf16>
    %cst = arith.constant dense<0.000000e+00> : vector<128x1024xf32>
    %3 = tpu.matmul %1, %2, %cst {dimension_numbers = #tpu.dot_dimension_numbers<[1], [0], [0], [1], [0, 0, 1, 1], [], []>} : vector<128x128xbf16>, vector<128x1024xbf16>, vector<128x1024xf32> -> vector<128x1024xf32>
    %c0_3 = arith.constant 0 : index
    %c0_4 = arith.constant 0 : index
    %4 = vector.load %arg5[%c0_3, %c0_4] : memref<1x1024xf32, #tpu.memory_space<vmem>>, vector<1x1024xf32>
    %5 = vector.broadcast %4 : vector<1x1024xf32> to vector<128x1024xf32>
    %6 = arith.addf %3, %5 : vector<128x1024xf32>
    %cst_5 = arith.constant 0.000000e+00 : f32
    %7 = vector.broadcast %cst_5 : f32 to vector<128x1024xf32>
    %8 = arith.maximumf %6, %7 : vector<128x1024xf32>
    %c0_6 = arith.constant 0 : index
    %c0_7 = arith.constant 0 : index
    %9 = vector.load %arg3[%c0_6, %c0_7] : memref<128x32xf32, #tpu.memory_space<vmem>>, vector<128x32xf32>
    %10 = arith.truncf %9 : vector<128x32xf32> to vector<128x32xbf16>
    %c0_8 = arith.constant 0 : index
    %c0_9 = arith.constant 0 : index
    %11 = vector.load %arg6[%c0_8, %c0_9] : memref<32x1024xbf16, #tpu.memory_space<vmem>>, vector<32x1024xbf16>
    %cst_10 = arith.constant dense<0.000000e+00> : vector<128x1024xf32>
    %12 = tpu.matmul %10, %11, %cst_10 {dimension_numbers = #tpu.dot_dimension_numbers<[1], [0], [0], [1], [0, 0, 1, 1], [], []>} : vector<128x32xbf16>, vector<32x1024xbf16>, vector<128x1024xf32> -> vector<128x1024xf32>
    %13 = arith.mulf %8, %12 : vector<128x1024xf32>
    %14 = arith.truncf %13 : vector<128x1024xf32> to vector<128x1024xbf16>
    %c0_11 = arith.constant 0 : index
    %c0_12 = arith.constant 0 : index
    %15 = vector.load %arg7[%c0_11, %c0_12] : memref<1024x32xbf16, #tpu.memory_space<vmem>>, vector<1024x32xbf16>
    %cst_13 = arith.constant dense<0.000000e+00> : vector<128x32xf32>
    %16 = tpu.matmul %14, %15, %cst_13 {dimension_numbers = #tpu.dot_dimension_numbers<[1], [0], [0], [1], [0, 0, 1, 1], [], []>} : vector<128x1024xbf16>, vector<1024x32xbf16>, vector<128x32xf32> -> vector<128x32xf32>
    %c0_14 = arith.constant 0 : index
    %c0_15 = arith.constant 0 : index
    %17 = vector.load %arg1[%c0_14, %c0_15] : memref<128x4xf32, #tpu.memory_space<vmem>>, vector<128x4xf32>
    %18 = arith.truncf %17 : vector<128x4xf32> to vector<128x4xbf16>
    %c0_16 = arith.constant 0 : index
    %c0_17 = arith.constant 0 : index
    %19 = vector.load %arg8[%c0_16, %c0_17] : memref<4x32xbf16, #tpu.memory_space<vmem>>, vector<4x32xbf16>
    %cst_18 = arith.constant dense<0.000000e+00> : vector<128x32xf32>
    %20 = tpu.matmul %18, %19, %cst_18 {dimension_numbers = #tpu.dot_dimension_numbers<[1], [0], [0], [1], [0, 0, 1, 1], [], []>} : vector<128x4xbf16>, vector<4x32xbf16>, vector<128x32xf32> -> vector<128x32xf32>
    %21 = arith.truncf %16 : vector<128x32xf32> to vector<128x32xbf16>
    %c0_19 = arith.constant 0 : index
    %c0_20 = arith.constant 0 : index
    %22 = vector.load %arg9[%c0_19, %c0_20] : memref<32x32xbf16, #tpu.memory_space<vmem>>, vector<32x32xbf16>
    %cst_21 = arith.constant dense<0.000000e+00> : vector<128x32xf32>
    %23 = tpu.matmul %21, %22, %cst_21 {dimension_numbers = #tpu.dot_dimension_numbers<[1], [0], [0], [1], [0, 0, 1, 1], [], []>} : vector<128x32xbf16>, vector<32x32xbf16>, vector<128x32xf32> -> vector<128x32xf32>
    %24 = arith.addf %20, %23 : vector<128x32xf32>
    %c0_22 = arith.constant 0 : index
    %c0_23 = arith.constant 0 : index
    %25 = vector.load %arg10[%c0_22, %c0_23] : memref<1x32xf32, #tpu.memory_space<vmem>>, vector<1x32xf32>
    %26 = vector.broadcast %25 : vector<1x32xf32> to vector<128x32xf32>
    %27 = arith.addf %24, %26 : vector<128x32xf32>
    %cst_24 = arith.constant 0.000000e+00 : f32
    %28 = vector.broadcast %cst_24 : f32 to vector<128x32xf32>
    %29 = arith.maximumf %27, %28 : vector<128x32xf32>
    %30 = arith.truncf %29 : vector<128x32xf32> to vector<128x32xbf16>
    %c0_25 = arith.constant 0 : index
    %c0_26 = arith.constant 0 : index
    %31 = vector.load %arg11[%c0_25, %c0_26] : memref<32x2xbf16, #tpu.memory_space<vmem>>, vector<32x2xbf16>
    %cst_27 = arith.constant dense<0.000000e+00> : vector<128x2xf32>
    %32 = tpu.matmul %30, %31, %cst_27 {dimension_numbers = #tpu.dot_dimension_numbers<[1], [0], [0], [1], [0, 0, 1, 1], [], []>} : vector<128x32xbf16>, vector<32x2xbf16>, vector<128x2xf32> -> vector<128x2xf32>
    %c0_28 = arith.constant 0 : index
    %c0_29 = arith.constant 0 : index
    %33 = vector.load %arg12[%c0_28, %c0_29] : memref<1x2xf32, #tpu.memory_space<vmem>>, vector<1x2xf32>
    %34 = vector.broadcast %33 : vector<1x2xf32> to vector<128x2xf32>
    %35 = arith.addf %32, %34 : vector<128x2xf32>
    %36 = math.tanh %35 : vector<128x2xf32>
    %37 = tpu.transpose %36, [1, 0] : vector<128x2xf32> -> vector<2x128xf32>
    %c0_30 = arith.constant 0 : index
    %c0_31 = arith.constant 0 : index
    %38 = vector.load %arg13[%c0_30, %c0_31] : memref<2x128xf32, #tpu.memory_space<vmem>>, vector<2x128xf32>
    tpu.vector_store %arg13[%c0_30, %c0_31], %37 {strides = array<i32>} : memref<2x128xf32, #tpu.memory_space<vmem>>, vector<2x128xf32>,
    return
  }
  func.func @transform_0(%arg0: i32) -> (i32, i32) {
    %c0_i32 = arith.constant 0 : i32
    %c0_i32_0 = arith.constant 0 : i32
    return %arg0, %c0_i32 : i32, i32
  }
  func.func @transform_1(%arg0: i32) -> (i32, i32) {
    %c0_i32 = arith.constant 0 : i32
    %c0_i32_0 = arith.constant 0 : i32
    return %arg0, %c0_i32 : i32, i32
  }
  func.func @transform_2(%arg0: i32) -> (i32, i32) {
    %c0_i32 = arith.constant 0 : i32
    %c0_i32_0 = arith.constant 0 : i32
    return %arg0, %c0_i32 : i32, i32
  }
  func.func @transform_3(%arg0: i32) -> (i32, i32) {
    %c0_i32 = arith.constant 0 : i32
    %c0_i32_0 = arith.constant 0 : i32
    %c0_i32_1 = arith.constant 0 : i32
    return %c0_i32, %c0_i32_0 : i32, i32
  }
  func.func @transform_4(%arg0: i32) -> (i32, i32) {
    %c0_i32 = arith.constant 0 : i32
    %c0_i32_0 = arith.constant 0 : i32
    %c0_i32_1 = arith.constant 0 : i32
    return %c0_i32, %c0_i32_0 : i32, i32
  }
  func.func @transform_5(%arg0: i32) -> (i32, i32) {
    %c0_i32 = arith.constant 0 : i32
    %c0_i32_0 = arith.constant 0 : i32
    %c0_i32_1 = arith.constant 0 : i32
    return %c0_i32, %c0_i32_0 : i32, i32
  }
  func.func @transform_6(%arg0: i32) -> (i32, i32) {
    %c0_i32 = arith.constant 0 : i32
    %c0_i32_0 = arith.constant 0 : i32
    %c0_i32_1 = arith.constant 0 : i32
    return %c0_i32, %c0_i32_0 : i32, i32
  }
  func.func @transform_7(%arg0: i32) -> (i32, i32) {
    %c0_i32 = arith.constant 0 : i32
    %c0_i32_0 = arith.constant 0 : i32
    %c0_i32_1 = arith.constant 0 : i32
    return %c0_i32, %c0_i32_0 : i32, i32
  }
  func.func @transform_8(%arg0: i32) -> (i32, i32) {
    %c0_i32 = arith.constant 0 : i32
    %c0_i32_0 = arith.constant 0 : i32
    %c0_i32_1 = arith.constant 0 : i32
    return %c0_i32, %c0_i32_0 : i32, i32
  }
  func.func @transform_9(%arg0: i32) -> (i32, i32) {
    %c0_i32 = arith.constant 0 : i32
    %c0_i32_0 = arith.constant 0 : i32
    %c0_i32_1 = arith.constant 0 : i32
    return %c0_i32, %c0_i32_0 : i32, i32
  }
  func.func @transform_10(%arg0: i32) -> (i32, i32) {
    %c0_i32 = arith.constant 0 : i32
    %c0_i32_0 = arith.constant 0 : i32
    %c0_i32_1 = arith.constant 0 : i32
    return %c0_i32, %c0_i32_0 : i32, i32
  }
  func.func @transform_11(%arg0: i32) -> (i32, i32) {
    %c0_i32 = arith.constant 0 : i32
    %c0_i32_0 = arith.constant 0 : i32
    %c0_i32_1 = arith.constant 0 : i32
    return %c0_i32, %c0_i32_0 : i32, i32
  }
  func.func @transform_12(%arg0: i32) -> (i32, i32) {
    %c0_i32 = arith.constant 0 : i32
    %c0_i32_0 = arith.constant 0 : i32
    return %c0_i32, %arg0 : i32, i32
  }
}

</mosaic_0001>

<bundles_post_ra>
// kernel: _lambda_.1
= control target key start
LH: loop header
LB: loop body
LE: loop exit
PB: predicated region body
PF: predicated region fallthrough
CT: control target
= control target key end

     0   :  { %17 = vsyncpa [#allocation3], 0  ;;  %s6268_s0 = inlined_call_operand.vmem [shape: f32[256,4], index: 0, kind: input, shape index: {}]   ;;  %s6269_s1 = inlined_call_operand.vmem [shape: f32[256,128], index: 1, kind: input, shape index: {}]   ;;  %s6270_s2 = inlined_call_operand.vmem [shape: f32[256,32], index: 2, kind: input, shape index: {}]   ;;  %s6271_s3 = inlined_call_operand.vmem [shape: bf16[128,1024], index: 3, kind: input, shape index: {}]   ;;  %s6272_s4 = inlined_call_operand.vmem [shape: f32[1,1024], index: 4, kind: input, shape index: {}]   ;;  %s6273_s5 = inlined_call_operand.vmem [shape: bf16[32,1024], index: 5, kind: input, shape index: {}]   ;;  %s6274_s6 = inlined_call_operand.vmem [shape: bf16[1024,32], index: 6, kind: input, shape index: {}]   ;;  %s6275_s7 = inlined_call_operand.vmem [shape: bf16[4,32], index: 7, kind: input, shape index: {}]   ;;  %s6276_s8 = inlined_call_operand.vmem [shape: bf16[32,32], index: 8, kind: input, shape index: {}]   ;;  %s6277_s9 = inlined_call_operand.vmem [shape: f32[1,32], index: 9, kind: input, shape index: {}]   ;;  %s6278_s10 = inlined_call_operand.vmem [shape: bf16[32,2], index: 10, kind: input, shape index: {}]   ;;  %s6279_s11 = inlined_call_operand.vmem [shape: f32[1,2], index: 11, kind: input, shape index: {}]   ;;  %s6280_s12 = inlined_call_operand.hbm [shape: f32[2,256], index: 12, kind: output, shape index: {}]  }
   0x1   :  { %19 = vsyncpa [#allocation3 + $0x1], 0  ;;  %s4667_s21 = smov 0   ;;  %s4669_s22 = smov 0  }
   0x2   :  { %s4671_s23 = smov 0   ;;  %s4673_s24 = smov 0  }
   0x3 LB: > { %6284 = sst [smem:[#allocation5_spill]] %s4594_s23  ;;  %s4688_s25 = sadd.s32 4294967295, %s4598_s24   ;;  %s4598_s24 = sphi %s4673_s24, %s6463_s24   ;;  %s4594_s23 = sphi %s4671_s23, %s6465_s23   ;;  %s4590_s22 = sphi %s4669_s22, %s6467_s22   ;;  %s4586_s21 = sphi %s4667_s21, %s6466_s21  }
   0x4   : > { %s3811_s26 = sadd.s32 4294967294, %s4598_s24   ;;  %s4692_s27 = sadd.s32 1, %s4598_s24  }
   0x5   : > { %6285 = sst [smem:[#allocation6_spill]] %s4692_s27  ;;  %s299_s28 = sadd.s32 1, %s4594_s23 }
   0x6   : > { %s296_s29 = ssub.s32 %s4598_s24, %s4692_s27  ;;  %p309_p0 = scmp.ne.s32.totalorder %s4594_s23, %s4590_s22 }
   0x7   : > { %p297_p1 = scmp.eq.s32.totalorder %s296_s29, 0  ;;  %p310_p2 = scmp.eq.s32.totalorder %s4688_s25, 1 }
   0x8   : > { %p315_p3 = scmp.ne.s32.totalorder %s4590_s22, %s4586_s21  ;;  %p316_p4 = scmp.eq.s32.totalorder %s3811_s26, 1 }
   0x9   : > { %s4703_s30 = scalar_select %p297_p1, %s4594_s23, %s299_s28  }
   0xa   : > { %p4705_p5 = por %p310_p2, %p309_p0  ;;  %p4709_p6 = por %p316_p4, %p315_p3 }
   0xb   : > { %6286 = sst [smem:[#allocation7_spill]] %s4703_s30  ;;  %p3814_p7 = scmp.ge.s32.totalorder %s4598_s24, 1 }
   0xc   : > { %p388_p8 = scmp.lt.s32.totalorder %s4598_s24, 3 }
   0xe   : > { %p389_p9 = pnand %p3814_p7, %p388_p8 }
  0x10   : > { %392 = sbr.rel (%p389_p9) target bundleno = 1364 (0x554), region = 68 }
  0x17   : > { %v483_v0 = vld [vmem:[%s6271_s3] sm:$0xff]  ;;  %v484_v2 = vld [vmem:[%s6271_s3 + $0x8] sm:$0xff]  ;;  %v4600_v8 = vmov 0   ;;  %s3816_s17 = sshll.u32 %s4688_s25, 4  ;;  %vm1609_vm0 = vcmask 261120   ;;  %vm3373_vm1 = vcmask 1041408  }
  0x18   : > { %v487_v1 = vld [vmem:[%s6271_s3 + $0x20] sm:$0xff]  ;;  %v488_v4 = vld [vmem:[%s6271_s3 + $0x28] sm:$0xff]  ;;  %941 = vmatprep.mubr.bf16.mxu0 %v4600_v8  ;;  %1054 = vmatprep.mubr.bf16.mxu1 %v4600_v8  ;;  %p441_p10 = scmp.lt.s32.totalorder %s3816_s17, 31  ;;  %vm3348_vm2 = vcmask 31744   ;;  %s437_s28 = sand.u32 1, %s4590_s22  }
  0x19   : > { %v3823_v3 = vcombine.high %v483_v0, %v487_v1  ;;  %v3822_v5 = vcombine.low %v483_v0, %v487_v1  ;;  %v491_v6 = vld [vmem:[%s6271_s3 + $0x40] sm:$0xff]  ;;  %v3825_v9 = vcombine.high %v484_v2, %v488_v4  ;;  %v3824_v10 = vcombine.low %v484_v2, %v488_v4  ;;  %v492_v12 = vld [vmem:[%s6271_s3 + $0x48] sm:$0xff]  ;;  %v485_v0 = vld [vmem:[%s6271_s3 + $0x10] sm:$0xff]  ;;  %s3815_s15 = sshll.u32 %s437_s28, 1  ;;  %s4029_s19 = sshll.u32 %s4688_s25, 5 }
  0x1a   : > { %v495_v7 = vld [vmem:[%s6271_s3 + $0x60] sm:$0xff]  ;;  %v496_v13 = vld [vmem:[%s6271_s3 + $0x68] sm:$0xff]  ;;  %s6469_s17 = smov (!%p441_p10, %s3816_s17), 31  ;;  %v489_v1 = vld [vmem:[%s6271_s3 + $0x30] sm:$0xff]  ;;  %s4601_s26 = smov [#allocation2]  }
  0x1b   : > { %v3831_v11 = vcombine.high %v491_v6, %v495_v7  ;;  %v499_v14 = vld [vmem:[%s6271_s3 + $0x80] sm:$0xff]  ;;  %909 = vmatprep.subr.bf16.mxu0 %v3823_v3  ;;  %v3833_v15 = vcombine.high %v492_v12, %v496_v13  ;;  %v500_v17 = vld [vmem:[%s6271_s3 + $0x88] sm:$0xff]  ;;  %1022 = vmatprep.subr.bf16.mxu1 %v3825_v9  ;;  %v3830_v19 = vcombine.low %v491_v6, %v495_v7  ;;  %s4802_s29 = sshll.u32 %s6469_s17, 3  ;;  %v486_v3 = vld [vmem:[%s6271_s3 + $0x18] sm:$0xff]  ;;  %s4540_s25 = sshll.u32 %s4601_s26, 4  ;;  %s4541_s25 = int_to_ptr.vmem [resolvable:$false] %s4540_s25 }
  0x1c   : > { %v503_v16 = vld [vmem:[%s6271_s3 + $0xa0] sm:$0xff]  ;;  %v504_v18 = vld [vmem:[%s6271_s3 + $0xa8] sm:$0xff]  ;;  %910 = vmatpush1.bf16.msra.mxu0 %v3822_v5  ;;  %1023 = vmatpush1.bf16.msra.mxu1 %v3824_v10  ;;  %v3832_v20 = vcombine.low %v492_v12, %v496_v13  ;;  %s4820_s27 = scalar_lea.vmem %s6269_s1, %s4802_s29  ;;  %v490_v4 = vld [vmem:[%s6271_s3 + $0x38] sm:$0xff]  ;;  %v3827_v10 = vcombine.high %v485_v0, %v489_v1  ;;  %s5034_s16 = scalar_lea.vmem %s6270_s2, %s4802_s29 }
  0x1d   : > { %911 = vmatprep.subr.bf16.mxu0 %v3831_v11  ;;  %v3839_v21 = vcombine.high %v499_v14, %v503_v16  ;;  %1024 = vmatprep.subr.bf16.mxu1 %v3833_v15  ;;  %v3841_v22 = vcombine.high %v500_v17, %v504_v18  ;;  %v507_v23 = vld [vmem:[%s6271_s3 + $0xc0] sm:$0xff]  ;;  %v508_v25 = vld [vmem:[%s6271_s3 + $0xc8] sm:$0xff]  ;;  %v3838_v27 = vcombine.low %v499_v14, %v503_v16  ;;  %v494_v7 = vld [vmem:[%s6271_s3 + $0x58] sm:$0xff]  ;;  %s6161_s30 = scalar_lea.vmem %s6268_s0, %s4802_s29  ;;  %s3715_s29 = scalar_lea.sflag [#allocation3], %s437_s28 }
  0x1e   : > { %v511_v24 = vld [vmem:[%s6271_s3 + $0xe0] sm:$0xff]  ;;  %v512_v26 = vld [vmem:[%s6271_s3 + $0xe8] sm:$0xff]  ;;  %v3840_v28 = vcombine.low %v500_v17, %v504_v18  ;;  %v498_v9 = vld [vmem:[%s6271_s3 + $0x78] sm:$0xff]  ;;  %v3829_v11 = vcombine.high %v486_v3, %v490_v4  ;;  %v3828_v15 = vcombine.low %v486_v3, %v490_v4 }
  0x1f   : > { %v3847_v29 = vcombine.high %v507_v23, %v511_v24  ;;  %v3849_v30 = vcombine.high %v508_v25, %v512_v26  ;;  %v515_v31 = vld [vmem:[%s6271_s3 + $0x100] sm:$0xff]  ;;  %v516_v33 = vld [vmem:[%s6271_s3 + $0x108] sm:$0xff]  ;;  %v3846_v35 = vcombine.low %v507_v23, %v511_v24  ;;  %v3848_v36 = vcombine.low %v508_v25, %v512_v26  ;;  %v493_v12 = vld [vmem:[%s6271_s3 + $0x50] sm:$0xff] }
  0x20   : > { %912 = vmatpush1.bf16.msra.mxu0 %v3830_v19  ;;  %1025 = vmatpush1.bf16.msra.mxu1 %v3832_v20  ;;  %v519_v32 = vld [vmem:[%s6271_s3 + $0x120] sm:$0xff]  ;;  %v520_v34 = vld [vmem:[%s6271_s3 + $0x128] sm:$0xff]  ;;  %v497_v13 = vld [vmem:[%s6271_s3 + $0x70] sm:$0xff]  ;;  %v3837_v20 = vcombine.high %v494_v7, %v498_v9  ;;  %v3836_v25 = vcombine.low %v494_v7, %v498_v9 }
  0x21   : > { %913 = vmatprep.subr.bf16.mxu0 %v3839_v21  ;;  %1026 = vmatprep.subr.bf16.mxu1 %v3841_v22  ;;  %v3855_v37 = vcombine.high %v515_v31, %v519_v32  ;;  %v3857_v38 = vcombine.high %v516_v33, %v520_v34  ;;  %v523_v39 = vld [vmem:[%s6271_s3 + $0x140] sm:$0xff]  ;;  %v524_v41 = vld [vmem:[%s6271_s3 + $0x148] sm:$0xff]  ;;  %v3854_v43 = vcombine.low %v515_v31, %v519_v32  ;;  %v502_v16 = vld [vmem:[%s6271_s3 + $0x98] sm:$0xff] }
  0x22   : > { %v527_v40 = vld [vmem:[%s6271_s3 + $0x160] sm:$0xff]  ;;  %v528_v42 = vld [vmem:[%s6271_s3 + $0x168] sm:$0xff]  ;;  %v3856_v44 = vcombine.low %v516_v33, %v520_v34  ;;  %v506_v17 = vld [vmem:[%s6271_s3 + $0xb8] sm:$0xff]  ;;  %v3826_v21 = vcombine.low %v485_v0, %v489_v1  ;;  %v3835_v22 = vcombine.high %v493_v12, %v497_v13 }
  0x23   : > { %v3863_v45 = vcombine.high %v523_v39, %v527_v40  ;;  %v3865_v46 = vcombine.high %v524_v41, %v528_v42  ;;  %v531_v47 = vld [vmem:[%s6271_s3 + $0x180] sm:$0xff]  ;;  %v532_v49 = vld [vmem:[%s6271_s3 + $0x188] sm:$0xff]  ;;  %v3862_v51 = vcombine.low %v523_v39, %v527_v40  ;;  %v3864_v52 = vcombine.low %v524_v41, %v528_v42  ;;  %v461_v18 = vld [vmem:[%s4820_s27 + $0x10] sm:$0xff] }
  0x24   : > { %914 = vmatpush1.bf16.msra.mxu0 %v3838_v27  ;;  %1027 = vmatpush1.bf16.msra.mxu1 %v3840_v28  ;;  %v535_v48 = vld [vmem:[%s6271_s3 + $0x1a0] sm:$0xff]  ;;  %v536_v50 = vld [vmem:[%s6271_s3 + $0x1a8] sm:$0xff]  ;;  %v462_v19 = vld [vmem:[%s4820_s27 + $0x18] sm:$0xff]  ;;  %v3845_v28 = vcombine.high %v502_v16, %v506_v17  ;;  %v3844_v34 = vcombine.low %v502_v16, %v506_v17 }
  0x25   : > { %915 = vmatprep.subr.bf16.mxu0 %v3847_v29  ;;  %1028 = vmatprep.subr.bf16.mxu1 %v3849_v30  ;;  %v3871_v53 = vcombine.high %v531_v47, %v535_v48  ;;  %v3873_v54 = vcombine.high %v532_v49, %v536_v50  ;;  %v539_v55 = vld [vmem:[%s6271_s3 + $0x1c0] sm:$0xff]  ;;  %v540_v57 = vld [vmem:[%s6271_s3 + $0x1c8] sm:$0xff]  ;;  %v3870_v59 = vcombine.low %v531_v47, %v535_v48  ;;  %v501_v23 = vld [vmem:[%s6271_s3 + $0x90] sm:$0xff] }
  0x26   : > { %v543_v56 = vld [vmem:[%s6271_s3 + $0x1e0] sm:$0xff]  ;;  %v544_v58 = vld [vmem:[%s6271_s3 + $0x1e8] sm:$0xff]  ;;  %v3872_v60 = vcombine.low %v532_v49, %v536_v50  ;;  %v505_v24 = vld [vmem:[%s6271_s3 + $0xb0] sm:$0xff]  ;;  %v3834_v29 = vcombine.low %v493_v12, %v497_v13  ;;  %v4880_v32 = vpack.c.bf16 %v462_v19, %v461_v18 }
  0x27   : > { %v3879_v61 = vcombine.high %v539_v55, %v543_v56  ;;  %v3881_v62 = vcombine.high %v540_v57, %v544_v58  ;;  %v459_v63 = vld [vmem:[%s4820_s27] sm:$0xff]  ;;  %v460_v2 = vld [vmem:[%s4820_s27 + $0x8] sm:$0xff]  ;;  %v3878_v5 = vcombine.low %v539_v55, %v543_v56  ;;  %v3880_v6 = vcombine.low %v540_v57, %v544_v58  ;;  %v510_v26 = vld [vmem:[%s6271_s3 + $0xd8] sm:$0xff] }
  0x28   : > { %916 = vmatpush1.bf16.msra.mxu0 %v3846_v35  ;;  %1029 = vmatpush1.bf16.msra.mxu1 %v3848_v36  ;;  %v4848_v14 = vpack.c.bf16 %v460_v2, %v459_v63  ;;  %v514_v27 = vld [vmem:[%s6271_s3 + $0xf8] sm:$0xff]  ;;  %v509_v30 = vld [vmem:[%s6271_s3 + $0xd0] sm:$0xff]  ;;  %v3843_v33 = vcombine.high %v501_v23, %v505_v24  ;;  %v3842_v40 = vcombine.low %v501_v23, %v505_v24  ;;  %v467_v16 = vld [vmem:[%s4820_s27 + $0x40] sm:$0xff] }
  0x29   : > { %917 = vmatprep.subr.bf16.mxu0 %v3855_v37  ;;  %1030 = vmatprep.subr.bf16.mxu1 %v3857_v38  ;;  %v513_v31 = vld [vmem:[%s6271_s3 + $0xf0] sm:$0xff]  ;;  %v518_v35 = vld [vmem:[%s6271_s3 + $0x118] sm:$0xff]  ;;  %v463_v37 = vld [vmem:[%s4820_s27 + $0x20] sm:$0xff]  ;;  %v3853_v39 = vcombine.high %v510_v26, %v514_v27 }
  0x2a   : > { %v522_v36 = vld [vmem:[%s6271_s3 + $0x138] sm:$0xff]  ;;  %v464_v38 = vld [vmem:[%s4820_s27 + $0x28] sm:$0xff]  ;;  %v3851_v41 = vcombine.high %v509_v30, %v513_v31  ;;  %v517_v42 = vld [vmem:[%s6271_s3 + $0x110] sm:$0xff]  ;;  %v3850_v48 = vcombine.low %v509_v30, %v513_v31 }
  0x2b   : > { %v3861_v47 = vcombine.high %v518_v35, %v522_v36  ;;  %v525_v49 = vld [vmem:[%s6271_s3 + $0x150] sm:$0xff]  ;;  %v538_v55 = vld [vmem:[%s6271_s3 + $0x1b8] sm:$0xff]  ;;  %v468_v17 = vld [vmem:[%s4820_s27 + $0x48] sm:$0xff] }
  0x2c   : > { %918 = vmatpush1.bf16.msra.mxu0 %v3854_v43  ;;  %1031 = vmatpush1.bf16.msra.mxu1 %v3856_v44  ;;  %v521_v43 = vld [vmem:[%s6271_s3 + $0x130] sm:$0xff]  ;;  %v3852_v44 = vcombine.low %v510_v26, %v514_v27  ;;  %v466_v57 = vld [vmem:[%s4820_s27 + $0x38] sm:$0xff]  ;;  %v472_v26 = vld [vmem:[%s4820_s27 + $0x68] sm:$0xff] }
  0x2d   : > { %919 = vmatprep.subr.bf16.mxu0 %v3863_v45  ;;  %1032 = vmatprep.subr.bf16.mxu1 %v3865_v46  ;;  %v526_v45 = vld [vmem:[%s6271_s3 + $0x158] sm:$0xff]  ;;  %v529_v50 = vld [vmem:[%s6271_s3 + $0x170] sm:$0xff]  ;;  %v1521_v31 = vld [vmem:[%s6273_s5 + $0x40] sm:$0xff] }
  0x2e   : > { %v530_v46 = vld [vmem:[%s6271_s3 + $0x178] sm:$0xff]  ;;  %v465_v56 = vld [vmem:[%s4820_s27 + $0x30] sm:$0xff]  ;;  %v3866_v3 = vcombine.low %v525_v49, %v529_v50 }
  0x2f   : > { %v3869_v58 = vcombine.high %v526_v45, %v530_v46  ;;  %v3868_v63 = vcombine.low %v526_v45, %v530_v46  ;;  %v542_v0 = vld [vmem:[%s6271_s3 + $0x1d8] sm:$0xff]  ;;  %v541_v4 = vld [vmem:[%s6271_s3 + $0x1d0] sm:$0xff]  ;;  %v1522_v46 = vld [vmem:[%s6273_s5 + $0x48] sm:$0xff] }
  0x30   : > { %920 = vmatpush1.bf16.msra.mxu0 %v3862_v51  ;;  %1033 = vmatpush1.bf16.msra.mxu1 %v3864_v52  ;;  %v4912_v51 = vpack.c.bf16 %v464_v38, %v463_v37  ;;  %v3859_v52 = vcombine.high %v517_v42, %v521_v43  ;;  %v546_v1 = vld [vmem:[%s6271_s3 + $0x1f8] sm:$0xff]  ;;  %v4991_v37 = vld [vmem:[%s6273_s5 + $0x28] sm:$0xff]  ;;  %v4998_v38 = vld [vmem:[%s6273_s5 + $0x10] sm:$0xff] }
  0x31   : > { %921 = vmatprep.subr.bf16.mxu0 %v3871_v53  ;;  %1034 = vmatprep.subr.bf16.mxu1 %v3873_v54  ;;  %v3860_v53 = vcombine.low %v518_v35, %v522_v36  ;;  %v534_v54 = vld [vmem:[%s6271_s3 + $0x198] sm:$0xff]  ;;  %v3885_v13 = vcombine.high %v542_v0, %v546_v1  ;;  %v3884_v18 = vcombine.low %v542_v0, %v546_v1  ;;  %v4986_v36 = vld [vmem:[%s6273_s5 + $0x8] sm:$0xff] }
  0x32   : > { %v3877_v2 = vcombine.high %v534_v54, %v538_v55  ;;  %v3876_v9 = vcombine.low %v534_v54, %v538_v55  ;;  %v470_v23 = vld [vmem:[%s4820_s27 + $0x58] sm:$0xff] }
  0x33   : > { %v1516_v54 = vld [vmem:[%s6273_s5 + $0x18] sm:$0xff] }
  0x34   : > { %922 = vmatpush1.bf16.msra.mxu0 %v3870_v59  ;;  %1035 = vmatpush1.bf16.msra.mxu1 %v3872_v60  ;;  %v3858_v59 = vcombine.low %v517_v42, %v521_v43  ;;  %v3867_v60 = vcombine.high %v525_v49, %v529_v50  ;;  %v1490_v42 = vld [vmem:[%s5034_s16 + $0x8] sm:$0xff]  ;;  %v1501_v43 = vld [vmem:[%s5034_s16 + $0x60] sm:$0xff]  ;;  %v1523_v49 = vld [vmem:[%s6273_s5 + $0x50] sm:$0xff] }
  0x35   : > { %923 = vmatprep.subr.bf16.mxu0 %v3879_v61  ;;  %1036 = vmatprep.subr.bf16.mxu1 %v3881_v62  ;;  %v533_v61 = vld [vmem:[%s6271_s3 + $0x190] sm:$0xff]  ;;  %v1520_v55 = vld [vmem:[%s6273_s5 + $0x38] sm:$0xff] }
  0x36   : > { %v537_v62 = vld [vmem:[%s6271_s3 + $0x1b0] sm:$0xff] }
  0x37   : > { %v3875_v7 = vcombine.high %v533_v61, %v537_v62  ;;  %v3874_v12 = vcombine.low %v533_v61, %v537_v62  ;;  %v1527_v50 = vld [vmem:[%s6273_s5 + $0x70] sm:$0xff]  ;;  %v3893_v62 = vcombine.high %v1516_v54, %v1520_v55 }
  0x38   : > { %924 = vmatpush1.bf16.msra.mxu0 %v3878_v5  ;;  %1037 = vmatpush1.bf16.msra.mxu1 %v3880_v6  ;;  %v545_v5 = vld [vmem:[%s6271_s3 + $0x1f0] sm:$0xff]  ;;  %v4944_v6 = vpack.c.bf16 %v466_v57, %v465_v56  ;;  %v3899_v56 = vcombine.high %v1523_v49, %v1527_v50 }
  0x39   : > { %1135 = vmatprep.subr.bf16.mxu0 %v3827_v10  ;;  %1248 = vmatprep.subr.bf16.mxu1 %v3829_v11  ;;  %v1513_v10 = vld [vmem:[%s6273_s5] sm:$0xff]  ;;  %v3882_v19 = vcombine.low %v541_v4, %v545_v5  ;;  %v1491_v57 = vld [vmem:[%s5034_s16 + $0x10] sm:$0xff] }
  0x3a   : > { %v1517_v11 = vld [vmem:[%s6273_s5 + $0x20] sm:$0xff] }
  0x3b   : > { %942 = vmatmul.mubr.bf16.vlgmr.msra.gmra.mrb[0].mxu0 %v4848_v14  ;;  %1055 = vmatmul.mubr.bf16.vlgmr.msra.gmra.mrb[0].mxu1 %v4848_v14 }
  0x3c   : > { %951 = vmatprep.mubr.bf16.mxu0 %v4600_v8  ;;  %1249 = vmatpush1.bf16.msra.mxu1 %v3828_v15  ;;  %v3883_v15 = vcombine.high %v541_v4, %v545_v5  ;;  %v1524_v5 = vld [vmem:[%s6273_s5 + $0x58] sm:$0xff] }
  0x3d   : > { %1064 = vmatprep.mubr.bf16.mxu1 %v4600_v8  ;;  %1250 = vmatprep.subr.bf16.mxu1 %v3837_v20  ;;  %v3887_v20 = vcombine.high %v1513_v10, %v1517_v11 }
  0x3e   : > { %1136 = vmatpush1.bf16.msra.mxu0 %v3826_v21  ;;  %v4958_v21 = vpack.c.bf16 %v468_v17, %v467_v16  ;;  %v1498_v16 = vld [vmem:[%s5034_s16 + $0x48] sm:$0xff] }
  0x3f   : > { %1137 = vmatprep.subr.bf16.mxu0 %v3835_v22  ;;  %v469_v22 = vld [vmem:[%s4820_s27 + $0x50] sm:$0xff] }
  0x40   : > { %1251 = vmatpush1.bf16.msra.mxu1 %v3836_v25  ;;  %v480_v24 = vpack.c.bf16 %v470_v23, %v469_v22  ;;  %v471_v25 = vld [vmem:[%s4820_s27 + $0x60] sm:$0xff] }
  0x41   : > { %1252 = vmatprep.subr.bf16.mxu1 %v3845_v28  ;;  %v481_v27 = vpack.c.bf16 %v472_v26, %v471_v25  ;;  %v473_v28 = vld [vmem:[%s4820_s27 + $0x70] sm:$0xff]  ;;  %v4437_v22 = vld [vmem:[%s6274_s6] sm:$0xff]   ;;  %v4441_v25 = vld [vmem:[%s6274_s6 + $0x8] sm:$0xff]  }
  0x42   : > { %1138 = vmatpush1.bf16.msra.mxu0 %v3834_v29  ;;  %v474_v29 = vld [vmem:[%s4820_s27 + $0x78] sm:$0xff]  ;;  %v4438_v23 = vld [vmem:[%s6274_s6 + $0xc0] sm:$0xff]   ;;  %v4444_v26 = vld [vmem:[%s6274_s6 + $0x50] sm:$0xff]   ;;  %s439_s27 = scalar_lea.vmem [#allocation2], %s3815_s15 }
  0x43   : > { %952 = vmatmul.mubr.bf16.gmra.mrb[4].mxu0 %v4880_v32  ;;  %1139 = vmatprep.subr.bf16.mxu0 %v3843_v33  ;;  %v482_v30 = vpack.c.bf16 %v474_v29, %v473_v28  ;;  %v1525_v33 = vld [vmem:[%s6273_s5 + $0x60] sm:$0xff]  ;;  %v4448_v28 = vld [vmem:[%s6274_s6 + $0x58] sm:$0xff]   ;;  %s3728_s18 = sshll.u32 %s439_s27, 4  ;;  %s6223_s18 = int_to_ptr.vmem [resolvable:$true] %s3728_s18 }
  0x44   : > { %1065 = vmatmul.mubr.bf16.gmra.mrb[4].mxu1 %v4880_v32  ;;  %961 = vmatprep.mubr.bf16.mxu0 %v4600_v8  ;;  %v3895_v35 = vcombine.high %v1521_v31, %v1525_v33  ;;  %v4449_v29 = vld [vmem:[%s6274_s6 + $0x18] sm:$0xff]   ;;  %s4536_s17 = scalar_lea.vmem %s6223_s18, 32  ;;  %p4543_p0 = scmp.lt.s32.totalorder %s6223_s18, %s4541_s25 }
  0x45   : > { %1074 = vmatprep.mubr.bf16.mxu1 %v4600_v8  ;;  %1253 = vmatpush1.bf16.msra.mxu1 %v3844_v34  ;;  %v3886_v34 = vcombine.low %v1513_v10, %v1517_v11  ;;  %v1495_v10 = vld [vmem:[%s5034_s16 + $0x30] sm:$0xff]  ;;  %v1496_v11 = vld [vmem:[%s5034_s16 + $0x38] sm:$0xff]  ;;  %p4537_p11 = scmp.ne.s32.totalorder %s6223_s18, %s4536_s17 }
  0x46   : > { %1254 = vmatprep.subr.bf16.mxu1 %v3853_v39  ;;  %1140 = vmatpush1.bf16.msra.mxu0 %v3842_v40  ;;  %v5003_v39 = vld [vmem:[%s6273_s5 + $0x30] sm:$0xff]  ;;  %v3894_v40 = vcombine.low %v1521_v31, %v1525_v33  ;;  %v4453_v31 = vld [vmem:[%s6274_s6 + $0x20] sm:$0xff]  }
  0x47   : > { %1141 = vmatprep.subr.bf16.mxu0 %v3851_v41  ;;  %v3891_v41 = vcombine.high %v4998_v38, %v5003_v39  ;;  %v4439_v33 = vld [vmem:[%s6274_s6 + $0x80] sm:$0xff]   ;;  %p4538_p12 = pnand %p4537_p11, %p4705_p5 }
  0x49   : > { %1255 = vmatpush1.bf16.msra.mxu1 %v3852_v44  ;;  %v1502_v44 = vld [vmem:[%s5034_s16 + $0x68] sm:$0xff]  ;;  %p4539_p13 = pneg %p4538_p12 }
  0x4a   : > { %1256 = vmatprep.subr.bf16.mxu1 %v3861_v47  ;;  %1142 = vmatpush1.bf16.msra.mxu0 %v3850_v48  ;;  %v1526_v47 = vld [vmem:[%s6273_s5 + $0x68] sm:$0xff]  ;;  %v5050_v48 = vpack.c.bf16 %v1502_v44, %v1501_v43 }
  0x4b   : > { %962 = vmatmul.mubr.bf16.gmra.mrb[8].mxu0 %v4912_v51  ;;  %1143 = vmatprep.subr.bf16.mxu0 %v3859_v52  ;;  %v3897_v52 = vcombine.high %v1522_v46, %v1526_v47  ;;  %v3896_v61 = vcombine.low %v1522_v46, %v1526_v47  ;;  %v4450_v47 = vld [vmem:[%s6274_s6 + $0xd8] sm:$0xff]  }
  0x4c   : > { %1075 = vmatmul.mubr.bf16.gmra.mrb[8].mxu1 %v4912_v51  ;;  %971 = vmatprep.mubr.bf16.mxu0 %v4600_v8 }
  0x4d   : > { %1084 = vmatprep.mubr.bf16.mxu1 %v4600_v8  ;;  %1257 = vmatpush1.bf16.msra.mxu1 %v3860_v53  ;;  %v3890_v53 = vcombine.low %v4998_v38, %v5003_v39  ;;  %v4446_v39 = vld [vmem:[%s6274_s6 + $0xd0] sm:$0xff]  }
  0x4e   : > { %1258 = vmatprep.subr.bf16.mxu1 %v3869_v58  ;;  %1144 = vmatpush1.bf16.msra.mxu0 %v3858_v59  ;;  %v1492_v58 = vld [vmem:[%s5034_s16 + $0x18] sm:$0xff]  ;;  %v1503_v59 = vld [vmem:[%s5034_s16 + $0x70] sm:$0xff] }
  0x4f   : > { %1145 = vmatprep.subr.bf16.mxu0 %v3867_v60  ;;  %v1504_v60 = vld [vmem:[%s5034_s16 + $0x78] sm:$0xff]  ;;  %v5078_v0 = vpack.c.bf16 %v1492_v58, %v1491_v57 }
  0x50   : > { %v5080_v1 = vpack.c.bf16 %v1504_v60, %v1503_v59 }
  0x51   : > { %1259 = vmatpush1.bf16.msra.mxu1 %v3868_v63  ;;  %v3898_v63 = vcombine.low %v1523_v49, %v1527_v50  ;;  %v4460_v49 = vld [vmem:[%s6274_s6 + $0x30] sm:$0xff]   ;;  %v4462_v50 = vld [vmem:[%s6274_s6 + $0x78] sm:$0xff]  }
  0x52   : > { %1260 = vmatprep.subr.bf16.mxu1 %v3877_v2  ;;  %1146 = vmatpush1.bf16.msra.mxu0 %v3866_v3  ;;  %v1493_v2 = vld [vmem:[%s5034_s16 + $0x20] sm:$0xff]  ;;  %v1494_v3 = vld [vmem:[%s5034_s16 + $0x28] sm:$0xff] }
  0x53   : > { %972 = vmatmul.mubr.bf16.gmra.mrb[12].mxu0 %v4944_v6  ;;  %1147 = vmatprep.subr.bf16.mxu0 %v3875_v7  ;;  %v5090_v4 = vpack.c.bf16 %v1494_v3, %v1493_v2  ;;  %v3892_v7 = vcombine.low %v1516_v54, %v1520_v55  ;;  %v4463_v54 = vld [vmem:[%s6274_s6 + $0x38] sm:$0xff]   ;;  %v4464_v3 = vld [vmem:[%s6274_s6 + $0xf0] sm:$0xff]  }
  0x54   : > { %1085 = vmatmul.mubr.bf16.gmra.mrb[12].mxu1 %v4944_v6  ;;  %981 = vmatprep.mubr.bf16.mxu0 %v4600_v8 }
  0x55   : > { %1094 = vmatprep.mubr.bf16.mxu1 %v4600_v8  ;;  %1261 = vmatpush1.bf16.msra.mxu1 %v3876_v9 }
  0x56   : > { %1262 = vmatprep.subr.bf16.mxu1 %v3885_v13  ;;  %1148 = vmatpush1.bf16.msra.mxu0 %v3874_v12  ;;  %v5106_v13 = vpack.c.bf16 %v1496_v11, %v1495_v10  ;;  %v4465_v11 = vld [vmem:[%s6274_s6 + $0xb0] sm:$0xff]  }
  0x57   : > { %1149 = vmatprep.subr.bf16.mxu0 %v3883_v15  ;;  %v1497_v15 = vld [vmem:[%s5034_s16 + $0x40] sm:$0xff] }
  0x58   : > { %v5116_v17 = vpack.c.bf16 %v1498_v16, %v1497_v15  ;;  %v4466_v15 = vld [vmem:[%s6274_s6 + $0xf8] sm:$0xff]  }
  0x59   : > { %1263 = vmatpush1.bf16.msra.mxu1 %v3884_v18  ;;  %v1499_v18 = vld [vmem:[%s5034_s16 + $0x50] sm:$0xff]  ;;  %v4467_v16 = vld [vmem:[%s6274_s6 + $0xb8] sm:$0xff]  }
  0x5a   : > { %1150 = vmatpush1.bf16.msra.mxu0 %v3882_v19  ;;  %4375 = vmatprep.subr.bf16.mxu1 %v3887_v20  ;;  %v1500_v19 = vld [vmem:[%s5034_s16 + $0x58] sm:$0xff] }
  0x5b   : > { %982 = vmatmul.mubr.bf16.gmra.mrb[16].mxu0 %v4958_v21  ;;  %1634 = vmatprep.subr.bf16.mxu0 %v3887_v20  ;;  %v5126_v20 = vpack.c.bf16 %v1500_v19, %v1499_v18  ;;  %v4468_v18 = vld [vmem:[%s6274_s6 + $0x140] sm:$0xff]  }
  0x5c   : > { %1095 = vmatmul.mubr.bf16.gmra.mrb[16].mxu1 %v4958_v21  ;;  %991 = vmatprep.mubr.bf16.mxu0 %v4600_v8 }
  0x5d   : > { %1104 = vmatprep.mubr.bf16.mxu1 %v4600_v8 }
  0x63   : > { %992 = vmatmul.mubr.bf16.gmra.mrb[20].mxu0 %v480_v24 }
  0x64   : > { %1105 = vmatmul.mubr.bf16.gmra.mrb[20].mxu1 %v480_v24  ;;  %1001 = vmatprep.mubr.bf16.mxu0 %v4600_v8 }
  0x65   : > { %1114 = vmatprep.mubr.bf16.mxu1 %v4600_v8 }
  0x6b   : > { %1002 = vmatmul.mubr.bf16.gmra.mrb[24].mxu0 %v481_v27 }
  0x6c   : > { %1115 = vmatmul.mubr.bf16.gmra.mrb[24].mxu1 %v481_v27  ;;  %1011 = vmatprep.mubr.bf16.mxu0 %v4600_v8 }
  0x6d   : > { %1124 = vmatprep.mubr.bf16.mxu1 %v4600_v8 }
  0x73   : > { %1012 = vmatmul.mubr.bf16.gmra.mrb[28].mxu0 %v482_v30 }
  0x74   : > { %1125 = vmatmul.mubr.bf16.gmra.mrb[28].mxu1 %v482_v30  ;;  %1167 = vmatprep.mubr.bf16.mxu0 %v4600_v8 }
  0x75   : > { %1280 = vmatprep.mubr.bf16.mxu1 %v4600_v8 }
  0x7b   : > { %1168 = vmatmul.mubr.bf16.vlgmr.msra.gmra.mrb[32].mxu0 %v4848_v14 }
  0x7c   : > { %1281 = vmatmul.mubr.bf16.vlgmr.msra.gmra.mrb[32].mxu1 %v4848_v14  ;;  %1177 = vmatprep.mubr.bf16.mxu0 %v4600_v8  ;;  %v3889_v14 = vcombine.high %v4986_v36, %v4991_v37 }
  0x7d   : > { %4377 = vmatpush1.bf16.msra.mxu1 %v3886_v34  ;;  %1290 = vmatprep.mubr.bf16.mxu1 %v4600_v8 }
  0x7e   : > { %1635 = vmatpush1.bf16.msra.mxu0 %v3886_v34  ;;  %4376 = vmatprep.subr.bf16.mxu1 %v3895_v35  ;;  %v4442_v34 = vld [vmem:[%s6274_s6 + $0xc8] sm:$0xff]  }
  0x7f   : > { %1636 = vmatprep.subr.bf16.mxu0 %v3895_v35  ;;  %v4456_v35 = vld [vmem:[%s6274_s6 + $0x68] sm:$0xff]  }
  0x81   : > { %4378 = vmatpush1.bf16.msra.mxu1 %v3894_v40 }
  0x82   : > { %1637 = vmatpush1.bf16.msra.mxu0 %v3894_v40  ;;  %1747 = vmatprep.subr.bf16.mxu1 %v3889_v14  ;;  %v4458_v40 = vld [vmem:[%s6274_s6 + $0x70] sm:$0xff]  }
  0x83   : > { %1178 = vmatmul.mubr.bf16.gmra.mrb[36].mxu0 %v4880_v32  ;;  %1860 = vmatprep.subr.bf16.mxu0 %v3891_v41 }
  0x84   : > { %1291 = vmatmul.mubr.bf16.gmra.mrb[36].mxu1 %v4880_v32  ;;  %1187 = vmatprep.mubr.bf16.mxu0 %v4600_v8  ;;  %v1489_v32 = vld [vmem:[%s5034_s16] sm:$0xff]  ;;  %s4542_s16 = scalar_lea.vmem %s4541_s25, 64 }
  0x85   : > { %1300 = vmatprep.mubr.bf16.mxu1 %v4600_v8  ;;  %v5042_v45 = vpack.c.bf16 %v1490_v42, %v1489_v32  ;;  %p4544_p1 = scmp.lt.s32.totalorder %s4542_s16, %s4536_s17 }
  0x87   : > { %p4545_p2 = por %p4544_p1, %p4543_p0 }
  0x89   : > { %p4546_p3 = pnand %p4545_p2, %p4539_p13 }
  0x8b   : > { %1188 = vmatmul.mubr.bf16.gmra.mrb[40].mxu0 %v4912_v51 }
  0x8c   : > { %1301 = vmatmul.mubr.bf16.gmra.mrb[40].mxu1 %v4912_v51  ;;  %1197 = vmatprep.mubr.bf16.mxu0 %v4600_v8  ;;  %v3888_v51 = vcombine.low %v4986_v36, %v4991_v37  ;;  %v4457_v36 = vld [vmem:[%s6274_s6 + $0x28] sm:$0xff]  }
  0x8d   : > { %1310 = vmatprep.mubr.bf16.mxu1 %v4600_v8  ;;  %v4443_v37 = vld [vmem:[%s6274_s6 + $0x88] sm:$0xff]  }
  0x93   : > { %1198 = vmatmul.mubr.bf16.gmra.mrb[44].mxu0 %v4944_v6 }
  0x94   : > { %1311 = vmatmul.mubr.bf16.gmra.mrb[44].mxu1 %v4944_v6  ;;  %1207 = vmatprep.mubr.bf16.mxu0 %v4600_v8  ;;  %v1528_v6 = vld [vmem:[%s6273_s5 + $0x78] sm:$0xff] }
  0x95   : > { %1320 = vmatprep.mubr.bf16.mxu1 %v4600_v8  ;;  %v3901_v9 = vcombine.high %v1524_v5, %v1528_v6  ;;  %v3900_v12 = vcombine.low %v1524_v5, %v1528_v6 }
  0x9b   : > { %1208 = vmatmul.mubr.bf16.gmra.mrb[48].mxu0 %v4958_v21 }
  0x9c   : > { %1321 = vmatmul.mubr.bf16.gmra.mrb[48].mxu1 %v4958_v21  ;;  %1217 = vmatprep.mubr.bf16.mxu0 %v4600_v8  ;;  %v4436_v21 = vld [vmem:[%s6274_s6 + $0x40] sm:$0xff]  }
  0x9d   : > { %1330 = vmatprep.mubr.bf16.mxu1 %v4600_v8 }
  0xa3   : > { %1218 = vmatmul.mubr.bf16.gmra.mrb[52].mxu0 %v480_v24 }
  0xa4   : > { %1331 = vmatmul.mubr.bf16.gmra.mrb[52].mxu1 %v480_v24  ;;  %1227 = vmatprep.mubr.bf16.mxu0 %v4600_v8  ;;  %v4440_v24 = vld [vmem:[%s6274_s6 + $0x48] sm:$0xff]  }
  0xa5   : > { %1340 = vmatprep.mubr.bf16.mxu1 %v4600_v8 }
  0xab   : > { %1228 = vmatmul.mubr.bf16.gmra.mrb[56].mxu0 %v481_v27 }
  0xac   : > { %1341 = vmatmul.mubr.bf16.gmra.mrb[56].mxu1 %v481_v27  ;;  %1237 = vmatprep.mubr.bf16.mxu0 %v4600_v8  ;;  %v4445_v27 = vld [vmem:[%s6274_s6 + $0x10] sm:$0xff]  }
  0xad   : > { %1350 = vmatprep.mubr.bf16.mxu1 %v4600_v8 }
  0xb3   : > { %1238 = vmatmul.mubr.bf16.gmra.mrb[60].mxu0 %v482_v30 }
  0xb4   : > { %1351 = vmatmul.mubr.bf16.gmra.mrb[60].mxu1 %v482_v30  ;;  %1666 = vmatprep.mubr.bf16.mxu0 %v4600_v8  ;;  %v4452_v30 = vld [vmem:[%s6274_s6 + $0x60] sm:$0xff]  }
  0xb5   : > { %1726 = vmatprep.mubr.bf16.mxu1 %v4600_v8 }
  0xbb   : > { %3902 = vmatmul.mubr.msk.bf16.vlgmr.msra.gmra.mrb[64].mxu0 %vm1609_vm0, %v5042_v45 }
  0xbc   : > { %3908 = vmatmul.mubr.msk.bf16.vlgmr.msra.gmra.mrb[64].mxu1 %vm1609_vm0, %v5050_v48  ;;  %1676 = vmatprep.mubr.bf16.mxu0 %v4600_v8 }
  0xbd   : > { %1748 = vmatpush1.bf16.msra.mxu1 %v3888_v51  ;;  %1736 = vmatprep.mubr.bf16.mxu1 %v4600_v8  ;;  %v4451_v51 = vld [vmem:[%s6274_s6 + $0x98] sm:$0xff]  }
  0xbe   : > { %1749 = vmatprep.subr.bf16.mxu1 %v3897_v52  ;;  %1861 = vmatpush1.bf16.msra.mxu0 %v3890_v53  ;;  %v4454_v53 = vld [vmem:[%s6274_s6 + $0xe0] sm:$0xff]  }
  0xbf   : > { %1862 = vmatprep.subr.bf16.mxu0 %v3899_v56 }
  0xc1   : > { %1750 = vmatpush1.bf16.msra.mxu1 %v3896_v61  ;;  %v4455_v61 = vld [vmem:[%s6274_s6 + $0xa0] sm:$0xff]  }
  0xc2   : > { %1973 = vmatprep.subr.bf16.mxu1 %v3893_v62  ;;  %1863 = vmatpush1.bf16.msra.mxu0 %v3898_v63  ;;  %v4459_v63 = vld [vmem:[%s6274_s6 + $0xe8] sm:$0xff]  }
  0xc3   : > { %3903 = vmatmul.mubr.msk.bf16.gmra.mrb[68].mxu0 %vm1609_vm0, %v5078_v0  ;;  %4032 = vmatprep.subr.bf16.mxu0 %v4436_v21 }
  0xc4   : > { %3909 = vmatmul.mubr.msk.bf16.gmra.mrb[68].mxu1 %vm1609_vm0, %v5080_v1  ;;  %1686 = vmatprep.mubr.bf16.mxu0 %v4600_v8 }
  0xc5   : > { %1779 = vmatprep.mubr.bf16.mxu1 %v4600_v8 }
  0xcb   : > { %3904 = vmatmul.mubr.msk.bf16.gmra.mrb[72].mxu0 %vm1609_vm0, %v5090_v4 }
  0xcc   : > { %3910 = vmatmul.mubr.msk.bf16.vlgmr.msra.gmra.mrb[72].mxu1 %vm1609_vm0, %v5042_v45  ;;  %1696 = vmatprep.mubr.bf16.mxu0 %v4600_v8 }
  0xcd   : > { %1974 = vmatpush1.bf16.msra.mxu1 %v3892_v7  ;;  %1789 = vmatprep.mubr.bf16.mxu1 %v4600_v8 }
  0xce   : > { %1975 = vmatprep.subr.bf16.mxu1 %v3901_v9 }
  0xd1   : > { %1976 = vmatpush1.bf16.msra.mxu1 %v3900_v12 }
  0xd2   : > { %4096 = vmatprep.subr.bf16.mxu1 %v4438_v23 }
  0xd3   : > { %3905 = vmatmul.mubr.msk.bf16.gmra.mrb[76].mxu0 %vm1609_vm0, %v5106_v13 }
  0xd4   : > { %3911 = vmatmul.mubr.msk.bf16.gmra.mrb[76].mxu1 %vm1609_vm0, %v5078_v0  ;;  %1706 = vmatprep.mubr.bf16.mxu0 %v4600_v8 }
  0xd5   : > { %1799 = vmatprep.mubr.bf16.mxu1 %v4600_v8 }
  0xdb   : > { %3906 = vmatmul.mubr.msk.bf16.gmra.mrb[80].mxu0 %vm1609_vm0, %v5116_v17 }
  0xdc   : > { %3912 = vmatmul.mubr.msk.bf16.gmra.mrb[80].mxu1 %vm1609_vm0, %v5090_v4  ;;  %1716 = vmatprep.mubr.bf16.mxu0 %v4600_v8 }
  0xdd   : > { %1809 = vmatprep.mubr.bf16.mxu1 %v4600_v8 }
  0xe3   : > { %3907 = vmatmul.mubr.msk.bf16.gmra.mrb[84].mxu0 %vm1609_vm0, %v5126_v20 }
  0xe4   : > { %3913 = vmatmul.mubr.msk.bf16.gmra.mrb[84].mxu1 %vm1609_vm0, %v5106_v13  ;;  %1892 = vmatprep.mubr.bf16.mxu0 %v4600_v8 }
  0xe5   : > { %1819 = vmatprep.mubr.bf16.mxu1 %v4600_v8 }
  0xeb   : > { %3918 = vmatmul.mubr.msk.bf16.vlgmr.msra.gmra.mrb[88].mxu0 %vm1609_vm0, %v5042_v45 }
  0xec   : > { %3914 = vmatmul.mubr.msk.bf16.gmra.mrb[88].mxu1 %vm1609_vm0, %v5116_v17  ;;  %1902 = vmatprep.mubr.bf16.mxu0 %v4600_v8 }
  0xed   : > { %1829 = vmatprep.mubr.bf16.mxu1 %v4600_v8  ;;  %4033 = vmatpush3.bf16.msra.mxu0 %v4437_v22 }
  0xee   : > { %4034 = vmatprep.subr.bf16.mxu0 %v4440_v24 }
  0xf1   : > { %4035 = vmatpush3.bf16.msra.mxu0 %v4441_v25 }
  0xf2   : > { %4036 = vmatprep.subr.bf16.mxu0 %v4444_v26  ;;  %v4470_v26 = vld [vmem:[%s6274_s6 + $0x1c0] sm:$0xff]  }
  0xf3   : > { %3919 = vmatmul.mubr.msk.bf16.gmra.mrb[92].mxu0 %vm1609_vm0, %v5078_v0 }
  0xf4   : > { %3915 = vmatmul.mubr.msk.bf16.gmra.mrb[92].mxu1 %vm1609_vm0, %v5126_v20  ;;  %1912 = vmatprep.mubr.bf16.mxu0 %v4600_v8 }
  0xf5   : > { %1839 = vmatprep.mubr.bf16.mxu1 %v4600_v8  ;;  %4037 = vmatpush3.bf16.msra.mxu0 %v4445_v27 }
  0xf6   : > { %4038 = vmatprep.subr.bf16.mxu0 %v4448_v28 }
  0xf9   : > { %4039 = vmatpush3.bf16.msra.mxu0 %v4449_v29 }
  0xfa   : > { %4040 = vmatprep.subr.bf16.mxu0 %v4452_v30 }
  0xfb   : > { %3920 = vmatmul.mubr.msk.bf16.gmra.mrb[96].mxu0 %vm1609_vm0, %v5090_v4 }
  0xfc   : > { %3916 = vmatmul.mubr.msk.bf16.gmra.mrb[96].mxu1 %vm1609_vm0, %v5050_v48  ;;  %1922 = vmatprep.mubr.bf16.mxu0 %v4600_v8 }
  0xfd   : > { %1849 = vmatprep.mubr.bf16.mxu1 %v4600_v8  ;;  %4041 = vmatpush3.bf16.msra.mxu0 %v4453_v31 }
  0xfe   : > { %4042 = vmatprep.subr.bf16.mxu0 %v4456_v35 }
 0x101   : > { %4043 = vmatpush3.bf16.msra.mxu0 %v4457_v36 }
 0x102   : > { %4044 = vmatprep.subr.bf16.mxu0 %v4458_v40 }
 0x103   : > { %3921 = vmatmul.mubr.msk.bf16.gmra.mrb[100].mxu0 %vm1609_vm0, %v5106_v13 }
 0x104   : > { %3917 = vmatmul.mubr.msk.bf16.gmra.mrb[100].mxu1 %vm1609_vm0, %v5080_v1  ;;  %1932 = vmatprep.mubr.bf16.mxu0 %v4600_v8 }
 0x105   : > { %2005 = vmatprep.mubr.bf16.mxu1 %v4600_v8  ;;  %4045 = vmatpush3.bf16.msra.mxu0 %v4460_v49 }
 0x106   : > { %4046 = vmatprep.subr.bf16.mxu0 %v4462_v50 }
 0x109   : > { %4047 = vmatpush3.bf16.msra.mxu0 %v4463_v54 }
 0x10a   : > { %4160 = vmatprep.subr.bf16.mxu0 %v4468_v18 }
 0x10b   : > { %3922 = vmatmul.mubr.msk.bf16.gmra.mrb[104].mxu0 %vm1609_vm0, %v5116_v17 }
 0x10c   : > { %3926 = vmatmul.mubr.msk.bf16.vlgmr.msra.gmra.mrb[104].mxu1 %vm1609_vm0, %v5042_v45  ;;  %1942 = vmatprep.mubr.bf16.mxu0 %v4600_v8  ;;  %v4447_v45 = vld [vmem:[%s6274_s6 + $0x90] sm:$0xff]  }
 0x10d   : > { %2015 = vmatprep.mubr.bf16.mxu1 %v4600_v8  ;;  %4097 = vmatpush3.bf16.msra.mxu1 %v4439_v33 }
 0x10e   : > { %v5212_v38 = vpop.f32.mrb[0].mxu0  ;;  %4098 = vmatprep.subr.bf16.mxu1 %v4442_v34  ;;  %v5220_v14 = vpop.f32.mrb[0].mxu1 }
 0x10f   : > { %v5222_v41 = vpop.f32.mrb[1].mxu0  ;;  %v5224_v32 = vpop.f32.mrb[1].mxu1 }
 0x110   : > { %v5226_v42 = vpop.f32.mrb[2].mxu0  ;;  %v5228_v43 = vpop.f32.mrb[2].mxu1 }
 0x111   : > { %v5230_v44 = vpop.f32.mrb[3].mxu0  ;;  %4099 = vmatpush3.bf16.msra.mxu1 %v4443_v37  ;;  %v5235_v46 = vpop.f32.mrb[3].mxu1 }
 0x112   : > { %4100 = vmatprep.subr.bf16.mxu1 %v4446_v39 }
 0x113   : > { %3923 = vmatmul.mubr.msk.bf16.gmra.mrb[108].mxu0 %vm1609_vm0, %v5126_v20 }
 0x114   : > { %3927 = vmatmul.mubr.msk.bf16.gmra.mrb[108].mxu1 %vm1609_vm0, %v5078_v0  ;;  %1952 = vmatprep.mubr.bf16.mxu0 %v4600_v8  ;;  %v4461_v0 = vld [vmem:[%s6274_s6 + $0xa8] sm:$0xff]  }
 0x115   : > { %2025 = vmatprep.mubr.bf16.mxu1 %v4600_v8  ;;  %4101 = vmatpush3.bf16.msra.mxu1 %v4447_v45 }
 0x116   : > { %v5255_v52 = vpop.f32.mrb[4].mxu0  ;;  %4102 = vmatprep.subr.bf16.mxu1 %v4450_v47 }
 0x117   : > { %v5263_v55 = vpop.f32.mrb[4].mxu1  ;;  %v5265_v56 = vpop.f32.mrb[5].mxu0 }
 0x118   : > { %v5267_v57 = vpop.f32.mrb[5].mxu1  ;;  %v5269_v58 = vpop.f32.mrb[6].mxu0 }
 0x119   : > { %v5271_v59 = vpop.f32.mrb[6].mxu1  ;;  %v5273_v60 = vpop.f32.mrb[7].mxu0  ;;  %4103 = vmatpush3.bf16.msra.mxu1 %v4451_v51 }
 0x11a   : > { %v5278_v62 = vpop.f32.mrb[7].mxu1  ;;  %4104 = vmatprep.subr.bf16.mxu1 %v4454_v53 }
 0x11b   : > { %3924 = vmatmul.mubr.msk.bf16.gmra.mrb[112].mxu0 %vm1609_vm0, %v5050_v48 }
 0x11c   : > { %3928 = vmatmul.mubr.msk.bf16.gmra.mrb[112].mxu1 %vm1609_vm0, %v5090_v4  ;;  %1962 = vmatprep.mubr.bf16.mxu0 %v4600_v8 }
 0x11d   : > { %2035 = vmatprep.mubr.bf16.mxu1 %v4600_v8  ;;  %4105 = vmatpush3.bf16.msra.mxu1 %v4455_v61 }
 0x11e   : > { %v5292_v2 = vpop.f32.mrb[8].mxu0  ;;  %4106 = vmatprep.subr.bf16.mxu1 %v4459_v63 }
 0x11f   : > { %v5297_v5 = vpop.f32.mrb[8].mxu1  ;;  %v5299_v6 = vpop.f32.mrb[9].mxu0 }
 0x120   : > { %v5301_v4 = vpop.f32.mrb[9].mxu1  ;;  %v5303_v7 = vpop.f32.mrb[10].mxu0 }
 0x121   : > { %v5305_v9 = vpop.f32.mrb[10].mxu1  ;;  %v5307_v10 = vpop.f32.mrb[11].mxu0  ;;  %4107 = vmatpush3.bf16.msra.mxu1 %v4461_v0 }
 0x122   : > { %v5312_v12 = vpop.f32.mrb[11].mxu1  ;;  %4108 = vmatprep.subr.bf16.mxu1 %v4464_v3 }
 0x123   : > { %3925 = vmatmul.mubr.msk.bf16.gmra.mrb[116].mxu0 %vm1609_vm0, %v5080_v1 }
 0x124   : > { %3929 = vmatmul.mubr.msk.bf16.gmra.mrb[116].mxu1 %vm1609_vm0, %v5106_v13 }
 0x125   : > { %2045 = vmatprep.mubr.bf16.mxu1 %v4600_v8  ;;  %4109 = vmatpush3.bf16.msra.mxu1 %v4465_v11 }
 0x126   : > { %v5328_v19 = vpop.f32.mrb[12].mxu0  ;;  %4110 = vmatprep.subr.bf16.mxu1 %v4466_v15 }
 0x127   : > { %v5330_v21 = vpop.f32.mrb[12].mxu1  ;;  %v5332_v22 = vpop.f32.mrb[13].mxu0 }
 0x128   : > { %6289 = vst [vmem:[#allocation8_spill] sm:$0xff] %v5330_v21  ;;  %v5334_v13 = vpop.f32.mrb[13].mxu1  ;;  %v5336_v23 = vpop.f32.mrb[14].mxu0 }
 0x129   : > { %6290 = vst [vmem:[#allocation9_spill] sm:$0xff] %v5334_v13  ;;  %v5338_v24 = vpop.f32.mrb[14].mxu1  ;;  %v5340_v25 = vpop.f32.mrb[15].mxu0  ;;  %4111 = vmatpush3.bf16.msra.mxu1 %v4467_v16 }
 0x12a   : > { %6291 = vst [vmem:[#allocation10_spill] sm:$0xff] %v5338_v24  ;;  %v5345_v27 = vpop.f32.mrb[15].mxu1  ;;  %4224 = vmatprep.subr.bf16.mxu1 %v4470_v26 }
 0x12b   : > { %6292 = vst [vmem:[#allocation11_spill] sm:$0xff] %v5345_v27 }
 0x12c   : > { %3930 = vmatmul.mubr.msk.bf16.gmra.mrb[120].mxu1 %vm1609_vm0, %v5116_v17 }
 0x12d   : > { %2055 = vmatprep.mubr.bf16.mxu1 %v4600_v8 }
 0x12e   : > { %v5350_v28 = vpop.f32.mrb[16].mxu0 }
 0x12f   : > { %v5352_v29 = vpop.f32.mrb[16].mxu1  ;;  %v5354_v30 = vpop.f32.mrb[17].mxu0 }
 0x130   : > { %6293 = vst [vmem:[#allocation12_spill] sm:$0xff] %v5352_v29  ;;  %v5356_v31 = vpop.f32.mrb[17].mxu1  ;;  %v5358_v33 = vpop.f32.mrb[18].mxu0 }
 0x131   : > { %6294 = vst [vmem:[#allocation13_spill] sm:$0xff] %v5356_v31  ;;  %v5360_v34 = vpop.f32.mrb[18].mxu1  ;;  %v5362_v35 = vpop.f32.mrb[19].mxu0 }
 0x132   : > { %6295 = vst [vmem:[#allocation14_spill] sm:$0xff] %v5360_v34  ;;  %v5364_v36 = vpop.f32.mrb[19].mxu1 }
 0x133   : > { %6296 = vst [vmem:[#allocation15_spill] sm:$0xff] %v5364_v36 }
 0x134   : > { %3931 = vmatmul.mubr.msk.bf16.gmra.mrb[124].mxu1 %vm1609_vm0, %v5126_v20 }
 0x135   : > { %2065 = vmatprep.mubr.bf16.mxu1 %v4600_v8 }
 0x136   : > { %v5369_v17 = vpop.f32.mrb[20].mxu0 }
 0x137   : > { %v5371_v37 = vpop.f32.mrb[20].mxu1  ;;  %v5373_v39 = vpop.f32.mrb[21].mxu0 }
 0x138   : > { %6297 = vst [vmem:[#allocation16_spill] sm:$0xff] %v5371_v37  ;;  %6298 = vst [vmem:[#allocation17_spill] sm:$0xff] %v5373_v39  ;;  %v5375_v40 = vpop.f32.mrb[21].mxu1  ;;  %v5377_v45 = vpop.f32.mrb[22].mxu0 }
 0x139   : > { %6299 = vst [vmem:[#allocation18_spill] sm:$0xff] %v5375_v40  ;;  %6300 = vst [vmem:[#allocation19_spill] sm:$0xff] %v5377_v45  ;;  %v5379_v47 = vpop.f32.mrb[22].mxu1  ;;  %v5381_v49 = vpop.f32.mrb[23].mxu0 }
 0x13a   : > { %6301 = vst [vmem:[#allocation20_spill] sm:$0xff] %v5379_v47  ;;  %6302 = vst [vmem:[#allocation21_spill] sm:$0xff] %v5381_v49  ;;  %v5383_v50 = vpop.f32.mrb[23].mxu1 }
 0x13b   : > { %6303 = vst [vmem:[#allocation22_spill] sm:$0xff] %v5383_v50 }
 0x13c   : > { %3932 = vmatmul.mubr.msk.bf16.gmra.mrb[128].mxu1 %vm1609_vm0, %v5050_v48 }
 0x13d   : > { %2075 = vmatprep.mubr.bf16.mxu1 %v4600_v8 }
 0x13e   : > { %v5388_v20 = vpop.f32.mrb[24].mxu0 }
 0x13f   : > { %v5390_v51 = vpop.f32.mrb[24].mxu1  ;;  %v5392_v53 = vpop.f32.mrb[25].mxu0 }
 0x140   : > { %6304 = vst [vmem:[#allocation23_spill] sm:$0xff] %v5390_v51  ;;  %v5394_v54 = vpop.f32.mrb[25].mxu1  ;;  %v5396_v61 = vpop.f32.mrb[26].mxu0 }
 0x141   : > { %6305 = vst [vmem:[#allocation24_spill] sm:$0xff] %v5394_v54  ;;  %v5398_v63 = vpop.f32.mrb[26].mxu1  ;;  %v5400_v0 = vpop.f32.mrb[27].mxu0 }
 0x142   : > { %6306 = vst [vmem:[#allocation25_spill] sm:$0xff] %v5398_v63  ;;  %v5402_v3 = vpop.f32.mrb[27].mxu1 }
 0x143   : > { %6307 = vst [vmem:[#allocation26_spill] sm:$0xff] %v5402_v3 }
 0x144   : > { %3933 = vmatmul.mubr.msk.bf16.gmra.mrb[132].mxu1 %vm1609_vm0, %v5080_v1 }
 0x146   : > { %v5406_v8 = vpop.f32.mrb[28].mxu0 }
 0x147   : > { %v5408_v48 = vpop.f32.mrb[28].mxu1  ;;  %v5410_v11 = vpop.f32.mrb[29].mxu0 }
 0x148   : > { %6308 = vst [vmem:[#allocation27_spill] sm:$0xff] %v5408_v48  ;;  %v5412_v15 = vpop.f32.mrb[29].mxu1  ;;  %v5414_v16 = vpop.f32.mrb[30].mxu0 }
 0x149   : > { %6309 = vst [vmem:[#allocation28_spill] sm:$0xff] %v5412_v15  ;;  %v5416_v18 = vpop.f32.mrb[30].mxu1  ;;  %v5418_v26 = vpop.f32.mrb[31].mxu0 }
 0x14a   : > { %6310 = vst [vmem:[#allocation29_spill] sm:$0xff] %v5416_v18  ;;  %v5420_v63 = vpop.f32.mrb[31].mxu1 }
 0x14b   : > { %6311 = vst [vmem:[#allocation30_spill] sm:$0xff] %v5420_v63 }
 0x14e   : > { %v5422_v3 = vpop.f32.mrb[32].mxu0 }
 0x14f   : > { %6312 = vst [vmem:[#allocation31_spill] sm:$0xff] %v5422_v3  ;;  %v5424_v54 = vpop.f32.mrb[32].mxu1  ;;  %v5426_v1 = vpop.f32.mrb[33].mxu0 }
 0x150   : > { %6313 = vst [vmem:[#allocation32_spill] sm:$0xff] %v5424_v54  ;;  %6314 = vst [vmem:[#allocation33_spill] sm:$0xff] %v5426_v1  ;;  %v5428_v51 = vpop.f32.mrb[33].mxu1  ;;  %v5430_v48 = vpop.f32.mrb[34].mxu0 }
 0x151   : > { %6315 = vst [vmem:[#allocation34_spill] sm:$0xff] %v5428_v51  ;;  %6316 = vst [vmem:[#allocation35_spill] sm:$0xff] %v5430_v48  ;;  %v5432_v50 = vpop.f32.mrb[34].mxu1  ;;  %v5434_v15 = vpop.f32.mrb[35].mxu0 }
 0x152   : > { %6317 = vst [vmem:[#allocation36_spill] sm:$0xff] %v5432_v50  ;;  %6318 = vst [vmem:[#allocation37_spill] sm:$0xff] %v5434_v15  ;;  %v5436_v47 = vpop.f32.mrb[35].mxu1 }
 0x153   : > { %6319 = vst [vmem:[#allocation38_spill] sm:$0xff] %v5436_v47 }
 0x156   : > { %v5438_v18 = vpop.f32.mrb[36].mxu0 }
 0x157   : > { %6320 = vst [vmem:[#allocation39_spill] sm:$0xff] %v5438_v18  ;;  %v5440_v40 = vpop.f32.mrb[36].mxu1  ;;  %v5442_v63 = vpop.f32.mrb[37].mxu0 }
 0x158   : > { %6321 = vst [vmem:[#allocation40_spill] sm:$0xff] %v5440_v40  ;;  %6322 = vst [vmem:[#allocation41_spill] sm:$0xff] %v5442_v63  ;;  %v5444_v37 = vpop.f32.mrb[37].mxu1  ;;  %v5446_v54 = vpop.f32.mrb[38].mxu0 }
 0x159   : > { %6323 = vst [vmem:[#allocation42_spill] sm:$0xff] %v5444_v37  ;;  %6324 = vst [vmem:[#allocation43_spill] sm:$0xff] %v5446_v54  ;;  %v5448_v36 = vpop.f32.mrb[38].mxu1  ;;  %v5450_v51 = vpop.f32.mrb[39].mxu0 }
 0x15a   : > { %6325 = vst [vmem:[#allocation44_spill] sm:$0xff] %v5448_v36  ;;  %6326 = vst [vmem:[#allocation45_spill] sm:$0xff] %v5450_v51  ;;  %v5452_v34 = vpop.f32.mrb[39].mxu1 }
 0x15b   : > { %6327 = vst [vmem:[#allocation46_spill] sm:$0xff] %v5452_v34 }
 0x15e   : > { %v5454_v50 = vpop.f32.mrb[40].mxu0 }
 0x15f   : > { %6328 = vst [vmem:[#allocation47_spill] sm:$0xff] %v5454_v50  ;;  %v5456_v15 = vpop.f32.mrb[40].mxu1  ;;  %v5458_v47 = vpop.f32.mrb[41].mxu0 }
 0x160   : > { %6329 = vst [vmem:[#allocation48_spill] sm:$0xff] %v5456_v15  ;;  %6330 = vst [vmem:[#allocation49_spill] sm:$0xff] %v5458_v47  ;;  %v5460_v18 = vpop.f32.mrb[41].mxu1  ;;  %v5462_v40 = vpop.f32.mrb[42].mxu0 }
 0x161   : > { %6331 = vst [vmem:[#allocation50_spill] sm:$0xff] %v5460_v18  ;;  %6332 = vst [vmem:[#allocation51_spill] sm:$0xff] %v5462_v40  ;;  %v5464_v63 = vpop.f32.mrb[42].mxu1  ;;  %v5466_v37 = vpop.f32.mrb[43].mxu0 }
 0x162   : > { %6333 = vst [vmem:[#allocation52_spill] sm:$0xff] %v5464_v63  ;;  %6334 = vst [vmem:[#allocation53_spill] sm:$0xff] %v5466_v37  ;;  %v5468_v54 = vpop.f32.mrb[43].mxu1 }
 0x163   : > { %6335 = vst [vmem:[#allocation54_spill] sm:$0xff] %v5468_v54 }
 0x166   : > { %v5470_v36 = vpop.f32.mrb[44].mxu0 }
 0x167   : > { %6336 = vst [vmem:[#allocation55_spill] sm:$0xff] %v5470_v36  ;;  %v5472_v51 = vpop.f32.mrb[44].mxu1  ;;  %v5474_v34 = vpop.f32.mrb[45].mxu0 }
 0x168   : > { %6337 = vst [vmem:[#allocation56_spill] sm:$0xff] %v5472_v51  ;;  %6338 = vst [vmem:[#allocation57_spill] sm:$0xff] %v5474_v34  ;;  %v5476_v50 = vpop.f32.mrb[45].mxu1  ;;  %v5478_v15 = vpop.f32.mrb[46].mxu0 }
 0x169   : > { %6339 = vst [vmem:[#allocation58_spill] sm:$0xff] %v5476_v50  ;;  %6340 = vst [vmem:[#allocation59_spill] sm:$0xff] %v5478_v15  ;;  %v5480_v47 = vpop.f32.mrb[46].mxu1  ;;  %v5482_v18 = vpop.f32.mrb[47].mxu0 }
 0x16a   : > { %6341 = vst [vmem:[#allocation60_spill] sm:$0xff] %v5480_v47  ;;  %6342 = vst [vmem:[#allocation61_spill] sm:$0xff] %v5482_v18  ;;  %v5484_v40 = vpop.f32.mrb[47].mxu1 }
 0x16b   : > { %6343 = vst [vmem:[#allocation62_spill] sm:$0xff] %v5484_v40 }
 0x16e   : > { %v5486_v63 = vpop.f32.mrb[48].mxu0 }
 0x16f   : > { %6344 = vst [vmem:[#allocation63_spill] sm:$0xff] %v5486_v63  ;;  %v5488_v37 = vpop.f32.mrb[48].mxu1  ;;  %v5490_v54 = vpop.f32.mrb[49].mxu0 }
 0x170   : > { %6345 = vst [vmem:[#allocation64_spill] sm:$0xff] %v5488_v37  ;;  %6346 = vst [vmem:[#allocation65_spill] sm:$0xff] %v5490_v54  ;;  %v5492_v36 = vpop.f32.mrb[49].mxu1  ;;  %v5494_v51 = vpop.f32.mrb[50].mxu0 }
 0x171   : > { %6347 = vst [vmem:[#allocation66_spill] sm:$0xff] %v5492_v36  ;;  %6348 = vst [vmem:[#allocation67_spill] sm:$0xff] %v5494_v51  ;;  %v5496_v34 = vpop.f32.mrb[50].mxu1  ;;  %v5498_v50 = vpop.f32.mrb[51].mxu0 }
 0x172   : > { %6349 = vst [vmem:[#allocation68_spill] sm:$0xff] %v5496_v34  ;;  %6350 = vst [vmem:[#allocation69_spill] sm:$0xff] %v5498_v50  ;;  %v5500_v15 = vpop.f32.mrb[51].mxu1  ;;  %v549_v34 = vlaneseq }
 0x173   : > { %6351 = vst [vmem:[#allocation70_spill] sm:$0xff] %v5500_v15 }
 0x174   : > { %v5520_v15 = vshrl.u32 %v549_v34, 7  ;;  %v5541_v34 = vld [vmem:[%s6272_s4] sm:$0xff] }
 0x176   : > { %v5502_v47 = vpop.f32.mrb[52].mxu0 }
 0x177   : > { %6352 = vst [vmem:[#allocation71_spill] sm:$0xff] %v5502_v47  ;;  %v5504_v18 = vpop.f32.mrb[52].mxu1  ;;  %v5506_v40 = vpop.f32.mrb[53].mxu0 }
 0x178   : > { %6353 = vst [vmem:[#allocation72_spill] sm:$0xff] %v5504_v18  ;;  %6354 = vst [vmem:[#allocation73_spill] sm:$0xff] %v5506_v40  ;;  %v5508_v63 = vpop.f32.mrb[53].mxu1  ;;  %v5510_v37 = vpop.f32.mrb[54].mxu0 }
 0x179   : > { %6355 = vst [vmem:[#allocation74_spill] sm:$0xff] %v5508_v63  ;;  %6356 = vst [vmem:[#allocation75_spill] sm:$0xff] %v5510_v37  ;;  %v5512_v54 = vpop.f32.mrb[54].mxu1  ;;  %v5514_v36 = vpop.f32.mrb[55].mxu0  ;;  %v551_v37 = vsub.s32 0, %v5520_v15 }
 0x17a   : > { %6357 = vst [vmem:[#allocation76_spill] sm:$0xff] %v5512_v54  ;;  %6358 = vst [vmem:[#allocation77_spill] sm:$0xff] %v5514_v36  ;;  %v5516_v51 = vpop.f32.mrb[55].mxu1 }
 0x17b   : > { %6359 = vst [vmem:[#allocation78_spill] sm:$0xff] %v5516_v51  ;;  %v555_v51 = vsub.s32 1, %v5520_v15 }
 0x17e   : > { %v5518_v50 = vpop.f32.mrb[56].mxu0 }
 0x17f   : > { %6360 = vst [vmem:[#allocation79_spill] sm:$0xff] %v5518_v50  ;;  %v5522_v47 = vpop.f32.mrb[56].mxu1  ;;  %v5524_v18 = vpop.f32.mrb[57].mxu0 }
 0x180   : > { %6361 = vst [vmem:[#allocation80_spill] sm:$0xff] %v5522_v47  ;;  %6362 = vst [vmem:[#allocation81_spill] sm:$0xff] %v5524_v18  ;;  %v5526_v40 = vpop.f32.mrb[57].mxu1  ;;  %v5528_v63 = vpop.f32.mrb[58].mxu0  ;;  %v5544_v47 = vrot.slane %v5541_v34, %v551_v37 }
 0x181   : > { %6363 = vst [vmem:[#allocation82_spill] sm:$0xff] %v5526_v40  ;;  %6364 = vst [vmem:[#allocation83_spill] sm:$0xff] %v5528_v63  ;;  %v5531_v54 = vpop.f32.mrb[58].mxu1  ;;  %v5533_v36 = vpop.f32.mrb[59].mxu0  ;;  %v5547_v40 = vrot.slane %v5541_v34, %v555_v51 }
 0x182   : > { %6365 = vst [vmem:[#allocation84_spill] sm:$0xff] %v5531_v54  ;;  %6366 = vst [vmem:[#allocation85_spill] sm:$0xff] %v5533_v36  ;;  %v5536_v48 = vpop.f32.mrb[59].mxu1  ;;  %v944_v50 = vadd.f32 %v5212_v38, %v5544_v47 }
 0x183   : > { %6367 = vst [vmem:[#allocation86_spill] sm:$0xff] %v5536_v48  ;;  %v946_v51 = vadd.f32 %v5222_v41, %v5547_v40  ;;  %v950_v38 = vadd.f32 %v5230_v44, %v5547_v40  ;;  %v1010_v41 = vadd.f32 %v5400_v0, %v5547_v40  ;;  %v954_v0 = vadd.f32 %v5255_v52, %v5544_v47 }
 0x184   : > { %v1016_v52 = vadd.f32 %v5410_v11, %v5547_v40 }
 0x185   : > { %v1370_v44 = vmax.f32 %v950_v38, 0.0 }
 0x186   : > { %v5549_v63 = vpop.f32.mrb[60].mxu0 }
 0x187   : > { %6368 = vst [vmem:[#allocation87_spill] sm:$0xff] %v5549_v63  ;;  %v5551_v54 = vpop.f32.mrb[60].mxu1  ;;  %v5553_v36 = vpop.f32.mrb[61].mxu0  ;;  %v1004_v63 = vadd.f32 %v5388_v20, %v5544_v47  ;;  %v559_v20 = vsub.s32 2, %v5520_v15 }
 0x188   : > { %6369 = vst [vmem:[#allocation88_spill] sm:$0xff] %v5551_v54  ;;  %6370 = vst [vmem:[#allocation89_spill] sm:$0xff] %v5553_v36  ;;  %v5555_v18 = vpop.f32.mrb[61].mxu1  ;;  %v5557_v48 = vpop.f32.mrb[62].mxu0  ;;  %v1362_v36 = vmax.f32 %v946_v51, 0.0  ;;  %v1466_v51 = vmax.f32 %v1010_v41, 0.0 }
 0x189   : > { %6371 = vst [vmem:[#allocation90_spill] sm:$0xff] %v5555_v18  ;;  %6372 = vst [vmem:[#allocation91_spill] sm:$0xff] %v5557_v48  ;;  %v5561_v31 = vpop.f32.mrb[62].mxu1  ;;  %v5563_v37 = vpop.f32.mrb[63].mxu0  ;;  %v948_v18 = vadd.f32 %v5226_v42, %v5544_v47  ;;  %v1006_v48 = vadd.f32 %v5392_v53, %v5547_v40  ;;  %v563_v42 = vsub.s32 3, %v5520_v15 }
 0x18a   : > { %6373 = vst [vmem:[#allocation92_spill] sm:$0xff] %v5561_v31  ;;  %6374 = vst [vmem:[#allocation93_spill] sm:$0xff] %v5563_v37  ;;  %v5569_v54 = vpop.f32.mrb[63].mxu1  ;;  %v1008_v31 = vadd.f32 %v5396_v61, %v5544_v47  ;;  %v1361_v37 = vmax.f32 %v944_v50, 0.0 }
 0x18b   : > { %6375 = vst [vmem:[#allocation94_spill] sm:$0xff] %v5569_v54  ;;  %v1457_v54 = vmax.f32 %v1004_v63, 0.0  ;;  %v1369_v29 = vmax.f32 %v948_v18, 0.0  ;;  %v1458_v3 = vmax.f32 %v1006_v48, 0.0  ;;  %v956_v48 = vadd.f32 %v5265_v56, %v5547_v40 }
 0x18c   : > { %v1465_v24 = vmax.f32 %v1008_v31, 0.0  ;;  %v1014_v31 = vadd.f32 %v5406_v8, %v5544_v47  ;;  %v1018_v56 = vadd.f32 %v5414_v16, %v5544_v47  ;;  %v1377_v8 = vmax.f32 %v954_v0, 0.0 }
 0x18d   : > { %v5618_v16 = vrot.slane %v5541_v34, %v559_v20  ;;  %v5621_v41 = vrot.slane %v5541_v34, %v563_v42  ;;  %v964_v42 = vadd.f32 %v5292_v2, %v5544_v47 }
 0x18e   : > { %v1668_v1 = vpop.f32.mrb[64].mxu0 }
 0x18f   : > { %v2086_v53 = vmul.f32 %v1668_v1, %v1361_v37  ;;  %v1728_v27 = vpop.f32.mrb[64].mxu1  ;;  %v1670_v49 = vpop.f32.mrb[65].mxu0  ;;  %v1378_v1 = vmax.f32 %v956_v48, 0.0  ;;  %v1473_v37 = vmax.f32 %v1014_v31, 0.0  ;;  %v4473_v48 = vld [vmem:[%s6274_s6 + $0x108] sm:$0xff]  }
 0x190   : > { %v5583_v45 = vmul.f32 %v1728_v27, %v1457_v54  ;;  %v2087_v50 = vmul.f32 %v1670_v49, %v1362_v36  ;;  %v1730_v61 = vpop.f32.mrb[65].mxu1  ;;  %v1672_v13 = vpop.f32.mrb[66].mxu0  ;;  %v958_v54 = vadd.f32 %v5269_v58, %v5544_v47  ;;  %v4469_v58 = vld [vmem:[%s6274_s6 + $0x100] sm:$0xff]  }
 0x191   : > { %v5587_v63 = vmul.f32 %v1730_v61, %v1458_v3  ;;  %v2094_v39 = vmul.f32 %v1672_v13, %v1369_v29  ;;  %v1732_v21 = vpop.f32.mrb[66].mxu1  ;;  %v1674_v18 = vpop.f32.mrb[67].mxu0  ;;  %v960_v29 = vadd.f32 %v5273_v60, %v5547_v40  ;;  %v4472_v60 = vld [vmem:[%s6274_s6 + $0x148] sm:$0xff]  }
 0x192   : > { %v5593_v27 = vmul.f32 %v1732_v21, %v1465_v24  ;;  %v2095_v36 = vmul.f32 %v1674_v18, %v1370_v44  ;;  %v1734_v49 = vpop.f32.mrb[67].mxu1  ;;  %v1474_v44 = vmax.f32 %v1016_v52, 0.0 }
 0x193   : > { %v2214_v3 = vpack.c.bf16 %v2094_v39, %v2086_v53  ;;  %v5599_v13 = vmul.f32 %v1734_v49, %v1466_v51  ;;  %v1020_v39 = vadd.f32 %v5418_v26, %v5547_v40  ;;  %v1385_v53 = vmax.f32 %v958_v54, 0.0 }
 0x194   : > { %v2262_v21 = vpack.c.bf16 %v5593_v27, %v5583_v45  ;;  %v2215_v24 = vpack.c.bf16 %v2095_v36, %v2087_v50  ;;  %v1386_v0 = vmax.f32 %v960_v29, 0.0  ;;  %v1481_v51 = vmax.f32 %v1018_v56, 0.0  ;;  %v4476_v56 = vld [vmem:[%s6274_s6 + $0x150] sm:$0xff]  }
 0x195   : > { %v2263_v11 = vpack.c.bf16 %v5599_v13, %v5587_v63  ;;  %v1482_v31 = vmax.f32 %v1020_v39, 0.0  ;;  %v6393_v63 = vld [vmem:[#allocation41_spill] sm:$0xff] }
 0x196   : > { %v1678_v38 = vpop.f32.mrb[68].mxu0  ;;  %2822 = vmatprep.mubr.bf16.mxu0 %v2215_v24  ;;  %v1057_v24 = vadd.f32 %v5220_v14, %v5618_v16  ;;  %v970_v14 = vadd.f32 %v5307_v10, %v5547_v40 }
 0x197   : > { %v2102_v26 = vmul.f32 %v1678_v38, %v1377_v8  ;;  %v1738_v50 = vpop.f32.mrb[68].mxu1  ;;  %v1680_v61 = vpop.f32.mrb[69].mxu0  ;;  %2823 = vmatmul.mubr.bf16.vlgmr.msra.gmra.mrb[120].mxu0 %v2214_v3 }
 0x198   : > { %v5623_v18 = vmul.f32 %v1738_v50, %v1473_v37  ;;  %v2103_v36 = vmul.f32 %v1680_v61, %v1378_v1  ;;  %v1740_v20 = vpop.f32.mrb[69].mxu1  ;;  %v1682_v49 = vpop.f32.mrb[70].mxu0  ;;  %4161 = vmatpush3.bf16.msra.mxu0 %v4469_v58  ;;  %v966_v58 = vadd.f32 %v5299_v6, %v5547_v40  ;;  %v1059_v1 = vadd.f32 %v5224_v32, %v5621_v41  ;;  %v4477_v32 = vld [vmem:[%s6274_s6 + $0x110] sm:$0xff]  }
 0x199   : > { %v5630_v54 = vmul.f32 %v1740_v20, %v1474_v44  ;;  %v2110_v52 = vmul.f32 %v1682_v49, %v1385_v53  ;;  %v1742_v3 = vpop.f32.mrb[70].mxu1  ;;  %v1684_v29 = vpop.f32.mrb[71].mxu0  ;;  %4162 = vmatprep.subr.bf16.mxu0 %v4472_v60  ;;  %v968_v60 = vadd.f32 %v5303_v7, %v5544_v47  ;;  %v1061_v53 = vadd.f32 %v5228_v43, %v5618_v16  ;;  %v4480_v43 = vld [vmem:[%s6274_s6 + $0x158] sm:$0xff]  }
 0x19a   : > { %v5639_v8 = vmul.f32 %v1742_v3, %v1481_v51  ;;  %v2111_v2 = vmul.f32 %v1684_v29, %v1386_v0  ;;  %v1744_v39 = vpop.f32.mrb[71].mxu1  ;;  %v1063_v7 = vadd.f32 %v5235_v46, %v5621_v41  ;;  %v1363_v10 = vmax.f32 %v1057_v24, 0.0 }
 0x19b   : > { %v2222_v37 = vpack.c.bf16 %v2110_v52, %v2102_v26  ;;  %v5645_v38 = vmul.f32 %v1744_v39, %v1482_v31  ;;  %v1393_v26 = vmax.f32 %v964_v42, 0.0  ;;  %v1394_v61 = vmax.f32 %v966_v58, 0.0 }
 0x19c   : > { %v2270_v6 = vpack.c.bf16 %v5639_v8, %v5623_v18  ;;  %v2223_v44 = vpack.c.bf16 %v2111_v2, %v2103_v36  ;;  %4163 = vmatpush3.bf16.msra.mxu0 %v4473_v48  ;;  %v1364_v51 = vmax.f32 %v1059_v1, 0.0  ;;  %v1401_v36 = vmax.f32 %v968_v60, 0.0 }
 0x19d   : > { %v2271_v50 = vpack.c.bf16 %v5645_v38, %v5630_v54  ;;  %4164 = vmatprep.subr.bf16.mxu0 %v4476_v56  ;;  %v1371_v46 = vmax.f32 %v1061_v53, 0.0  ;;  %v1402_v42 = vmax.f32 %v970_v14, 0.0  ;;  %v4481_v56 = vld [vmem:[%s6274_s6 + $0x118] sm:$0xff]   ;;  %v1372_v24 = vmax.f32 %v1063_v7, 0.0  ;;  %v6402_v54 = vld [vmem:[#allocation24_spill] sm:$0xff] }
 0x19e   : > { %v1688_v0 = vpop.f32.mrb[72].mxu0  ;;  %2830 = vmatprep.mubr.bf16.mxu0 %v2223_v44  ;;  %v974_v58 = vadd.f32 %v5328_v19, %v5544_v47  ;;  %v1067_v53 = vadd.f32 %v5263_v55, %v5618_v16  ;;  %v976_v14 = vadd.f32 %v5332_v22, %v5547_v40  ;;  %v1069_v19 = vadd.f32 %v5267_v57, %v5621_v41  ;;  %v4485_v22 = vld [vmem:[%s6274_s6 + $0x120] sm:$0xff]  }
 0x19f   : > { %v2118_v20 = vmul.f32 %v1688_v0, %v1393_v26  ;;  %v1781_v49 = vpop.f32.mrb[72].mxu1  ;;  %v1690_v48 = vpop.f32.mrb[73].mxu0  ;;  %2831 = vmatmul.mubr.bf16.gmra.mrb[124].mxu0 %v2222_v37  ;;  %v4484_v37 = vld [vmem:[%s6274_s6 + $0x160] sm:$0xff]   ;;  %v978_v26 = vadd.f32 %v5336_v23, %v5544_v47  ;;  %v980_v55 = vadd.f32 %v5340_v25, %v5547_v40  ;;  %v1073_v57 = vadd.f32 %v5278_v62, %v5621_v41 }
 0x1a0   : > { %v2088_v31 = vmul.f32 %v1781_v49, %v1363_v10  ;;  %v2119_v52 = vmul.f32 %v1690_v48, %v1394_v61  ;;  %v1783_v3 = vpop.f32.mrb[73].mxu1  ;;  %v1692_v29 = vpop.f32.mrb[74].mxu0  ;;  %4165 = vmatpush3.bf16.msra.mxu0 %v4477_v32  ;;  %v1071_v61 = vadd.f32 %v5271_v59, %v5618_v16  ;;  %v4488_v59 = vld [vmem:[%s6274_s6 + $0x168] sm:$0xff]   ;;  %v1379_v25 = vmax.f32 %v1067_v53, 0.0 }
 0x1a1   : > { %v2089_v2 = vmul.f32 %v1783_v3, %v1364_v51  ;;  %v2126_v39 = vmul.f32 %v1692_v29, %v1401_v36  ;;  %v1785_v1 = vpop.f32.mrb[74].mxu1  ;;  %v1694_v60 = vpop.f32.mrb[75].mxu0  ;;  %4166 = vmatprep.subr.bf16.mxu0 %v4480_v43  ;;  %v1409_v36 = vmax.f32 %v974_v58, 0.0  ;;  %v1410_v49 = vmax.f32 %v976_v14, 0.0 }
 0x1a2   : > { %v2096_v44 = vmul.f32 %v1785_v1, %v1371_v46  ;;  %v2127_v32 = vmul.f32 %v1694_v60, %v1402_v42  ;;  %v1787_v7 = vpop.f32.mrb[75].mxu1  ;;  %v4474_v46 = vld [vmem:[%s6274_s6 + $0x1c8] sm:$0xff]   ;;  %v1380_v62 = vmax.f32 %v1069_v19, 0.0  ;;  %v1417_v42 = vmax.f32 %v978_v26, 0.0  ;;  %v4490_v19 = vld [vmem:[%s6274_s6 + $0x170] sm:$0xff]  }
 0x1a3   : > { %v2230_v43 = vpack.c.bf16 %v2126_v39, %v2118_v20  ;;  %v2097_v10 = vmul.f32 %v1787_v7, %v1372_v24  ;;  %v4471_v20 = vld [vmem:[%s6274_s6 + $0x180] sm:$0xff]   ;;  %v1387_v29 = vmax.f32 %v1071_v61, 0.0  ;;  %v4489_v1 = vld [vmem:[%s6274_s6 + $0x128] sm:$0xff]   ;;  %v1388_v60 = vmax.f32 %v1073_v57, 0.0 }
 0x1a4   : > { %v2216_v0 = vpack.c.bf16 %v2096_v44, %v2088_v31  ;;  %v2231_v51 = vpack.c.bf16 %v2127_v32, %v2119_v52  ;;  %4167 = vmatpush3.bf16.msra.mxu0 %v4481_v56  ;;  %v1418_v56 = vmax.f32 %v980_v55, 0.0  ;;  %v4475_v7 = vld [vmem:[%s6274_s6 + $0x188] sm:$0xff]   ;;  %v1077_v26 = vadd.f32 %v5297_v5, %v5618_v16  ;;  %v4478_v55 = vld [vmem:[%s6274_s6 + $0x1d0] sm:$0xff]  }
 0x1a5   : > { %v2217_v23 = vpack.c.bf16 %v2097_v10, %v2089_v2  ;;  %4168 = vmatprep.subr.bf16.mxu0 %v4484_v37  ;;  %v984_v37 = vadd.f32 %v5350_v28, %v5544_v47  ;;  %v986_v28 = vadd.f32 %v5354_v30, %v5547_v40  ;;  %v1081_v5 = vadd.f32 %v5305_v9, %v5618_v16  ;;  %v4479_v9 = vld [vmem:[%s6274_s6 + $0x190] sm:$0xff]  }
 0x1a6   : > { %v1698_v48 = vpop.f32.mrb[76].mxu0  ;;  %2838 = vmatprep.mubr.bf16.mxu0 %v2231_v51  ;;  %v988_v51 = vadd.f32 %v5358_v33, %v5544_v47  ;;  %v990_v30 = vadd.f32 %v5362_v35, %v5547_v40  ;;  %v4494_v35 = vld [vmem:[%s6274_s6 + $0x178] sm:$0xff]   ;;  %v1119_v38 = vadd.f32 %v6402_v54, %v5621_v41  ;;  %v6412_v54 = vld [vmem:[#allocation29_spill] sm:$0xff] }
 0x1a7   : > { %v2134_v31 = vmul.f32 %v1698_v48, %v1409_v36  ;;  %v1791_v52 = vpop.f32.mrb[76].mxu1  ;;  %2919 = vmatprep.mubr.bf16.mxu1 %v2217_v23  ;;  %v1700_v3 = vpop.f32.mrb[77].mxu0  ;;  %2839 = vmatmul.mubr.bf16.gmra.mrb[128].mxu0 %v2230_v43  ;;  %v567_v48 = vsub.s32 4, %v5520_v15 }
 0x1a8   : > { %v2104_v24 = vmul.f32 %v1791_v52, %v1379_v25  ;;  %v2135_v58 = vmul.f32 %v1700_v3, %v1410_v49  ;;  %v1793_v2 = vpop.f32.mrb[77].mxu1  ;;  %2920 = vmatmul.mubr.bf16.vlgmr.msra.gmra.mrb[136].mxu1 %v2216_v0  ;;  %v1702_v39 = vpop.f32.mrb[78].mxu0  ;;  %4169 = vmatpush3.bf16.msra.mxu0 %v4485_v22  ;;  %v1079_v0 = vadd.f32 %v5301_v4, %v5621_v41  ;;  %v1395_v25 = vmax.f32 %v1077_v26, 0.0  ;;  %v6376_v26 = vld [vmem:[#allocation8_spill] sm:$0xff] }
 0x1a9   : > { %v2105_v53 = vmul.f32 %v1793_v2, %v1380_v62  ;;  %v2142_v14 = vmul.f32 %v1702_v39, %v1417_v42  ;;  %v1795_v44 = vpop.f32.mrb[78].mxu1  ;;  %4225 = vmatpush3.bf16.msra.mxu1 %v4471_v20  ;;  %v1704_v32 = vpop.f32.mrb[79].mxu0  ;;  %4170 = vmatprep.subr.bf16.mxu0 %v4488_v59  ;;  %v4492_v20 = vld [vmem:[%s6274_s6 + $0x130] sm:$0xff]   ;;  %v1083_v4 = vadd.f32 %v5312_v12, %v5621_v41  ;;  %v1425_v59 = vmax.f32 %v984_v37, 0.0  ;;  %v4482_v12 = vld [vmem:[%s6274_s6 + $0x1d8] sm:$0xff]  }
 0x1aa   : > { %v2112_v43 = vmul.f32 %v1795_v44, %v1387_v29  ;;  %v2143_v10 = vmul.f32 %v1704_v32, %v1418_v56  ;;  %v1797_v61 = vpop.f32.mrb[79].mxu1  ;;  %4226 = vmatprep.subr.bf16.mxu1 %v4474_v46  ;;  %v1426_v49 = vmax.f32 %v986_v28, 0.0  ;;  %v1396_v62 = vmax.f32 %v1079_v0, 0.0 }
 0x1ab   : > { %v2238_v22 = vpack.c.bf16 %v2142_v14, %v2134_v31  ;;  %v2113_v57 = vmul.f32 %v1797_v61, %v1388_v60  ;;  %v1433_v42 = vmax.f32 %v988_v51, 0.0  ;;  %v571_v31 = vsub.s32 5, %v5520_v15  ;;  %v4495_v60 = vld [vmem:[%s6274_s6 + $0x138] sm:$0xff]   ;;  %v6378_v51 = vld [vmem:[#allocation9_spill] sm:$0xff] }
 0x1ac   : > { %v2224_v36 = vpack.c.bf16 %v2112_v43, %v2104_v24  ;;  %v2239_v23 = vpack.c.bf16 %v2143_v10, %v2135_v58  ;;  %4171 = vmatpush3.bf16.msra.mxu0 %v4489_v1  ;;  %v1403_v56 = vmax.f32 %v1081_v5, 0.0  ;;  %v1434_v24 = vmax.f32 %v990_v30, 0.0  ;;  %v6377_v43 = vld [vmem:[#allocation17_spill] sm:$0xff] }
 0x1ad   : > { %v2225_v33 = vpack.c.bf16 %v2113_v57, %v2105_v53  ;;  %4227 = vmatpush3.bf16.msra.mxu1 %v4475_v7  ;;  %4172 = vmatprep.subr.bf16.mxu0 %v4490_v19  ;;  %v1404_v37 = vmax.f32 %v1083_v4, 0.0  ;;  %v994_v53 = vadd.f32 %v5369_v17, %v5544_v47  ;;  %v4483_v19 = vld [vmem:[%s6274_s6 + $0x198] sm:$0xff]   ;;  %v1087_v28 = vadd.f32 %v6376_v26, %v5618_v16  ;;  %v4486_v17 = vld [vmem:[%s6274_s6 + $0x1e0] sm:$0xff]   ;;  %v6381_v4 = vld [vmem:[#allocation21_spill] sm:$0xff] }
 0x1ae   : > { %v1708_v46 = vpop.f32.mrb[80].mxu0  ;;  %2846 = vmatprep.mubr.bf16.mxu0 %v2239_v23  ;;  %4228 = vmatprep.subr.bf16.mxu1 %v4478_v55  ;;  %v996_v10 = vadd.f32 %v6377_v43, %v5547_v40  ;;  %v6379_v57 = vld [vmem:[#allocation19_spill] sm:$0xff]  ;;  %v6380_v23 = vld [vmem:[#allocation10_spill] sm:$0xff]  ;;  %v6384_v43 = vld [vmem:[#allocation12_spill] sm:$0xff] }
 0x1af   : > { %v2150_v52 = vmul.f32 %v1708_v46, %v1425_v59  ;;  %v1801_v3 = vpop.f32.mrb[80].mxu1  ;;  %2927 = vmatprep.mubr.bf16.mxu1 %v2225_v33  ;;  %v1710_v29 = vpop.f32.mrb[81].mxu0  ;;  %2847 = vmatmul.mubr.bf16.gmra.mrb[132].mxu0 %v2238_v22  ;;  %v1089_v22 = vadd.f32 %v6378_v51, %v5621_v41  ;;  %v998_v5 = vadd.f32 %v6379_v57, %v5544_v47  ;;  %v4487_v47 = vld [vmem:[%s6274_s6 + $0x1a0] sm:$0xff]   ;;  %v6386_v57 = vld [vmem:[#allocation13_spill] sm:$0xff] }
 0x1b0   : > { %v2120_v58 = vmul.f32 %v1801_v3, %v1395_v25  ;;  %v2151_v2 = vmul.f32 %v1710_v29, %v1426_v49  ;;  %v1803_v39 = vpop.f32.mrb[81].mxu1  ;;  %2928 = vmatmul.mubr.bf16.gmra.mrb[140].mxu1 %v2224_v36  ;;  %v1712_v1 = vpop.f32.mrb[82].mxu0  ;;  %4173 = vmatpush3.bf16.msra.mxu0 %v4492_v20  ;;  %v1091_v20 = vadd.f32 %v6380_v23, %v5618_v16  ;;  %v1441_v49 = vmax.f32 %v994_v53, 0.0  ;;  %v4491_v3 = vld [vmem:[%s6274_s6 + $0x1e8] sm:$0xff]  }
 0x1b1   : > { %v2121_v14 = vmul.f32 %v1803_v39, %v1396_v62  ;;  %v2158_v44 = vmul.f32 %v1712_v1, %v1433_v42  ;;  %v1805_v32 = vpop.f32.mrb[82].mxu1  ;;  %v1714_v7 = vpop.f32.mrb[83].mxu0  ;;  %4229 = vmatpush3.bf16.msra.mxu1 %v4479_v9  ;;  %4174 = vmatprep.subr.bf16.mxu0 %v4494_v35  ;;  %v1000_v59 = vadd.f32 %v6381_v4, %v5547_v40  ;;  %v6382_v35 = vld [vmem:[#allocation11_spill] sm:$0xff]  ;;  %v1411_v62 = vmax.f32 %v1087_v28, 0.0  ;;  %v4493_v28 = vld [vmem:[%s6274_s6 + $0x1a8] sm:$0xff]   ;;  %v6388_v4 = vld [vmem:[#allocation14_spill] sm:$0xff] }
 0x1b2   : > { %v2128_v61 = vmul.f32 %v1805_v32, %v1403_v56  ;;  %v2159_v55 = vmul.f32 %v1714_v7, %v1434_v24  ;;  %v1807_v0 = vpop.f32.mrb[83].mxu1  ;;  %4230 = vmatprep.subr.bf16.mxu1 %v4482_v12  ;;  %v1093_v25 = vadd.f32 %v6382_v35, %v5621_v41  ;;  %v5765_v46 = vrot.slane %v5541_v34, %v567_v48 }
 0x1b3   : > { %v2246_v30 = vpack.c.bf16 %v2158_v44, %v2150_v52  ;;  %v2129_v36 = vmul.f32 %v1807_v0, %v1404_v37  ;;  %v1442_v42 = vmax.f32 %v996_v10, 0.0  ;;  %v5771_v40 = vrot.slane %v5541_v34, %v571_v31 }
 0x1b4   : > { %v2232_v33 = vpack.c.bf16 %v2128_v61, %v2120_v58  ;;  %v2247_v9 = vpack.c.bf16 %v2159_v55, %v2151_v2  ;;  %4175 = vmatpush3.bf16.msra.mxu0 %v4495_v60  ;;  %v1412_v48 = vmax.f32 %v1089_v22, 0.0  ;;  %v1449_v29 = vmax.f32 %v998_v5, 0.0  ;;  %v6385_v61 = vld [vmem:[#allocation33_spill] sm:$0xff] }
 0x1b5   : > { %v2233_v12 = vpack.c.bf16 %v2129_v36, %v2121_v14  ;;  %4231 = vmatpush3.bf16.msra.mxu1 %v4483_v19  ;;  %v1419_v2 = vmax.f32 %v1091_v20, 0.0  ;;  %v1450_v39 = vmax.f32 %v1000_v59, 0.0  ;;  %v1420_v53 = vmax.f32 %v1093_v25, 0.0  ;;  %v6383_v14 = vld [vmem:[#allocation31_spill] sm:$0xff]  ;;  %v4496_v22 = vld [vmem:[%s6274_s6 + $0x1f0] sm:$0xff]  }
 0x1b6   : > { %v1718_v52 = vpop.f32.mrb[84].mxu0  ;;  %2854 = vmatprep.mubr.bf16.mxu0 %v2247_v9  ;;  %4232 = vmatprep.subr.bf16.mxu1 %v4486_v17  ;;  %v1170_v44 = vadd.f32 %v6383_v14, %v5765_v46  ;;  %v1097_v10 = vadd.f32 %v6384_v43, %v5618_v16  ;;  %v1172_v55 = vadd.f32 %v6385_v61, %v5771_v40  ;;  %v6392_v61 = vld [vmem:[#allocation16_spill] sm:$0xff] }
 0x1b7   : > { %v2166_v56 = vmul.f32 %v1718_v52, %v1441_v49  ;;  %v1811_v24 = vpop.f32.mrb[84].mxu1  ;;  %2935 = vmatprep.mubr.bf16.mxu1 %v2233_v12  ;;  %v1720_v58 = vpop.f32.mrb[85].mxu0  ;;  %2855 = vmatmul.mubr.bf16.gmra.mrb[136].mxu0 %v2246_v30  ;;  %v1099_v5 = vadd.f32 %v6386_v57, %v5621_v41  ;;  %v6387_v30 = vld [vmem:[#allocation35_spill] sm:$0xff]  ;;  %v1101_v59 = vadd.f32 %v6388_v4, %v5618_v16  ;;  %v6397_v4 = vld [vmem:[#allocation45_spill] sm:$0xff] }
 0x1b8   : > { %v2136_v1 = vmul.f32 %v1811_v24, %v1411_v62  ;;  %v2167_v60 = vmul.f32 %v1720_v58, %v1442_v42  ;;  %v1813_v31 = vpop.f32.mrb[85].mxu1  ;;  %2936 = vmatmul.mubr.bf16.gmra.mrb[144].mxu1 %v2232_v33  ;;  %v1722_v37 = vpop.f32.mrb[86].mxu0  ;;  %v1174_v36 = vadd.f32 %v6387_v30, %v5765_v46  ;;  %v6389_v33 = vld [vmem:[#allocation37_spill] sm:$0xff]  ;;  %v6390_v49 = vld [vmem:[#allocation15_spill] sm:$0xff]  ;;  %v1427_v52 = vmax.f32 %v1097_v10, 0.0 }
 0x1b9   : > { %v2137_v32 = vmul.f32 %v1813_v31, %v1412_v48  ;;  %v2174_v7 = vmul.f32 %v1722_v37, %v1449_v29  ;;  %v1815_v19 = vpop.f32.mrb[86].mxu1  ;;  %v1724_v26 = vpop.f32.mrb[87].mxu0  ;;  %4233 = vmatpush3.bf16.msra.mxu1 %v4487_v47  ;;  %v1176_v9 = vadd.f32 %v6389_v33, %v5771_v40  ;;  %v1103_v12 = vadd.f32 %v6390_v49, %v5621_v41  ;;  %v4497_v42 = vld [vmem:[%s6274_s6 + $0x1b0] sm:$0xff]   ;;  %v4498_v29 = vld [vmem:[%s6274_s6 + $0x1f8] sm:$0xff]  }
 0x1ba   : > { %v2144_v0 = vmul.f32 %v1815_v19, %v1419_v2  ;;  %v2175_v17 = vmul.f32 %v1724_v26, %v1450_v39  ;;  %v1817_v51 = vpop.f32.mrb[87].mxu1  ;;  %4234 = vmatprep.subr.bf16.mxu1 %v4491_v3  ;;  %v1365_v47 = vmax.f32 %v1170_v44, 0.0  ;;  %v1366_v3 = vmax.f32 %v1172_v55, 0.0  ;;  %v4499_v10 = vld [vmem:[%s6274_s6 + $0x1b8] sm:$0xff]  }
 0x1bb   : > { %v2254_v23 = vpack.c.bf16 %v2174_v7, %v2166_v56  ;;  %v2145_v20 = vmul.f32 %v1817_v51, %v1420_v53  ;;  %v1428_v56 = vmax.f32 %v1099_v5, 0.0  ;;  %v1373_v24 = vmax.f32 %v1174_v36, 0.0  ;;  %v6394_v51 = vld [vmem:[#allocation18_spill] sm:$0xff]  ;;  %v6395_v57 = vld [vmem:[#allocation43_spill] sm:$0xff] }
 0x1bc   : > { %v2240_v35 = vpack.c.bf16 %v2144_v0, %v2136_v1  ;;  %v2255_v25 = vpack.c.bf16 %v2175_v17, %v2167_v60  ;;  %v1435_v1 = vmax.f32 %v1101_v59, 0.0  ;;  %v1374_v60 = vmax.f32 %v1176_v9, 0.0 }
 0x1bd   : > { %v2241_v62 = vpack.c.bf16 %v2145_v20, %v2137_v32  ;;  %4235 = vmatpush3.bf16.msra.mxu1 %v4493_v28  ;;  %v1436_v44 = vmax.f32 %v1103_v12, 0.0  ;;  %v6391_v32 = vld [vmem:[#allocation39_spill] sm:$0xff]  ;;  %v1107_v55 = vadd.f32 %v6392_v61, %v5618_v16  ;;  %v1182_v13 = vadd.f32 %v6393_v63, %v5771_v40 }
 0x1be   : > { %v1894_v48 = vpop.f32.mrb[88].mxu0  ;;  %2862 = vmatprep.mubr.bf16.mxu0 %v2255_v25  ;;  %4236 = vmatprep.subr.bf16.mxu1 %v4496_v22  ;;  %v1180_v7 = vadd.f32 %v6391_v32, %v5765_v46  ;;  %v1109_v22 = vadd.f32 %v6394_v51, %v5621_v41  ;;  %v1184_v5 = vadd.f32 %v6395_v57, %v5765_v46 }
 0x1bf   : > { %v1821_v58 = vpop.f32.mrb[88].mxu1  ;;  %v5804_v2 = vmul.f32 %v1894_v48, %v1365_v47  ;;  %2943 = vmatprep.mubr.bf16.mxu1 %v2241_v62  ;;  %v1896_v39 = vpop.f32.mrb[89].mxu0  ;;  %2863 = vmatmul.mubr.bf16.gmra.mrb[140].mxu0 %v2254_v23  ;;  %v6396_v23 = vld [vmem:[#allocation20_spill] sm:$0xff]  ;;  %v1186_v59 = vadd.f32 %v6397_v4, %v5771_v40  ;;  %v1443_v47 = vmax.f32 %v1107_v55, 0.0  ;;  %v1382_v62 = vmax.f32 %v1182_v13, 0.0 }
 0x1c0   : > { %v2152_v31 = vmul.f32 %v1821_v58, %v1427_v52  ;;  %v1823_v37 = vpop.f32.mrb[89].mxu1  ;;  %v5806_v53 = vmul.f32 %v1896_v39, %v1366_v3  ;;  %2944 = vmatmul.mubr.bf16.gmra.mrb[148].mxu1 %v2240_v35  ;;  %v1898_v14 = vpop.f32.mrb[90].mxu0  ;;  %2870 = vmatprep.mubr.bf16.mxu0 %v2263_v11  ;;  %v1111_v20 = vadd.f32 %v6396_v23, %v5618_v16  ;;  %v6398_v35 = vld [vmem:[#allocation22_spill] sm:$0xff]  ;;  %v1381_v49 = vmax.f32 %v1180_v7, 0.0 }
 0x1c1   : > { %v2153_v19 = vmul.f32 %v1823_v37, %v1428_v56  ;;  %v1825_v26 = vpop.f32.mrb[90].mxu1  ;;  %v5813_v28 = vmul.f32 %v1898_v14, %v1373_v24  ;;  %v1900_v43 = vpop.f32.mrb[91].mxu0  ;;  %4237 = vmatpush3.bf16.msra.mxu1 %v4497_v42  ;;  %v1113_v25 = vadd.f32 %v6398_v35, %v5621_v41  ;;  %v1444_v52 = vmax.f32 %v1109_v22, 0.0  ;;  %v6399_v14 = vld [vmem:[#allocation47_spill] sm:$0xff]  ;;  %v6405_v22 = vld [vmem:[#allocation53_spill] sm:$0xff]  ;;  %v6406_v23 = vld [vmem:[#allocation26_spill] sm:$0xff] }
 0x1c2   : > { %v2160_v11 = vmul.f32 %v1825_v26, %v1435_v1  ;;  %v1827_v0 = vpop.f32.mrb[91].mxu1  ;;  %v5822_v17 = vmul.f32 %v1900_v43, %v1374_v60  ;;  %4238 = vmatprep.subr.bf16.mxu1 %v4498_v29  ;;  %v1389_v3 = vmax.f32 %v1184_v5, 0.0  ;;  %v1451_v24 = vmax.f32 %v1111_v20, 0.0  ;;  %v6401_v26 = vld [vmem:[#allocation49_spill] sm:$0xff] }
 0x1c3   : > { %v2218_v30 = vpack.c.bf16 %v5813_v28, %v5804_v2  ;;  %v2161_v36 = vmul.f32 %v1827_v0, %v1436_v44  ;;  %v1390_v58 = vmax.f32 %v1186_v59, 0.0  ;;  %v1452_v37 = vmax.f32 %v1113_v25, 0.0  ;;  %v6404_v0 = vld [vmem:[#allocation25_spill] sm:$0xff] }
 0x1c4   : > { %v2248_v33 = vpack.c.bf16 %v2160_v11, %v2152_v31  ;;  %v2219_v9 = vpack.c.bf16 %v5822_v17, %v5806_v53  ;;  %v1190_v44 = vadd.f32 %v6399_v14, %v5765_v46  ;;  %v1192_v43 = vadd.f32 %v6401_v26, %v5771_v40  ;;  %v6410_v53 = vld [vmem:[#allocation28_spill] sm:$0xff] }
 0x1c5   : > { %v2249_v12 = vpack.c.bf16 %v2161_v36, %v2153_v19  ;;  %4239 = vmatpush3.bf16.msra.mxu1 %v4499_v10  ;;  %v1121_v51 = vadd.f32 %v6404_v0, %v5618_v16  ;;  %v1196_v57 = vadd.f32 %v6405_v22, %v5771_v40  ;;  %v1123_v20 = vadd.f32 %v6406_v23, %v5621_v41 }
 0x1c6   : > { %v1904_v42 = vpop.f32.mrb[92].mxu0  ;;  %v1397_v4 = vmax.f32 %v1190_v44, 0.0  ;;  %v575_v35 = vsub.s32 6, %v5520_v15  ;;  %v1398_v25 = vmax.f32 %v1192_v43, 0.0  ;;  %v1129_v17 = vadd.f32 %v6410_v53, %v5621_v41 }
 0x1c7   : > { %v1831_v48 = vpop.f32.mrb[92].mxu1  ;;  %v5838_v29 = vmul.f32 %v1904_v42, %v1381_v49  ;;  %2951 = vmatprep.mubr.bf16.mxu1 %v2249_v12  ;;  %v1906_v56 = vpop.f32.mrb[93].mxu0  ;;  %2871 = vmatmul.mubr.bf16.gmra.mrb[144].mxu0 %v2262_v21  ;;  %v6400_v21 = vld [vmem:[#allocation23_spill] sm:$0xff]  ;;  %v1460_v12 = vmax.f32 %v1119_v38, 0.0  ;;  %v1131_v38 = vadd.f32 %v6412_v54, %v5618_v16 }
 0x1c8   : > { %v2168_v39 = vmul.f32 %v1831_v48, %v1443_v47  ;;  %v1833_v1 = vpop.f32.mrb[93].mxu1  ;;  %v5843_v60 = vmul.f32 %v1906_v56, %v1382_v62  ;;  %2952 = vmatmul.mubr.bf16.gmra.mrb[152].mxu1 %v2248_v33  ;;  %v1908_v31 = vpop.f32.mrb[94].mxu0  ;;  %2878 = vmatprep.mubr.bf16.mxu0 %v2271_v50  ;;  %v1117_v19 = vadd.f32 %v6400_v21, %v5618_v16  ;;  %v6403_v50 = vld [vmem:[#allocation51_spill] sm:$0xff]  ;;  %v579_v47 = vsub.s32 7, %v5520_v15 }
 0x1c9   : > { %v2169_v32 = vmul.f32 %v1833_v1, %v1444_v52  ;;  %v1835_v7 = vpop.f32.mrb[94].mxu1  ;;  %v5850_v45 = vmul.f32 %v1908_v31, %v1389_v3  ;;  %v1910_v27 = vpop.f32.mrb[95].mxu0  ;;  %v1194_v63 = vadd.f32 %v6403_v50, %v5765_v46  ;;  %v1467_v48 = vmax.f32 %v1121_v51, 0.0  ;;  %v6407_v31 = vld [vmem:[#allocation55_spill] sm:$0xff]  ;;  %v6413_v50 = vld [vmem:[#allocation61_spill] sm:$0xff]  ;;  %v6414_v51 = vld [vmem:[#allocation30_spill] sm:$0xff] }
 0x1ca   : > { %v2176_v10 = vmul.f32 %v1835_v7, %v1451_v24  ;;  %v1837_v61 = vpop.f32.mrb[95].mxu1  ;;  %v5856_v55 = vmul.f32 %v1910_v27, %v1390_v58  ;;  %v1459_v33 = vmax.f32 %v1117_v19, 0.0  ;;  %v1406_v56 = vmax.f32 %v1196_v57, 0.0  ;;  %v6409_v7 = vld [vmem:[#allocation57_spill] sm:$0xff] }
 0x1cb   : > { %v2226_v13 = vpack.c.bf16 %v5850_v45, %v5838_v29  ;;  %v2177_v11 = vmul.f32 %v1837_v61, %v1452_v37  ;;  %v1405_v62 = vmax.f32 %v1194_v63, 0.0  ;;  %v1468_v15 = vmax.f32 %v1123_v20, 0.0  ;;  %v6424_v29 = vld [vmem:[#allocation40_spill] sm:$0xff] }
 0x1cc   : > { %v2256_v5 = vpack.c.bf16 %v2176_v10, %v2168_v39  ;;  %v2227_v36 = vpack.c.bf16 %v5856_v55, %v5843_v60  ;;  %v1200_v37 = vadd.f32 %v6407_v31, %v5765_v46  ;;  %v1202_v27 = vadd.f32 %v6409_v7, %v5771_v40  ;;  %v6418_v60 = vld [vmem:[#allocation34_spill] sm:$0xff]  ;;  %v6420_v7 = vld [vmem:[#allocation36_spill] sm:$0xff] }
 0x1cd   : > { %v2257_v59 = vpack.c.bf16 %v2177_v11, %v2169_v32  ;;  %v1206_v63 = vadd.f32 %v6413_v50, %v5771_v40  ;;  %v1133_v22 = vadd.f32 %v6414_v51, %v5621_v41  ;;  %v5909_v20 = vrot.slane %v5541_v34, %v575_v35 }
 0x1ce   : > { %v1914_v49 = vpop.f32.mrb[96].mxu0  ;;  %v1413_v57 = vmax.f32 %v1200_v37, 0.0  ;;  %v1483_v41 = vmax.f32 %v1131_v38, 0.0 }
 0x1cf   : > { %v1841_v42 = vpop.f32.mrb[96].mxu1  ;;  %v5874_v52 = vmul.f32 %v1914_v49, %v1397_v4  ;;  %2959 = vmatprep.mubr.bf16.mxu1 %v2257_v59  ;;  %v1916_v3 = vpop.f32.mrb[97].mxu0  ;;  %2879 = vmatmul.mubr.bf16.gmra.mrb[148].mxu0 %v2270_v6  ;;  %v6408_v6 = vld [vmem:[#allocation27_spill] sm:$0xff]  ;;  %v1414_v4 = vmax.f32 %v1202_v27, 0.0  ;;  %v1287_v27 = vadd.f32 %v6420_v7, %v5909_v20  ;;  %v1293_v45 = vadd.f32 %v6424_v29, %v5909_v20 }
 0x1d0   : > { %v2184_v24 = vmul.f32 %v1841_v42, %v1459_v33  ;;  %v1843_v58 = vpop.f32.mrb[97].mxu1  ;;  %v5879_v39 = vmul.f32 %v1916_v3, %v1398_v25  ;;  %2960 = vmatmul.mubr.bf16.gmra.mrb[156].mxu1 %v2256_v5  ;;  %v1918_v1 = vpop.f32.mrb[98].mxu0  ;;  %3016 = vmatprep.mubr.bf16.mxu0 %v2219_v9  ;;  %v1127_v32 = vadd.f32 %v6408_v6, %v5618_v16  ;;  %v6411_v9 = vld [vmem:[#allocation59_spill] sm:$0xff]  ;;  %v1476_v33 = vmax.f32 %v1129_v17, 0.0  ;;  %v6422_v17 = vld [vmem:[#allocation38_spill] sm:$0xff] }
 0x1d1   : > { %v2185_v14 = vmul.f32 %v1843_v58, %v1460_v12  ;;  %v1845_v44 = vpop.f32.mrb[98].mxu1  ;;  %v5886_v18 = vmul.f32 %v1918_v1, %v1405_v62  ;;  %v1920_v8 = vpop.f32.mrb[99].mxu0  ;;  %v1204_v43 = vadd.f32 %v6411_v9, %v5765_v46  ;;  %v5912_v16 = vrot.slane %v5541_v34, %v579_v47  ;;  %v6415_v47 = vld [vmem:[#allocation63_spill] sm:$0xff] }
 0x1d2   : > { %v2192_v21 = vmul.f32 %v1845_v44, %v1467_v48  ;;  %v1847_v19 = vpop.f32.mrb[99].mxu1  ;;  %v5892_v26 = vmul.f32 %v1920_v8, %v1406_v56  ;;  %v1475_v23 = vmax.f32 %v1127_v32, 0.0  ;;  %v1422_v42 = vmax.f32 %v1206_v63, 0.0 }
 0x1d3   : > { %v2234_v10 = vpack.c.bf16 %v5886_v18, %v5874_v52  ;;  %v2193_v61 = vmul.f32 %v1847_v19, %v1468_v15  ;;  %v1421_v25 = vmax.f32 %v1204_v43, 0.0  ;;  %v1484_v34 = vmax.f32 %v1133_v22, 0.0  ;;  %v6417_v15 = vld [vmem:[#allocation65_spill] sm:$0xff]  ;;  %v6432_v52 = vld [vmem:[#allocation48_spill] sm:$0xff] }
 0x1d4   : > { %v2264_v11 = vpack.c.bf16 %v2192_v21, %v2184_v24  ;;  %v2235_v0 = vpack.c.bf16 %v5892_v26, %v5879_v39  ;;  %v1210_v24 = vadd.f32 %v6415_v47, %v5765_v46  ;;  %v1212_v31 = vadd.f32 %v6417_v15, %v5771_v40  ;;  %v6421_v21 = vld [vmem:[#allocation69_spill] sm:$0xff]  ;;  %v6428_v15 = vld [vmem:[#allocation44_spill] sm:$0xff] }
 0x1d5   : > { %v2265_v5 = vpack.c.bf16 %v2193_v61, %v2185_v14  ;;  %v1285_v55 = vadd.f32 %v6418_v60, %v5912_v16  ;;  %v1216_v19 = vadd.f32 %v6421_v21, %v5771_v40  ;;  %v1289_v9 = vadd.f32 %v6422_v17, %v5912_v16 }
 0x1d6   : > { %v1924_v59 = vpop.f32.mrb[100].mxu0  ;;  %v1429_v43 = vmax.f32 %v1210_v24, 0.0  ;;  %v1430_v38 = vmax.f32 %v1212_v31, 0.0  ;;  %v1297_v31 = vadd.f32 %v6428_v15, %v5909_v20  ;;  %v1383_v7 = vmax.f32 %v1293_v45, 0.0 }
 0x1d7   : > { %v1851_v49 = vpop.f32.mrb[100].mxu1  ;;  %v5914_v12 = vmul.f32 %v1924_v59, %v1413_v57  ;;  %2967 = vmatprep.mubr.bf16.mxu1 %v2265_v5  ;;  %v1926_v62 = vpop.f32.mrb[101].mxu0  ;;  %3017 = vmatmul.mubr.bf16.vlgmr.msra.gmra.mrb[152].mxu0 %v2218_v30  ;;  %v6416_v30 = vld [vmem:[#allocation32_spill] sm:$0xff]  ;;  %v1368_v63 = vmax.f32 %v1285_v55, 0.0  ;;  %v1375_v5 = vmax.f32 %v1287_v27, 0.0  ;;  %v6430_v55 = vld [vmem:[#allocation46_spill] sm:$0xff]  ;;  %v1303_v18 = vadd.f32 %v6432_v52, %v5909_v20 }
 0x1d8   : > { %v2200_v35 = vmul.f32 %v1851_v49, %v1475_v23  ;;  %v1853_v3 = vpop.f32.mrb[101].mxu1  ;;  %v5919_v48 = vmul.f32 %v1926_v62, %v1414_v4  ;;  %2968 = vmatmul.mubr.bf16.gmra.mrb[160].mxu1 %v2264_v11  ;;  %v1928_v56 = vpop.f32.mrb[102].mxu0  ;;  %3024 = vmatprep.mubr.bf16.mxu0 %v2227_v36  ;;  %v1283_v1 = vadd.f32 %v6416_v30, %v5909_v20  ;;  %v6419_v36 = vld [vmem:[#allocation67_spill] sm:$0xff]  ;;  %v1438_v23 = vmax.f32 %v1216_v19, 0.0 }
 0x1d9   : > { %v2201_v58 = vmul.f32 %v1853_v3, %v1476_v33  ;;  %v1855_v39 = vpop.f32.mrb[102].mxu1  ;;  %v5926_v2 = vmul.f32 %v1928_v56, %v1421_v25  ;;  %v1930_v28 = vpop.f32.mrb[103].mxu0  ;;  %v1214_v8 = vadd.f32 %v6419_v36, %v5765_v46  ;;  %v1376_v49 = vmax.f32 %v1289_v9, 0.0  ;;  %v6423_v62 = vld [vmem:[#allocation71_spill] sm:$0xff] }
 0x1da   : > { %v2208_v37 = vmul.f32 %v1855_v39, %v1483_v41  ;;  %v1857_v14 = vpop.f32.mrb[103].mxu1  ;;  %v5932_v44 = vmul.f32 %v1930_v28, %v1422_v42  ;;  %v1367_v54 = vmax.f32 %v1283_v1, 0.0  ;;  %v1220_v41 = vadd.f32 %v6423_v62, %v5765_v46  ;;  %v6427_v39 = vld [vmem:[#allocation75_spill] sm:$0xff] }
 0x1db   : > { %v2242_v6 = vpack.c.bf16 %v5926_v2, %v5914_v12  ;;  %v2209_v32 = vmul.f32 %v1857_v14, %v1484_v34  ;;  %v1437_v11 = vmax.f32 %v1214_v8, 0.0  ;;  %v1224_v28 = vadd.f32 %v6427_v39, %v5765_v46  ;;  %v6440_v12 = vld [vmem:[#allocation56_spill] sm:$0xff] }
 0x1dc   : > { %v2272_v26 = vpack.c.bf16 %v2208_v37, %v2200_v35  ;;  %v2243_v53 = vpack.c.bf16 %v5932_v44, %v5919_v48  ;;  %v6429_v37 = vld [vmem:[#allocation77_spill] sm:$0xff]  ;;  %v1299_v36 = vadd.f32 %v6430_v55, %v5912_v16  ;;  %v1445_v8 = vmax.f32 %v1220_v41, 0.0 }
 0x1dd   : > { %v2273_v61 = vpack.c.bf16 %v2209_v32, %v2201_v58  ;;  %v1226_v14 = vadd.f32 %v6429_v37, %v5771_v40  ;;  %v1399_v15 = vmax.f32 %v1303_v18, 0.0  ;;  %v1313_v2 = vadd.f32 %v6440_v12, %v5909_v20 }
 0x1de   : > { %v1934_v50 = vpop.f32.mrb[104].mxu0 }
 0x1df   : > { %v5948_v51 = vmul.f32 %v1934_v50, %v1429_v43  ;;  %v2007_v22 = vpop.f32.mrb[104].mxu1  ;;  %2975 = vmatprep.mubr.bf16.mxu1 %v2273_v61  ;;  %v1936_v57 = vpop.f32.mrb[105].mxu0  ;;  %3025 = vmatmul.mubr.bf16.gmra.mrb[156].mxu0 %v2226_v13  ;;  %v6425_v13 = vld [vmem:[#allocation73_spill] sm:$0xff]  ;;  %v1391_v61 = vmax.f32 %v1297_v31, 0.0 }
 0x1e0   : > { %v2092_v4 = vmul.f32 %v2007_v22, %v1367_v54  ;;  %v5953_v59 = vmul.f32 %v1936_v57, %v1430_v38  ;;  %v2009_v33 = vpop.f32.mrb[105].mxu1  ;;  %2976 = vmatmul.mubr.bf16.gmra.mrb[164].mxu1 %v2272_v26  ;;  %v1938_v25 = vpop.f32.mrb[106].mxu0  ;;  %3032 = vmatprep.mubr.bf16.mxu0 %v2235_v0  ;;  %v1222_v56 = vadd.f32 %v6425_v13, %v5771_v40  ;;  %v6426_v0 = vld [vmem:[#allocation42_spill] sm:$0xff]  ;;  %v1453_v26 = vmax.f32 %v1224_v28, 0.0  ;;  %v6431_v57 = vld [vmem:[#allocation79_spill] sm:$0xff]  ;;  %v6436_v13 = vld [vmem:[#allocation52_spill] sm:$0xff] }
 0x1e1   : > { %v2093_v42 = vmul.f32 %v2009_v33, %v1368_v63  ;;  %v5957_v35 = vmul.f32 %v1938_v25, %v1437_v11  ;;  %v2011_v3 = vpop.f32.mrb[106].mxu1  ;;  %v1940_v48 = vpop.f32.mrb[107].mxu0  ;;  %v1295_v58 = vadd.f32 %v6426_v0, %v5912_v16  ;;  %v1454_v54 = vmax.f32 %v1226_v14, 0.0 }
 0x1e2   : > { %v2100_v34 = vmul.f32 %v2011_v3, %v1375_v5  ;;  %v5963_v47 = vmul.f32 %v1940_v48, %v1438_v23  ;;  %v2013_v24 = vpop.f32.mrb[107].mxu1  ;;  %v1446_v27 = vmax.f32 %v1222_v56, 0.0  ;;  %v1392_v22 = vmax.f32 %v1299_v36, 0.0  ;;  %v6435_v3 = vld [vmem:[#allocation83_spill] sm:$0xff] }
 0x1e3   : > { %v2250_v30 = vpack.c.bf16 %v5957_v35, %v5948_v51  ;;  %v2101_v1 = vmul.f32 %v2013_v24, %v1376_v49  ;;  %v1384_v19 = vmax.f32 %v1295_v58, 0.0  ;;  %v1230_v5 = vadd.f32 %v6431_v57, %v5765_v46  ;;  %v6438_v58 = vld [vmem:[#allocation54_spill] sm:$0xff] }
 0x1e4   : > { %v2220_v44 = vpack.c.bf16 %v2100_v34, %v2092_v4  ;;  %v2251_v60 = vpack.c.bf16 %v5963_v47, %v5953_v59  ;;  %v1234_v48 = vadd.f32 %v6435_v3, %v5765_v46  ;;  %v1307_v56 = vadd.f32 %v6436_v13, %v5909_v20  ;;  %v6437_v34 = vld [vmem:[#allocation85_spill] sm:$0xff] }
 0x1e5   : > { %v2221_v32 = vpack.c.bf16 %v2101_v1, %v2093_v42  ;;  %v1236_v47 = vadd.f32 %v6437_v34, %v5771_v40  ;;  %v1309_v39 = vadd.f32 %v6438_v58, %v5912_v16  ;;  %v1461_v28 = vmax.f32 %v1230_v5, 0.0 }
 0x1e6   : > { %v1944_v21 = vpop.f32.mrb[108].mxu0  ;;  %v1415_v13 = vmax.f32 %v1313_v2, 0.0 }
 0x1e7   : > { %v5979_v17 = vmul.f32 %v1944_v21, %v1445_v8  ;;  %v2017_v9 = vpop.f32.mrb[108].mxu1  ;;  %3113 = vmatprep.mubr.bf16.mxu1 %v2221_v32  ;;  %v1946_v43 = vpop.f32.mrb[109].mxu0  ;;  %3033 = vmatmul.mubr.bf16.gmra.mrb[160].mxu0 %v2234_v10  ;;  %v6433_v10 = vld [vmem:[#allocation81_spill] sm:$0xff]  ;;  %v1407_v32 = vmax.f32 %v1307_v56, 0.0 }
 0x1e8   : > { %v2108_v38 = vmul.f32 %v2017_v9, %v1383_v7  ;;  %v5984_v50 = vmul.f32 %v1946_v43, %v1446_v27  ;;  %v2019_v63 = vpop.f32.mrb[109].mxu1  ;;  %3114 = vmatmul.mubr.bf16.vlgmr.msra.gmra.mrb[168].mxu1 %v2220_v44  ;;  %v1948_v11 = vpop.f32.mrb[110].mxu0  ;;  %3040 = vmatprep.mubr.bf16.mxu0 %v2243_v53  ;;  %v1232_v25 = vadd.f32 %v6433_v10, %v5771_v40  ;;  %v6434_v53 = vld [vmem:[#allocation50_spill] sm:$0xff]  ;;  %v1469_v44 = vmax.f32 %v1234_v48, 0.0  ;;  %v6439_v43 = vld [vmem:[#allocation87_spill] sm:$0xff]  ;;  %v6444_v10 = vld [vmem:[#allocation60_spill] sm:$0xff] }
 0x1e9   : > { %v2109_v23 = vmul.f32 %v2019_v63, %v1384_v19  ;;  %v5988_v4 = vmul.f32 %v1948_v11, %v1453_v26  ;;  %v2021_v59 = vpop.f32.mrb[110].mxu1  ;;  %v1950_v33 = vpop.f32.mrb[111].mxu0  ;;  %v1305_v42 = vadd.f32 %v6434_v53, %v5912_v16  ;;  %v1470_v7 = vmax.f32 %v1236_v47, 0.0 }
 0x1ea   : > { %v2116_v49 = vmul.f32 %v2021_v59, %v1391_v61  ;;  %v5994_v62 = vmul.f32 %v1950_v33, %v1454_v54  ;;  %v2023_v41 = vpop.f32.mrb[111].mxu1  ;;  %v1462_v31 = vmax.f32 %v1232_v25, 0.0  ;;  %v1408_v9 = vmax.f32 %v1309_v39, 0.0  ;;  %v6443_v59 = vld [vmem:[#allocation91_spill] sm:$0xff] }
 0x1eb   : > { %v2258_v29 = vpack.c.bf16 %v5988_v4, %v5979_v17  ;;  %v2117_v45 = vmul.f32 %v2023_v41, %v1392_v22  ;;  %v1400_v14 = vmax.f32 %v1305_v42, 0.0  ;;  %v1240_v61 = vadd.f32 %v6439_v43, %v5765_v46  ;;  %v6446_v42 = vld [vmem:[#allocation62_spill] sm:$0xff]  ;;  %v6453_v17 = vld [vmem:[#allocation76_spill] sm:$0xff] }
 0x1ec   : > { %v2228_v24 = vpack.c.bf16 %v2116_v49, %v2108_v38  ;;  %v2259_v0 = vpack.c.bf16 %v5994_v62, %v5984_v50  ;;  %v1244_v33 = vadd.f32 %v6443_v59, %v5765_v46  ;;  %v1317_v25 = vadd.f32 %v6444_v10, %v5909_v20  ;;  %v6445_v49 = vld [vmem:[#allocation93_spill] sm:$0xff] }
 0x1ed   : > { %v2229_v1 = vpack.c.bf16 %v2117_v45, %v2109_v23  ;;  %v1246_v62 = vadd.f32 %v6445_v49, %v5771_v40  ;;  %v1319_v3 = vadd.f32 %v6446_v42, %v5912_v16  ;;  %v1477_v48 = vmax.f32 %v1240_v61, 0.0  ;;  %v6452_v49 = vld [vmem:[#allocation74_spill] sm:$0xff] }
 0x1ee   : > { %v1954_v37 = vpop.f32.mrb[112].mxu0  ;;  %v1485_v47 = vmax.f32 %v1244_v33, 0.0  ;;  %v6451_v33 = vld [vmem:[#allocation72_spill] sm:$0xff]  ;;  %v1337_v4 = vadd.f32 %v6453_v17, %v5909_v20  ;;  %v6454_v42 = vld [vmem:[#allocation78_spill] sm:$0xff] }
 0x1ef   : > { %v6010_v55 = vmul.f32 %v1954_v37, %v1461_v28  ;;  %v2027_v36 = vpop.f32.mrb[112].mxu1  ;;  %3121 = vmatprep.mubr.bf16.mxu1 %v2229_v1  ;;  %v1956_v8 = vpop.f32.mrb[113].mxu0  ;;  %3041 = vmatmul.mubr.bf16.gmra.mrb[164].mxu0 %v2242_v6  ;;  %v6441_v6 = vld [vmem:[#allocation89_spill] sm:$0xff]  ;;  %v1486_v28 = vmax.f32 %v1246_v62, 0.0  ;;  %v1335_v62 = vadd.f32 %v6452_v49, %v5912_v16 }
 0x1f0   : > { %v2124_v27 = vmul.f32 %v2027_v36, %v1399_v15  ;;  %v6015_v21 = vmul.f32 %v1956_v8, %v1462_v31  ;;  %v2029_v19 = vpop.f32.mrb[113].mxu1  ;;  %3122 = vmatmul.mubr.bf16.gmra.mrb[172].mxu1 %v2228_v24  ;;  %v1958_v26 = vpop.f32.mrb[114].mxu0  ;;  %3048 = vmatprep.mubr.bf16.mxu0 %v2251_v60  ;;  %v1242_v11 = vadd.f32 %v6441_v6, %v5771_v40  ;;  %v6442_v60 = vld [vmem:[#allocation58_spill] sm:$0xff]  ;;  %v1423_v40 = vmax.f32 %v1317_v25, 0.0 }
 0x1f1   : > { %v2125_v54 = vmul.f32 %v2029_v19, %v1400_v14  ;;  %v6019_v38 = vmul.f32 %v1958_v26, %v1469_v44  ;;  %v2031_v50 = vpop.f32.mrb[114].mxu1  ;;  %v1960_v63 = vpop.f32.mrb[115].mxu0  ;;  %v1315_v23 = vadd.f32 %v6442_v60, %v5912_v16  ;;  %v1424_v14 = vmax.f32 %v1319_v3, 0.0 }
 0x1f2   : > { %v2132_v22 = vmul.f32 %v2031_v50, %v1407_v32  ;;  %v2195_v57 = vmul.f32 %v1960_v63, %v1470_v7  ;;  %v2033_v5 = vpop.f32.mrb[115].mxu1  ;;  %v1478_v46 = vmax.f32 %v1242_v11, 0.0  ;;  %v6447_v7 = vld [vmem:[#allocation64_spill] sm:$0xff]  ;;  %v6450_v50 = vld [vmem:[#allocation70_spill] sm:$0xff]  ;;  %v1339_v3 = vadd.f32 %v6454_v42, %v5912_v16 }
 0x1f3   : > { %v2266_v52 = vpack.c.bf16 %v6019_v38, %v6010_v55  ;;  %v2133_v18 = vmul.f32 %v2033_v5, %v1408_v9  ;;  %v1416_v34 = vmax.f32 %v1315_v23, 0.0  ;;  %v1329_v63 = vadd.f32 %v6450_v50, %v5912_v16  ;;  %v6457_v55 = vld [vmem:[#allocation84_spill] sm:$0xff] }
 0x1f4   : > { %v2236_v41 = vpack.c.bf16 %v2132_v22, %v2124_v27  ;;  %v2267_v53 = vpack.c.bf16 %v2195_v57, %v6015_v21  ;;  %v1323_v27 = vadd.f32 %v6447_v7, %v5909_v20  ;;  %v1347_v38 = vadd.f32 %v6457_v55, %v5909_v20 }
 0x1f5   : > { %v2237_v45 = vpack.c.bf16 %v2133_v18, %v2125_v54  ;;  %v1440_v60 = vmax.f32 %v1329_v63, 0.0  ;;  %v1333_v18 = vadd.f32 %v6451_v33, %v5909_v20 }
 0x1f6   : > { %v1964_v56 = vpop.f32.mrb[116].mxu0  ;;  %v1431_v2 = vmax.f32 %v1323_v27, 0.0  ;;  %v1471_v27 = vmax.f32 %v1347_v38, 0.0 }
 0x1f7   : > { %v6038_v24 = vmul.f32 %v1964_v56, %v1477_v48  ;;  %v2037_v58 = vpop.f32.mrb[116].mxu1  ;;  %3129 = vmatprep.mubr.bf16.mxu1 %v2237_v45  ;;  %v1966_v39 = vpop.f32.mrb[117].mxu0  ;;  %3049 = vmatmul.mubr.bf16.gmra.mrb[168].mxu0 %v2250_v30  ;;  %v6448_v30 = vld [vmem:[#allocation66_spill] sm:$0xff]  ;;  %v1447_v48 = vmax.f32 %v1333_v18, 0.0  ;;  %v1448_v45 = vmax.f32 %v1335_v62, 0.0 }
 0x1f8   : > { %v2140_v1 = vmul.f32 %v2037_v58, %v1415_v13  ;;  %v2203_v15 = vmul.f32 %v1966_v39, %v1478_v46  ;;  %v2039_v31 = vpop.f32.mrb[117].mxu1  ;;  %3130 = vmatmul.mubr.bf16.gmra.mrb[176].mxu1 %v2236_v41  ;;  %v1968_v37 = vpop.f32.mrb[118].mxu0  ;;  %3056 = vmatprep.mubr.bf16.mxu0 %v2259_v0  ;;  %v1325_v19 = vadd.f32 %v6448_v30, %v5912_v16  ;;  %v6449_v0 = vld [vmem:[#allocation68_spill] sm:$0xff]  ;;  %v1455_v46 = vmax.f32 %v1337_v4, 0.0 }
 0x1f9   : > { %v2141_v44 = vmul.f32 %v2039_v31, %v1416_v34  ;;  %v6043_v36 = vmul.f32 %v1968_v37, %v1485_v47  ;;  %v2041_v8 = vpop.f32.mrb[118].mxu1  ;;  %v1970_v32 = vpop.f32.mrb[119].mxu0  ;;  %v1327_v43 = vadd.f32 %v6449_v0, %v5909_v20  ;;  %v1456_v47 = vmax.f32 %v1339_v3, 0.0  ;;  %v6455_v39 = vld [vmem:[#allocation80_spill] sm:$0xff] }
 0x1fa   : > { %v2148_v21 = vmul.f32 %v2041_v8, %v1423_v40  ;;  %v2211_v51 = vmul.f32 %v1970_v32, %v1486_v28  ;;  %v2043_v35 = vpop.f32.mrb[119].mxu1  ;;  %v1432_v6 = vmax.f32 %v1325_v19, 0.0  ;;  %v1343_v40 = vadd.f32 %v6455_v39, %v5909_v20  ;;  %v4501_v4 = vld [vmem:[%s6276_s8 + $0x8] sm:$0xff]  }
 0x1fb   : > { %v2274_v26 = vpack.c.bf16 %v6043_v36, %v6038_v24  ;;  %v2149_v9 = vmul.f32 %v2043_v35, %v1424_v14  ;;  %v1439_v22 = vmax.f32 %v1327_v43, 0.0  ;;  %v6458_v14 = vld [vmem:[#allocation86_spill] sm:$0xff] }
 0x1fc   : > { %v2244_v61 = vpack.c.bf16 %v2148_v21, %v2140_v1  ;;  %v2275_v54 = vpack.c.bf16 %v2211_v51, %v2203_v15  ;;  %v6456_v15 = vld [vmem:[#allocation82_spill] sm:$0xff]  ;;  %v1463_v8 = vmax.f32 %v1343_v40, 0.0 }
 0x1fd   : > { %v2245_v12 = vpack.c.bf16 %v2149_v9, %v2141_v44  ;;  %v1345_v31 = vadd.f32 %v6456_v15, %v5912_v16  ;;  %v1349_v44 = vadd.f32 %v6458_v14, %v5912_v16  ;;  %v6459_v9 = vld [vmem:[#allocation88_spill] sm:$0xff] }
 0x1fe   : > { %v1353_v0 = vadd.f32 %v6459_v9, %v5909_v20 }
 0x1ff   : > { %v2047_v11 = vpop.f32.mrb[120].mxu1  ;;  %3137 = vmatprep.mubr.bf16.mxu1 %v2245_v12  ;;  %3057 = vmatmul.mubr.bf16.gmra.mrb[172].mxu0 %v2258_v29  ;;  %v1464_v32 = vmax.f32 %v1345_v31, 0.0  ;;  %v1472_v35 = vmax.f32 %v1349_v44, 0.0  ;;  %v6461_v12 = vld [vmem:[#allocation92_spill] sm:$0xff] }
 0x200   : > { %v2156_v57 = vmul.f32 %v2047_v11, %v1431_v2  ;;  %v2049_v5 = vpop.f32.mrb[121].mxu1  ;;  %3138 = vmatmul.mubr.bf16.gmra.mrb[180].mxu1 %v2244_v61  ;;  %3064 = vmatprep.mubr.bf16.mxu0 %v2267_v53  ;;  %v1357_v2 = vadd.f32 %v6461_v12, %v5909_v20 }
 0x201   : > { %v2157_v23 = vmul.f32 %v2049_v5, %v1432_v6  ;;  %v2051_v59 = vpop.f32.mrb[122].mxu1  ;;  %v6462_v6 = vld [vmem:[#allocation94_spill] sm:$0xff] }
 0x202   : > { %v2164_v10 = vmul.f32 %v2051_v59, %v1439_v22  ;;  %v2053_v25 = vpop.f32.mrb[123].mxu1  ;;  %v1359_v11 = vadd.f32 %v6462_v6, %v5912_v16 }
 0x203   : > { %v2165_v41 = vmul.f32 %v2053_v25, %v1440_v60 }
 0x204   : > { %v2252_v29 = vpack.c.bf16 %v2164_v10, %v2156_v57  ;;  %v1479_v57 = vmax.f32 %v1353_v0, 0.0  ;;  %v1488_v18 = vmax.f32 %v1359_v11, 0.0 }
 0x205   : > { %v2253_v53 = vpack.c.bf16 %v2165_v41, %v2157_v23  ;;  %v1487_v23 = vmax.f32 %v1357_v2, 0.0 }
 0x207   : > { %v2057_v13 = vpop.f32.mrb[124].mxu1  ;;  %3145 = vmatprep.mubr.bf16.mxu1 %v2253_v53  ;;  %3065 = vmatmul.mubr.bf16.gmra.mrb[176].mxu0 %v2266_v52 }
 0x208   : > { %v2172_v56 = vmul.f32 %v2057_v13, %v1447_v48  ;;  %v2059_v34 = vpop.f32.mrb[125].mxu1  ;;  %3146 = vmatmul.mubr.bf16.gmra.mrb[184].mxu1 %v2252_v29  ;;  %3072 = vmatprep.mubr.bf16.mxu0 %v2275_v54  ;;  %v6460_v54 = vld [vmem:[#allocation90_spill] sm:$0xff]  ;;  %v3202_v29 = vld [vmem:[%s6275_s7] sm:$0x3] }
 0x209   : > { %v2173_v24 = vmul.f32 %v2059_v34, %v1448_v45  ;;  %v2061_v58 = vpop.f32.mrb[126].mxu1  ;;  %v1355_v50 = vadd.f32 %v6460_v54, %v5912_v16  ;;  %v4500_v16 = vld [vmem:[%s6276_s8] sm:$0xff]   ;;  %v6094_v53 = vsel %vm3373_vm1, %v3202_v29, 0 }
 0x20a   : > { %v2180_v28 = vmul.f32 %v2061_v58, %v1455_v46  ;;  %v2063_v1 = vpop.f32.mrb[127].mxu1  ;;  %4317 = vmatprep.subr.bf16.mxu0 %v4500_v16 }
 0x20b   : > { %v2181_v37 = vmul.f32 %v2063_v1, %v1456_v47  ;;  %v1480_v5 = vmax.f32 %v1355_v50, 0.0  ;;  %4318 = vmatpush3.bf16.msra.mxu0 %v4500_v16 }
 0x20c   : > { %v2260_v52 = vpack.c.bf16 %v2180_v28, %v2172_v56  ;;  %4319 = vmatprep.subr.bf16.mxu0 %v4501_v4 }
 0x20d   : > { %v2261_v36 = vpack.c.bf16 %v2181_v37, %v2173_v24 }
 0x20f   : > { %v2067_v7 = vpop.f32.mrb[128].mxu1  ;;  %3153 = vmatprep.mubr.bf16.mxu1 %v2261_v36  ;;  %3073 = vmatmul.mubr.bf16.gmra.mrb[180].mxu0 %v2274_v26 }
 0x210   : > { %v2188_v21 = vmul.f32 %v2067_v7, %v1463_v8  ;;  %v2069_v51 = vpop.f32.mrb[129].mxu1  ;;  %3154 = vmatmul.mubr.bf16.gmra.mrb[188].mxu1 %v2260_v52  ;;  %4320 = vmatpush3.bf16.msra.mxu0 %v4501_v4 }
 0x211   : > { %v2189_v30 = vmul.f32 %v2069_v51, %v1464_v32  ;;  %v2071_v19 = vpop.f32.mrb[130].mxu1  ;;  %4395 = vmatprep.subr.msk.bf16.mxu0 %vm3373_vm1, %v3202_v29 }
 0x212   : > { %v2196_v43 = vmul.f32 %v2071_v19, %v1471_v27  ;;  %v2073_v61 = vpop.f32.mrb[131].mxu1 }
 0x213   : > { %v2197_v63 = vmul.f32 %v2073_v61, %v1472_v35 }
 0x214   : > { %v2268_v26 = vpack.c.bf16 %v2196_v43, %v2188_v21 }
 0x215   : > { %v2269_v22 = vpack.c.bf16 %v2197_v63, %v2189_v30 }
 0x217   : > { %v2077_v60 = vpop.f32.mrb[132].mxu1  ;;  %3161 = vmatprep.mubr.bf16.mxu1 %v2269_v22 }
 0x218   : > { %v2204_v59 = vmul.f32 %v2077_v60, %v1479_v57  ;;  %v2079_v33 = vpop.f32.mrb[133].mxu1  ;;  %3162 = vmatmul.mubr.bf16.gmra.mrb[192].mxu1 %v2268_v26 }
 0x219   : > { %v2205_v10 = vmul.f32 %v2079_v33, %v1480_v5  ;;  %v2081_v25 = vpop.f32.mrb[134].mxu1 }
 0x21a   : > { %v2212_v49 = vmul.f32 %v2081_v25, %v1487_v23  ;;  %v2083_v62 = vpop.f32.mrb[135].mxu1 }
 0x21b   : > { %v2213_v41 = vmul.f32 %v2083_v62, %v1488_v18 }
 0x21c   : > { %v2276_v20 = vpack.c.bf16 %v2212_v49, %v2204_v59 }
 0x21d   : > { %v2277_v17 = vpack.c.bf16 %v2213_v41, %v2205_v10 }
 0x21f   : > { %3169 = vmatprep.mubr.bf16.mxu1 %v2277_v17 }
 0x220   : > { %3170 = vmatmul.mubr.bf16.gmra.mrb[196].mxu1 %v2276_v20 }
 0x26a   : > { %v4048_v42 = vpop.f32.mrb[120].mxu0 }
 0x26b   : > { %v4049_v3 = vpop.f32.mrb[121].mxu0 }
 0x26c   : > { %v4050_v48 = vadd.f32 %v4049_v3, %v4048_v42  ;;  %v4051_v45 = vpop.f32.mrb[122].mxu0 }
 0x26d   : > { %v4052_v13 = vpop.f32.mrb[123].mxu0 }
 0x26e   : > { %v4053_v46 = vadd.f32 %v4052_v13, %v4051_v45 }
 0x272   : > { %v4054_v56 = vpop.f32.mrb[124].mxu0 }
 0x273   : > { %v4055_v34 = vpop.f32.mrb[125].mxu0 }
 0x274   : > { %v4056_v47 = vadd.f32 %v4055_v34, %v4054_v56  ;;  %v4057_v24 = vpop.f32.mrb[126].mxu0 }
 0x275   : > { %v4058_v58 = vpop.f32.mrb[127].mxu0 }
 0x276   : > { %v4059_v39 = vadd.f32 %v4058_v58, %v4057_v24 }
 0x27a   : > { %v4060_v40 = vpop.f32.mrb[128].mxu0 }
 0x27b   : > { %v4112_v28 = vpop.f32.mrb[136].mxu1  ;;  %v4061_v1 = vpop.f32.mrb[129].mxu0 }
 0x27c   : > { %v4062_v15 = vadd.f32 %v4061_v1, %v4060_v40  ;;  %v4113_v31 = vpop.f32.mrb[137].mxu1  ;;  %v4063_v37 = vpop.f32.mrb[130].mxu0  ;;  %v4502_v1 = vld [vmem:[%s6278_s10] sm:$0xff]  }
 0x27d   : > { %v4114_v55 = vadd.f32 %v4113_v31, %v4112_v28  ;;  %v4115_v38 = vpop.f32.mrb[138].mxu1  ;;  %v4064_v52 = vpop.f32.mrb[131].mxu0  ;;  %4355 = vmatprep.subr.bf16.mxu1 %v4502_v1 }
 0x27e   : > { %v4065_v14 = vadd.f32 %v4064_v52, %v4063_v37  ;;  %v4116_v44 = vpop.f32.mrb[139].mxu1  ;;  %4356 = vmatpush3.bf16.msra.mxu1 %v4502_v1 }
 0x27f   : > { %v6096_v36 = vadd.f32 %v4114_v55, %v4050_v48  ;;  %v4117_v8 = vadd.f32 %v4116_v44, %v4115_v38 }
 0x281   : > { %v6098_v32 = vadd.f32 %v4117_v8, %v4053_v46 }
 0x282   : > { %v4066_v7 = vpop.f32.mrb[132].mxu0 }
 0x283   : > { %v4118_v27 = vpop.f32.mrb[140].mxu1  ;;  %v4067_v21 = vpop.f32.mrb[133].mxu0 }
 0x284   : > { %v4068_v51 = vadd.f32 %v4067_v21, %v4066_v7  ;;  %v4119_v35 = vpop.f32.mrb[141].mxu1  ;;  %v4069_v30 = vpop.f32.mrb[134].mxu0 }
 0x285   : > { %v4120_v19 = vadd.f32 %v4119_v35, %v4118_v27  ;;  %v4121_v9 = vpop.f32.mrb[142].mxu1  ;;  %v4070_v0 = vpop.f32.mrb[135].mxu0 }
 0x286   : > { %v4071_v43 = vadd.f32 %v4070_v0, %v4069_v30  ;;  %v4122_v61 = vpop.f32.mrb[143].mxu1 }
 0x287   : > { %v6100_v54 = vadd.f32 %v4120_v19, %v4056_v47  ;;  %v4123_v50 = vadd.f32 %v4122_v61, %v4121_v9 }
 0x289   : > { %v6102_v63 = vadd.f32 %v4123_v50, %v4059_v39 }
 0x28a   : > { %v4072_v12 = vpop.f32.mrb[136].mxu0 }
 0x28b   : > { %v4124_v2 = vpop.f32.mrb[144].mxu1  ;;  %v4073_v26 = vpop.f32.mrb[137].mxu0 }
 0x28c   : > { %v4074_v6 = vadd.f32 %v4073_v26, %v4072_v12  ;;  %v4125_v11 = vpop.f32.mrb[145].mxu1  ;;  %v4075_v22 = vpop.f32.mrb[138].mxu0 }
 0x28d   : > { %v4126_v57 = vadd.f32 %v4125_v11, %v4124_v2  ;;  %v4127_v5 = vpop.f32.mrb[146].mxu1  ;;  %v4076_v60 = vpop.f32.mrb[139].mxu0 }
 0x28e   : > { %v4077_v23 = vadd.f32 %v4076_v60, %v4075_v22  ;;  %v4128_v59 = vpop.f32.mrb[147].mxu1 }
 0x28f   : > { %v6104_v33 = vadd.f32 %v4126_v57, %v4062_v15  ;;  %v4129_v18 = vadd.f32 %v4128_v59, %v4127_v5  ;;  %v4503_v15 = vld [vmem:[%s6278_s10 + $0x8] sm:$0xff]  }
 0x290   : > { %4357 = vmatprep.subr.bf16.mxu1 %v4503_v15 }
 0x291   : > { %v6106_v10 = vadd.f32 %v4129_v18, %v4065_v14  ;;  %4358 = vmatpush3.bf16.msra.mxu1 %v4503_v15 }
 0x292   : > { %v4078_v25 = vpop.f32.mrb[140].mxu0 }
 0x293   : > { %v4130_v49 = vpop.f32.mrb[148].mxu1  ;;  %v4079_v62 = vpop.f32.mrb[141].mxu0 }
 0x294   : > { %v4080_v41 = vadd.f32 %v4079_v62, %v4078_v25  ;;  %v4131_v20 = vpop.f32.mrb[149].mxu1  ;;  %v4081_v17 = vpop.f32.mrb[142].mxu0 }
 0x295   : > { %v4132_v16 = vadd.f32 %v4131_v20, %v4130_v49  ;;  %v4133_v4 = vpop.f32.mrb[150].mxu1  ;;  %v4082_v29 = vpop.f32.mrb[143].mxu0 }
 0x296   : > { %v4083_v42 = vadd.f32 %v4082_v29, %v4081_v17  ;;  %v4134_v3 = vpop.f32.mrb[151].mxu1 }
 0x297   : > { %v6108_v48 = vadd.f32 %v4132_v16, %v4068_v51  ;;  %v4135_v45 = vadd.f32 %v4134_v3, %v4133_v4 }
 0x299   : > { %v6110_v13 = vadd.f32 %v4135_v45, %v4071_v43 }
 0x29a   : > { %v4084_v46 = vpop.f32.mrb[144].mxu0 }
 0x29b   : > { %v4136_v56 = vpop.f32.mrb[152].mxu1  ;;  %v4085_v34 = vpop.f32.mrb[145].mxu0 }
 0x29c   : > { %v4086_v47 = vadd.f32 %v4085_v34, %v4084_v46  ;;  %v4137_v24 = vpop.f32.mrb[153].mxu1  ;;  %v4087_v58 = vpop.f32.mrb[146].mxu0 }
 0x29d   : > { %v4138_v39 = vadd.f32 %v4137_v24, %v4136_v56  ;;  %v4139_v40 = vpop.f32.mrb[154].mxu1  ;;  %v4088_v28 = vpop.f32.mrb[147].mxu0 }
 0x29e   : > { %v4089_v31 = vadd.f32 %v4088_v28, %v4087_v58  ;;  %v4140_v37 = vpop.f32.mrb[155].mxu1 }
 0x29f   : > { %v6118_v55 = vadd.f32 %v4138_v39, %v4074_v6  ;;  %v4141_v38 = vadd.f32 %v4140_v37, %v4139_v40 }
 0x2a1   : > { %v6120_v52 = vadd.f32 %v4141_v38, %v4077_v23 }
 0x2a2   : > { %v4090_v14 = vpop.f32.mrb[148].mxu0 }
 0x2a3   : > { %v4142_v44 = vpop.f32.mrb[156].mxu1  ;;  %v4091_v8 = vpop.f32.mrb[149].mxu0 }
 0x2a4   : > { %v4092_v7 = vadd.f32 %v4091_v8, %v4090_v14  ;;  %v4143_v27 = vpop.f32.mrb[157].mxu1  ;;  %v4093_v21 = vpop.f32.mrb[150].mxu0 }
 0x2a5   : > { %v4144_v51 = vadd.f32 %v4143_v27, %v4142_v44  ;;  %v4145_v35 = vpop.f32.mrb[158].mxu1  ;;  %v4094_v30 = vpop.f32.mrb[151].mxu0 }
 0x2a6   : > { %v4095_v19 = vadd.f32 %v4094_v30, %v4093_v21  ;;  %v4146_v9 = vpop.f32.mrb[159].mxu1 }
 0x2a7   : > { %v6122_v0 = vadd.f32 %v4144_v51, %v4080_v41  ;;  %v4147_v43 = vadd.f32 %v4146_v9, %v4145_v35 }
 0x2a9   : > { %v6124_v61 = vadd.f32 %v4147_v43, %v4083_v42 }
 0x2aa   : > { %v4176_v50 = vpop.f32.mrb[152].mxu0 }
 0x2ab   : > { %v4148_v12 = vpop.f32.mrb[160].mxu1  ;;  %v4177_v2 = vpop.f32.mrb[153].mxu0 }
 0x2ac   : > { %v4149_v26 = vpop.f32.mrb[161].mxu1  ;;  %v4178_v6 = vadd.f32 %v4177_v2, %v4176_v50  ;;  %v4179_v11 = vpop.f32.mrb[154].mxu0 }
 0x2ad   : > { %v4150_v22 = vadd.f32 %v4149_v26, %v4148_v12  ;;  %v4151_v57 = vpop.f32.mrb[162].mxu1  ;;  %v4180_v5 = vpop.f32.mrb[155].mxu0 }
 0x2ae   : > { %v3019_v60 = vadd.f32 %v4178_v6, %v6096_v36  ;;  %v4152_v23 = vpop.f32.mrb[163].mxu1  ;;  %v4181_v59 = vadd.f32 %v4180_v5, %v4179_v11 }
 0x2af   : > { %v6127_v18 = vadd.f32 %v4150_v22, %v4086_v47  ;;  %v4153_v25 = vadd.f32 %v4152_v23, %v4151_v57 }
 0x2b0   : > { %v3022_v49 = vadd.f32 %v4181_v59, %v6098_v32 }
 0x2b1   : > { %v6130_v62 = vadd.f32 %v4153_v25, %v4089_v31 }
 0x2b2   : > { %v4182_v41 = vpop.f32.mrb[156].mxu0 }
 0x2b3   : > { %v4154_v20 = vpop.f32.mrb[164].mxu1  ;;  %v4183_v17 = vpop.f32.mrb[157].mxu0 }
 0x2b4   : > { %v4155_v16 = vpop.f32.mrb[165].mxu1  ;;  %v4184_v4 = vadd.f32 %v4183_v17, %v4182_v41  ;;  %v4185_v29 = vpop.f32.mrb[158].mxu0 }
 0x2b5   : > { %v4156_v42 = vadd.f32 %v4155_v16, %v4154_v20  ;;  %v4157_v3 = vpop.f32.mrb[166].mxu1  ;;  %v4186_v45 = vpop.f32.mrb[159].mxu0 }
 0x2b6   : > { %v3027_v36 = vadd.f32 %v4184_v4, %v6100_v54  ;;  %v4158_v46 = vpop.f32.mrb[167].mxu1  ;;  %v4187_v56 = vadd.f32 %v4186_v45, %v4185_v29 }
 0x2b7   : > { %v6133_v34 = vadd.f32 %v4156_v42, %v4092_v7  ;;  %v4159_v47 = vadd.f32 %v4158_v46, %v4157_v3 }
 0x2b8   : > { %v3030_v32 = vadd.f32 %v4187_v56, %v6102_v63 }
 0x2b9   : > { %v6136_v24 = vadd.f32 %v4159_v47, %v4095_v19 }
 0x2ba   : > { %v4188_v58 = vpop.f32.mrb[160].mxu0 }
 0x2bb   : > { %v4240_v39 = vpop.f32.mrb[168].mxu1  ;;  %v4189_v40 = vpop.f32.mrb[161].mxu0 }
 0x2bc   : > { %v4190_v28 = vadd.f32 %v4189_v40, %v4188_v58  ;;  %v4241_v1 = vpop.f32.mrb[169].mxu1  ;;  %v4191_v15 = vpop.f32.mrb[162].mxu0 }
 0x2bd   : > { %v4242_v31 = vadd.f32 %v4241_v1, %v4240_v39  ;;  %v4243_v37 = vpop.f32.mrb[170].mxu1  ;;  %v4192_v38 = vpop.f32.mrb[163].mxu0 }
 0x2be   : > { %v3035_v54 = vadd.f32 %v4190_v28, %v6104_v33  ;;  %v4193_v14 = vadd.f32 %v4192_v38, %v4191_v15  ;;  %v4244_v44 = vpop.f32.mrb[171].mxu1 }
 0x2bf   : > { %v3116_v8 = vadd.f32 %v4242_v31, %v3019_v60  ;;  %v4245_v7 = vadd.f32 %v4244_v44, %v4243_v37 }
 0x2c0   : > { %v3038_v27 = vadd.f32 %v4193_v14, %v6106_v10 }
 0x2c1   : > { %v3119_v63 = vadd.f32 %v4245_v7, %v3022_v49 }
 0x2c2   : > { %v4194_v21 = vpop.f32.mrb[164].mxu0 }
 0x2c3   : > { %v3203_v51 = vpack.c.bf16 %v3119_v63, %v3116_v8  ;;  %v4246_v35 = vpop.f32.mrb[172].mxu1  ;;  %v4195_v30 = vpop.f32.mrb[165].mxu0 }
 0x2c4   : > { %v4196_v19 = vadd.f32 %v4195_v30, %v4194_v21  ;;  %v4247_v9 = vpop.f32.mrb[173].mxu1  ;;  %v4197_v43 = vpop.f32.mrb[166].mxu0 }
 0x2c5   : > { %v4248_v50 = vadd.f32 %v4247_v9, %v4246_v35  ;;  %v4249_v12 = vpop.f32.mrb[174].mxu1  ;;  %4321 = vmatprep.mubr.msk.bf16.mxu0 %vm1609_vm0, %v3203_v51  ;;  %v4198_v2 = vpop.f32.mrb[167].mxu0 }
 0x2c6   : > { %v3043_v33 = vadd.f32 %v4196_v19, %v6108_v48  ;;  %v4199_v26 = vadd.f32 %v4198_v2, %v4197_v43  ;;  %v4250_v6 = vpop.f32.mrb[175].mxu1 }
 0x2c7   : > { %v3124_v11 = vadd.f32 %v4248_v50, %v3027_v36  ;;  %v4251_v22 = vadd.f32 %v4250_v6, %v4249_v12 }
 0x2c8   : > { %v3046_v10 = vadd.f32 %v4199_v26, %v6110_v13 }
 0x2c9   : > { %v3127_v57 = vadd.f32 %v4251_v22, %v3030_v32 }
 0x2ca   : > { %v4200_v5 = vpop.f32.mrb[168].mxu0 }
 0x2cb   : > { %v3204_v60 = vpack.c.bf16 %v3127_v57, %v3124_v11  ;;  %v4252_v23 = vpop.f32.mrb[176].mxu1  ;;  %v4201_v59 = vpop.f32.mrb[169].mxu0 }
 0x2cc   : > { %v4202_v25 = vadd.f32 %v4201_v59, %v4200_v5  ;;  %v4253_v49 = vpop.f32.mrb[177].mxu1  ;;  %v4203_v41 = vpop.f32.mrb[170].mxu0 }
 0x2cd   : > { %v4254_v20 = vadd.f32 %v4253_v49, %v4252_v23  ;;  %v4255_v17 = vpop.f32.mrb[178].mxu1  ;;  %4322 = vmatmul.mubr.msk.bf16.vlgmr.msra.gmra.mrb[184].mxu0 %vm1609_vm0, %v3204_v60  ;;  %v4204_v16 = vpop.f32.mrb[171].mxu0 }
 0x2ce   : > { %v3051_v48 = vadd.f32 %v4202_v25, %v6118_v55  ;;  %v4205_v4 = vadd.f32 %v4204_v16, %v4203_v41  ;;  %v4256_v29 = vpop.f32.mrb[179].mxu1  ;;  %4338 = vmatpush3.bf16.msra.mxu0 %v6094_v53 }
 0x2cf   : > { %v3132_v13 = vadd.f32 %v4254_v20, %v3035_v54  ;;  %v4257_v42 = vadd.f32 %v4256_v29, %v4255_v17 }
 0x2d0   : > { %v3054_v3 = vadd.f32 %v4205_v4, %v6120_v52 }
 0x2d1   : > { %v3135_v45 = vadd.f32 %v4257_v42, %v3038_v27 }
 0x2d2   : > { %v4206_v36 = vpop.f32.mrb[172].mxu0 }
 0x2d3   : > { %v3205_v46 = vpack.c.bf16 %v3135_v45, %v3132_v13  ;;  %v4258_v56 = vpop.f32.mrb[180].mxu1  ;;  %v4207_v47 = vpop.f32.mrb[173].mxu0 }
 0x2d4   : > { %v4208_v32 = vadd.f32 %v4207_v47, %v4206_v36  ;;  %v4259_v58 = vpop.f32.mrb[181].mxu1  ;;  %v4209_v39 = vpop.f32.mrb[174].mxu0 }
 0x2d5   : > { %v4260_v40 = vadd.f32 %v4259_v58, %v4258_v56  ;;  %v4261_v28 = vpop.f32.mrb[182].mxu1  ;;  %4325 = vmatprep.mubr.msk.bf16.mxu0 %vm1609_vm0, %v3205_v46  ;;  %v4210_v55 = vpop.f32.mrb[175].mxu0  ;;  %v3179_v58 = vld [vmem:[%s6161_s30 + $0x8] sm:$0xff] }
 0x2d6   : > { %v3059_v1 = vadd.f32 %v4208_v32, %v6122_v0  ;;  %v4211_v53 = vadd.f32 %v4210_v55, %v4209_v39  ;;  %v4262_v15 = vpop.f32.mrb[183].mxu1  ;;  %v3178_v32 = vld [vmem:[%s6161_s30] sm:$0xff]  ;;  %v3180_v55 = vld [vmem:[%s6161_s30 + $0x10] sm:$0xff] }
 0x2d7   : > { %v3140_v31 = vadd.f32 %v4260_v40, %v3043_v33  ;;  %v4263_v37 = vadd.f32 %v4262_v15, %v4261_v28  ;;  %v3194_v40 = vpack.c.bf16 %v3179_v58, %v3178_v32  ;;  %v3183_v15 = vld [vmem:[%s6161_s30 + $0x28] sm:$0xff] }
 0x2d8   : > { %v3062_v52 = vadd.f32 %v4211_v53, %v6124_v61  ;;  %v3182_v53 = vld [vmem:[%s6161_s30 + $0x20] sm:$0xff] }
 0x2d9   : > { %v3143_v38 = vadd.f32 %v4263_v37, %v3046_v10  ;;  %v3196_v37 = vpack.c.bf16 %v3183_v15, %v3182_v53 }
 0x2da   : > { %v4212_v54 = vpop.f32.mrb[176].mxu0 }
 0x2db   : > { %v3206_v14 = vpack.c.bf16 %v3143_v38, %v3140_v31  ;;  %v4264_v44 = vpop.f32.mrb[184].mxu1  ;;  %v4213_v8 = vpop.f32.mrb[177].mxu0  ;;  %v3185_v38 = vld [vmem:[%s6161_s30 + $0x38] sm:$0xff] }
 0x2dc   : > { %v4214_v7 = vadd.f32 %v4213_v8, %v4212_v54  ;;  %v4265_v27 = vpop.f32.mrb[185].mxu1  ;;  %v4215_v63 = vpop.f32.mrb[178].mxu0  ;;  %v3186_v54 = vld [vmem:[%s6161_s30 + $0x40] sm:$0xff] }
 0x2dd   : > { %v4266_v21 = vadd.f32 %v4265_v27, %v4264_v44  ;;  %v4267_v51 = vpop.f32.mrb[186].mxu1  ;;  %4326 = vmatmul.mubr.msk.bf16.gmra.mrb[188].mxu0 %vm1609_vm0, %v3206_v14  ;;  %v4216_v35 = vpop.f32.mrb[179].mxu0  ;;  %v3187_v14 = vld [vmem:[%s6161_s30 + $0x48] sm:$0xff]  ;;  %v3189_v27 = vld [vmem:[%s6161_s30 + $0x58] sm:$0xff] }
 0x2de   : > { %v3067_v0 = vadd.f32 %v4214_v7, %v6127_v18  ;;  %v4217_v30 = vadd.f32 %v4216_v35, %v4215_v63  ;;  %v4268_v19 = vpop.f32.mrb[187].mxu1  ;;  %v3198_v8 = vpack.c.bf16 %v3187_v14, %v3186_v54  ;;  %v3188_v7 = vld [vmem:[%s6161_s30 + $0x50] sm:$0xff]  ;;  %v3190_v63 = vld [vmem:[%s6161_s30 + $0x60] sm:$0xff] }
 0x2df   : > { %v3148_v9 = vadd.f32 %v4266_v21, %v3051_v48  ;;  %v4269_v43 = vadd.f32 %v4268_v19, %v4267_v51  ;;  %v3191_v21 = vld [vmem:[%s6161_s30 + $0x68] sm:$0xff]  ;;  %v3199_v51 = vpack.c.bf16 %v3189_v27, %v3188_v7 }
 0x2e0   : > { %v3070_v61 = vadd.f32 %v4217_v30, %v6130_v62  ;;  %v3200_v35 = vpack.c.bf16 %v3191_v21, %v3190_v63  ;;  %v3193_v30 = vld [vmem:[%s6161_s30 + $0x78] sm:$0xff]  ;;  %v6203_v63 = vld [vmem:[%s6279_s11] ss:$0 sm:$0xff] }
 0x2e1   : > { %v3151_v50 = vadd.f32 %v4269_v43, %v3054_v3 }
 0x2e2   : > { %v4218_v12 = vpop.f32.mrb[180].mxu0 }
 0x2e3   : > { %v3207_v2 = vpack.c.bf16 %v3151_v50, %v3148_v9  ;;  %v4270_v33 = vpop.f32.mrb[188].mxu1  ;;  %v4219_v26 = vpop.f32.mrb[181].mxu0  ;;  %v4016_v9 = vld [vmem:[%s6277_s9] ss:$0 sm:$0xff] }
 0x2e4   : > { %v4220_v6 = vadd.f32 %v4219_v26, %v4218_v12  ;;  %v4271_v11 = vpop.f32.mrb[189].mxu1  ;;  %v4221_v22 = vpop.f32.mrb[182].mxu0 }
 0x2e5   : > { %v4272_v10 = vadd.f32 %v4271_v11, %v4270_v33  ;;  %v4273_v57 = vpop.f32.mrb[190].mxu1  ;;  %4329 = vmatprep.mubr.msk.bf16.mxu0 %vm1609_vm0, %v3207_v2  ;;  %v4222_v5 = vpop.f32.mrb[183].mxu0 }
 0x2e6   : > { %v3075_v18 = vadd.f32 %v4220_v6, %v6133_v34  ;;  %v4223_v60 = vadd.f32 %v4222_v5, %v4221_v22  ;;  %v4274_v23 = vpop.f32.mrb[191].mxu1 }
 0x2e7   : > { %v3156_v59 = vadd.f32 %v4272_v10, %v3059_v1  ;;  %v4275_v25 = vadd.f32 %v4274_v23, %v4273_v57  ;;  %v3181_v1 = vld [vmem:[%s6161_s30 + $0x18] sm:$0xff] }
 0x2e8   : > { %v3078_v62 = vadd.f32 %v4223_v60, %v6136_v24  ;;  %v3195_v31 = vpack.c.bf16 %v3181_v1, %v3180_v55 }
 0x2e9   : > { %v3159_v49 = vadd.f32 %v4275_v25, %v3062_v52  ;;  %v3184_v52 = vld [vmem:[%s6161_s30 + $0x30] sm:$0xff] }
 0x2ea   : > { %v3197_v44 = vpack.c.bf16 %v3185_v38, %v3184_v52 }
 0x2eb   : > { %v3208_v41 = vpack.c.bf16 %v3159_v49, %v3156_v59  ;;  %v4276_v20 = vpop.f32.mrb[192].mxu1 }
 0x2ec   : > { %v4277_v17 = vpop.f32.mrb[193].mxu1 }
 0x2ed   : > { %v4278_v16 = vadd.f32 %v4277_v17, %v4276_v20  ;;  %v4279_v48 = vpop.f32.mrb[194].mxu1  ;;  %4330 = vmatmul.mubr.msk.bf16.gmra.mrb[192].mxu0 %vm1609_vm0, %v3208_v41 }
 0x2ee   : > { %v4280_v4 = vpop.f32.mrb[195].mxu1 }
 0x2ef   : > { %v3164_v29 = vadd.f32 %v4278_v16, %v3067_v0  ;;  %v4281_v13 = vadd.f32 %v4280_v4, %v4279_v48  ;;  %v3192_v0 = vld [vmem:[%s6161_s30 + $0x70] sm:$0xff]  ;;  %s6228_s30 = scalar_lea.hbm %s6280_s12, %s4029_s19 }
 0x2f0   : > { %v3201_v19 = vpack.c.bf16 %v3193_v30, %v3192_v0 }
 0x2f1   : > { %v3167_v42 = vadd.f32 %v4281_v13, %v3070_v61 }
 0x2f3   : > { %v3209_v34 = vpack.c.bf16 %v3167_v42, %v3164_v29  ;;  %v4282_v3 = vpop.f32.mrb[196].mxu1 }
 0x2f4   : > { %v4283_v45 = vpop.f32.mrb[197].mxu1 }
 0x2f5   : > { %v4284_v24 = vadd.f32 %v4283_v45, %v4282_v3  ;;  %v4285_v36 = vpop.f32.mrb[198].mxu1  ;;  %4333 = vmatprep.mubr.msk.bf16.mxu0 %vm1609_vm0, %v3209_v34 }
 0x2f6   : > { %v4286_v46 = vpop.f32.mrb[199].mxu1 }
 0x2f7   : > { %v3172_v56 = vadd.f32 %v4284_v24, %v3075_v18  ;;  %v4287_v47 = vadd.f32 %v4286_v46, %v4285_v36 }
 0x2f9   : > { %v3175_v39 = vadd.f32 %v4287_v47, %v3078_v62 }
 0x2fb   : > { %v3210_v28 = vpack.c.bf16 %v3175_v39, %v3172_v56 }
 0x2fd   : > { %4334 = vmatmul.mubr.msk.bf16.gmra.mrb[196].mxu0 %vm1609_vm0, %v3210_v28 }
 0x2fe   : > { %4339 = vmatprep.mubr.msk.bf16.mxu0 %vm3348_vm2, %v3194_v40 }
 0x305   : > { %4340 = vmatmul.mubr.msk.bf16.vlgmr.msra.gmra.mrb[184].mxu0 %vm3348_vm2, %v3195_v31 }
 0x306   : > { %4343 = vmatprep.mubr.msk.bf16.mxu0 %vm3348_vm2, %v3196_v37 }
 0x30d   : > { %4344 = vmatmul.mubr.msk.bf16.gmra.mrb[188].mxu0 %vm3348_vm2, %v3197_v44 }
 0x30e   : > { %4347 = vmatprep.mubr.msk.bf16.mxu0 %vm3348_vm2, %v3198_v8 }
 0x315   : > { %4348 = vmatmul.mubr.msk.bf16.gmra.mrb[192].mxu0 %vm3348_vm2, %v3199_v51 }
 0x316   : > { %4351 = vmatprep.mubr.msk.bf16.mxu0 %vm3348_vm2, %v3200_v35 }
 0x31d   : > { %4352 = vmatmul.mubr.msk.bf16.gmra.mrb[196].mxu0 %vm3348_vm2, %v3201_v19 }
 0x3d8   : > { %v4341_v43 = vpop.f32.mrb[184].mxu0 }
 0x3d9   : > { %v3483_v61 = vadd.f32 %v4341_v43, %v4016_v9  ;;  %v3411_v50 = vpop.f32.mrb[185].mxu0 }
 0x3da   : > { %v3481_v12 = vadd.f32 %v4016_v9, %v3411_v50  ;;  %v4342_v2 = vpop.f32.mrb[186].mxu0 }
 0x3db   : > { %v3484_v33 = vadd.f32 %v4342_v2, %v4016_v9  ;;  %v3414_v26 = vpop.f32.mrb[187].mxu0  ;;  %v3499_v11 = vmax.f32 %v3483_v61, 0.0 }
 0x3dc   : > { %v3482_v6 = vadd.f32 %v4016_v9, %v3414_v26  ;;  %v3497_v10 = vmax.f32 %v3481_v12, 0.0 }
 0x3dd   : > { %v3500_v22 = vmax.f32 %v3484_v33, 0.0 }
 0x3de   : > { %v3498_v57 = vmax.f32 %v3482_v6, 0.0 }
 0x3df   : > { %v3514_v5 = vpack.c.bf16 %v3500_v22, %v3499_v11 }
 0x3e0   : > { %v3513_v18 = vpack.c.bf16 %v3498_v57, %v3497_v10  ;;  %v4345_v60 = vpop.f32.mrb[188].mxu0 }
 0x3e1   : > { %v3487_v23 = vadd.f32 %v4345_v60, %v4016_v9  ;;  %v3427_v59 = vpop.f32.mrb[189].mxu0 }
 0x3e2   : > { %v3485_v25 = vadd.f32 %v4016_v9, %v3427_v59  ;;  %v4346_v62 = vpop.f32.mrb[190].mxu0  ;;  %4359 = vmatprep.mubr.msk.bf16.mxu1 %vm1609_vm0, %v3513_v18 }
 0x3e3   : > { %v3488_v49 = vadd.f32 %v4346_v62, %v4016_v9  ;;  %v3430_v41 = vpop.f32.mrb[191].mxu0  ;;  %4360 = vmatmul.mubr.msk.bf16.vlgmr.msra.gmra.mrb[200].mxu1 %vm1609_vm0, %v3514_v5  ;;  %v3503_v17 = vmax.f32 %v3487_v23, 0.0 }
 0x3e4   : > { %v3486_v20 = vadd.f32 %v4016_v9, %v3430_v41  ;;  %v3501_v48 = vmax.f32 %v3485_v25, 0.0 }
 0x3e5   : > { %v3504_v16 = vmax.f32 %v3488_v49, 0.0 }
 0x3e6   : > { %v3502_v4 = vmax.f32 %v3486_v20, 0.0 }
 0x3e7   : > { %v3516_v29 = vpack.c.bf16 %v3504_v16, %v3503_v17 }
 0x3e8   : > { %v3515_v13 = vpack.c.bf16 %v3502_v4, %v3501_v48  ;;  %v4349_v42 = vpop.f32.mrb[192].mxu0 }
 0x3e9   : > { %v3491_v34 = vadd.f32 %v4349_v42, %v4016_v9  ;;  %v3443_v3 = vpop.f32.mrb[193].mxu0 }
 0x3ea   : > { %v3489_v45 = vadd.f32 %v4016_v9, %v3443_v3  ;;  %v4350_v24 = vpop.f32.mrb[194].mxu0  ;;  %4363 = vmatprep.mubr.msk.bf16.mxu1 %vm1609_vm0, %v3515_v13 }
 0x3eb   : > { %v3492_v36 = vadd.f32 %v4350_v24, %v4016_v9  ;;  %v3446_v46 = vpop.f32.mrb[195].mxu0  ;;  %4364 = vmatmul.mubr.msk.bf16.gmra.mrb[204].mxu1 %vm1609_vm0, %v3516_v29  ;;  %v3507_v47 = vmax.f32 %v3491_v34, 0.0 }
 0x3ec   : > { %v3490_v56 = vadd.f32 %v4016_v9, %v3446_v46  ;;  %v3505_v58 = vmax.f32 %v3489_v45, 0.0 }
 0x3ed   : > { %v3508_v32 = vmax.f32 %v3492_v36, 0.0 }
 0x3ee   : > { %v3506_v39 = vmax.f32 %v3490_v56, 0.0 }
 0x3ef   : > { %v3518_v40 = vpack.c.bf16 %v3508_v32, %v3507_v47 }
 0x3f0   : > { %v3517_v28 = vpack.c.bf16 %v3506_v39, %v3505_v58  ;;  %v4353_v55 = vpop.f32.mrb[196].mxu0 }
 0x3f1   : > { %v3495_v1 = vadd.f32 %v4353_v55, %v4016_v9  ;;  %v3459_v53 = vpop.f32.mrb[197].mxu0 }
 0x3f2   : > { %v3493_v15 = vadd.f32 %v4016_v9, %v3459_v53  ;;  %v4354_v31 = vpop.f32.mrb[198].mxu0  ;;  %4367 = vmatprep.mubr.msk.bf16.mxu1 %vm1609_vm0, %v3517_v28 }
 0x3f3   : > { %v3496_v37 = vadd.f32 %v4354_v31, %v4016_v9  ;;  %v3462_v52 = vpop.f32.mrb[199].mxu0  ;;  %4368 = vmatmul.mubr.msk.bf16.gmra.mrb[208].mxu1 %vm1609_vm0, %v3518_v40  ;;  %v3511_v54 = vmax.f32 %v3495_v1, 0.0 }
 0x3f4   : > { %v3494_v38 = vadd.f32 %v4016_v9, %v3462_v52  ;;  %v3509_v44 = vmax.f32 %v3493_v15, 0.0 }
 0x3f5   : > { %v3512_v14 = vmax.f32 %v3496_v37, 0.0 }
 0x3f6   : > { %v3510_v8 = vmax.f32 %v3494_v38, 0.0 }
 0x3f7   : > { %v3520_v7 = vpack.c.bf16 %v3512_v14, %v3511_v54 }
 0x3f8   : > { %v3519_v27 = vpack.c.bf16 %v3510_v8, %v3509_v44 }
 0x3fa   : > { %4371 = vmatprep.mubr.msk.bf16.mxu1 %vm1609_vm0, %v3519_v27 }
 0x3fb   : > { %4372 = vmatmul.mubr.msk.bf16.gmra.mrb[212].mxu1 %vm1609_vm0, %v3520_v7 }
 0x4b6   : > { %v4361_v21 = vpop.f32.mrb[200].mxu1 }
 0x4b7   : > { %v3602_v51 = vpop.f32.mrb[201].mxu1  ;;  %v3611_v9 = vadd.f32 %v4361_v21, %v6203_v63 }
 0x4b8   : > { %v3603_v35 = vadd.f32 %v6203_v63, %v3602_v51  ;;  %v4362_v0 = vpop.f32.mrb[202].mxu1 }
 0x4b9   : > { %v3605_v30 = vpop.f32.mrb[203].mxu1  ;;  %v3614_v2 = vadd.f32 %v4362_v0, %v6203_v63 }
 0x4ba   : > { %4504 = vtanh.f32 %v3603_v35  ;;  %v3606_v19 = vadd.f32 %v6203_v63, %v3605_v30 }
 0x4bc   : > { %4506 = vtanh.f32 %v3606_v19 }
 0x4bd   : > { %4508 = vtanh.f32 %v3611_v9 }
 0x4be   : > { %v4365_v43 = vpop.f32.mrb[204].mxu1  ;;  %4510 = vtanh.f32 %v3614_v2 }
 0x4bf   : > { %v3618_v61 = vpop.f32.mrb[205].mxu1  ;;  %v3627_v60 = vadd.f32 %v4365_v43, %v6203_v63 }
 0x4c0   : > { %v4366_v50 = vpop.f32.mrb[206].mxu1  ;;  %v3619_v26 = vadd.f32 %v6203_v63, %v3618_v61 }
 0x4c1   : > { %v3621_v12 = vpop.f32.mrb[207].mxu1  ;;  %v3630_v41 = vadd.f32 %v4366_v50, %v6203_v63 }
 0x4c2   : > { %4512 = vtanh.f32 %v3619_v26  ;;  %v3622_v5 = vadd.f32 %v6203_v63, %v3621_v12 }
 0x4c4   : > { %v4505_v33 = vpop.eup %4504  ;;  %4514 = vtanh.f32 %v3622_v5 }
 0x4c5   : > { %3681 = vxpose.xlu0.b32.start [1/16] (narrow) %v4505_v33, 8  ;;  %4516 = vtanh.f32 %v3627_v60 }
 0x4c6   : > { %v4369_v6 = vpop.f32.mrb[208].mxu1  ;;  %v4507_v22 = vpop.eup %4506  ;;  %4518 = vtanh.f32 %v3630_v41 }
 0x4c7   : > { %v3634_v11 = vpop.f32.mrb[209].mxu1  ;;  %v4509_v18 = vpop.eup %4508  ;;  %v3643_v29 = vadd.f32 %v4369_v6, %v6203_v63 }
 0x4c8   : > { %v4370_v10 = vpop.f32.mrb[210].mxu1  ;;  %v4511_v25 = vpop.eup %4510  ;;  %v3635_v17 = vadd.f32 %v6203_v63, %v3634_v11 }
 0x4c9   : > { %v3637_v57 = vpop.f32.mrb[211].mxu1  ;;  %3682 = vxpose.xlu0.b32.cont [2/16] (narrow) %v4507_v22, 8  ;;  %v3646_v42 = vadd.f32 %v4370_v10, %v6203_v63 }
 0x4ca   : > { %4520 = vtanh.f32 %v3635_v17  ;;  %v3638_v48 = vadd.f32 %v6203_v63, %v3637_v57 }
 0x4cc   : > { %v4513_v20 = vpop.eup %4512  ;;  %4522 = vtanh.f32 %v3638_v48 }
 0x4cd   : > { %3683 = vxpose.xlu0.b32.cont [3/16] (narrow) %v4509_v18, 8  ;;  %4524 = vtanh.f32 %v3643_v29 }
 0x4ce   : > { %v4373_v23 = vpop.f32.mrb[212].mxu1  ;;  %v4515_v16 = vpop.eup %4514  ;;  %4526 = vtanh.f32 %v3646_v42 }
 0x4cf   : > { %v3650_v59 = vpop.f32.mrb[213].mxu1  ;;  %v4517_v4 = vpop.eup %4516  ;;  %v3659_v46 = vadd.f32 %v4373_v23, %v6203_v63 }
 0x4d0   : > { %v4374_v62 = vpop.f32.mrb[214].mxu1  ;;  %v4519_v13 = vpop.eup %4518  ;;  %v3651_v3 = vadd.f32 %v6203_v63, %v3650_v59 }
 0x4d1   : > { %v3653_v49 = vpop.f32.mrb[215].mxu1  ;;  %3684 = vxpose.xlu0.b32.cont [4/16] (narrow) %v4511_v25, 8  ;;  %v3662_v47 = vadd.f32 %v4374_v62, %v6203_v63 }
 0x4d2   : > { %4528 = vtanh.f32 %v3651_v3  ;;  %v3654_v24 = vadd.f32 %v6203_v63, %v3653_v49 }
 0x4d4   : > { %v4521_v34 = vpop.eup %4520  ;;  %4530 = vtanh.f32 %v3654_v24 }
 0x4d5   : > { %3685 = vxpose.xlu0.b32.cont [5/16] (narrow) %v4513_v20, 8  ;;  %4532 = vtanh.f32 %v3659_v46 }
 0x4d6   : > { %v4523_v45 = vpop.eup %4522  ;;  %4534 = vtanh.f32 %v3662_v47 }
 0x4d7   : > { %v4525_v36 = vpop.eup %4524 }
 0x4d8   : > { %v4527_v56 = vpop.eup %4526 }
 0x4d9   : > { %3686 = vxpose.xlu0.b32.cont [6/16] (narrow) %v4515_v16, 8 }
 0x4dc   : > { %v4529_v32 = vpop.eup %4528 }
 0x4dd   : > { %3687 = vxpose.xlu0.b32.cont [7/16] (narrow) %v4517_v4, 8 }
 0x4de   : > { %v4531_v58 = vpop.eup %4530 }
 0x4df   : > { %v4533_v39 = vpop.eup %4532 }
 0x4e0   : > { %v4535_v40 = vpop.eup %4534 }
 0x4e1   : > { %3688 = vxpose.xlu0.b32.cont [8/16] (narrow) %v4519_v13, 8 }
 0x4e5   : > { %3689 = vxpose.xlu0.b32.cont [9/16] (narrow) %v4521_v34, 8 }
 0x4e9   : > { %3690 = vxpose.xlu0.b32.cont [10/16] (narrow) %v4523_v45, 8 }
 0x4ed   : > { %3691 = vxpose.xlu0.b32.cont [11/16] (narrow) %v4525_v36, 8 }
 0x4f1   : > { %3692 = vxpose.xlu0.b32.cont [12/16] (narrow) %v4527_v56, 8 }
 0x4f5   : > { %3693 = vxpose.xlu0.b32.cont [13/16] (narrow) %v4529_v32, 8 }
 0x4f9   : > { %3694 = vxpose.xlu0.b32.cont [14/16] (narrow) %v4531_v58, 8 }
 0x4fd   : > { %3695 = vxpose.xlu0.b32.cont [15/16] (narrow) %v4533_v39, 8 }
 0x501   : > { %3696 = vxpose.xlu0.b32.end [16/16] (narrow) %v4535_v40, 8 }
 0x545   : > { %v3697_v28 = vpop.trf.xlu0 }
 0x546   : > { %3713 = vst [vmem:[%s439_s27] sm:$0x3] %v3697_v28 }
 0x547   : > { %4549 = shalt.err (!%p4546_p3)
}
 0x548   : > { %s4550_s28 = scalar_lea.hbm %s6228_s30, 32  ;;  %s4554_s19 = scalar_lea.hbm %s6280_s12, 64 }
 0x549   : > { %p4551_p4 = scmp.ne.s32.totalorder %s6228_s30, %s4550_s28  ;;  %p4555_p9 = scmp.lt.u32.totalorder %s6228_s30, %s6280_s12 }
 0x54a   : > { %p4556_p10 = scmp.lt.u32.totalorder %s4554_s19, %s4550_s28  ;;  %p4558_p12 = scmp.lt.u32.totalorder %s4550_s28, %s6228_s30 }
 0x54b   : > { %p4552_p7 = pnand %p4551_p4, %p4705_p5 }
 0x54c   : > { %p4557_p11 = por %p4556_p10, %p4555_p9 }
 0x54d   : > { %p4553_p8 = pneg %p4552_p7 }
 0x54e   : > { %p4559_p13 = por %p4558_p12, %p4557_p11 }
 0x550   : > { %p4560_p0 = pnand %p4559_p13, %p4553_p8 }
 0x552   : > { %4563 = shalt.err (!%p4560_p0)
}
 0x553   : > { %4396 = dma.vmem_to_hbm [thread:$0]  (%p4705_p5), %s6223_s18, 32, %s6228_s30, %s3715_s29  }
 0x554 PF: > { %p4402_p1 = scmp.ge.s32.totalorder %s4598_s24, 2  ;;  %s3740_s17 = sand.u32 1, %s4586_s21  }
 0x555   : > { %s3741_s26 = scalar_lea.sflag [#allocation3], %s3740_s17 }
 0x556   : > { %p4399_p2 = pnand %p4402_p1, %p4709_p6 }
 0x558   : > { %4581 = dma.done.wait (!%p4399_p2), %s3741_s26, 32  }
 0x559   : > { %4583 = vsyncadd (!%p4399_p2), %s3741_s26, 4294967264  ;;  %s6463_s24 = sld [smem:[#allocation6_spill]]  ;;  %s6464_s25 = sld [smem:[#allocation5_spill]] }
 0x55a   : > { %s6465_s23 = sld [smem:[#allocation7_spill]]  ;;  %s6466_s21 = smov %s4590_s22 }
 0x55f   : > { %p22_p3 = scmp.ge.s32.totalorder %s6463_s24, 4   ;;  %s6467_s22 = smov %s6464_s25 }
 0x561   :  { %24 = sbr.rel (!%p22_p3) target bundleno = 3 (0x3), region = 109 }
 0x568   :  { %3746 = vsyncpa [#allocation3], 1 }
 0x569   :  { %3748 = vsyncpa [#allocation3 + $0x1], 1 }

</bundles_post_ra>
